<compile_context>
chip_gen: v5e
topology: v5e:2x2
jax: 0.10.0
libtpu: 0.0.40
codegen_flags: <defaults>
</compile_context>

<pallas_src>
import functools
import math

import numpy as np
import jax
import jax.numpy as jnp
from jax import lax
from jax.experimental import pallas as pl
from jax.experimental.pallas import tpu as pltpu

# ---------------- small synthetic dims (scaled-down QRL defaults) ----------------
OBS_DIM = 16
ACT_DIM = 4
ENC_HIDDEN = 64
LATENT = 32
DYN_HIDDEN = 64
PROJ_HIDDEN = 64
IQE_COMPONENTS = 8
IQE_DIM_PER_COMP = 8
PROJ_OUT = IQE_COMPONENTS * IQE_DIM_PER_COMP  # quasimetric embedding dim


def _round_up(n, m):
    return ((n + m - 1) // m) * m


# ====================== fused kernel: MLPs + IQE maxmean =========================
# Everything is transposed: activations are (features, batch) with the batch on
# the lane axis; weights are (fan_out, fan_in); biases are (fan_out, 1) columns.
def _critic_fused_kernel(use_action, n_comp, k_dim, *refs):
    if use_action:
        (x_ref, y_ref, a_ref,
         ew0, eb0, ew1, eb1, ew2, eb2,
         dw0z, dw0a, db0, dw1, db1, dw2, db2,
         pw0, pb0, pw1, pb1,
         alpha_ref, out_ref) = refs
    else:
        (x_ref, y_ref,
         ew0, eb0, ew1, eb1, ew2, eb2,
         pw0, pb0, pw1, pb1,
         alpha_ref, out_ref) = refs

    tm = x_ref.shape[-1]            # batch tile size (lane axis), multiple of 128

    def dotT(w_ref, h):
        # (out,in) bf16 @ (in,batch) bf16 -> (out,batch) f32 on the MXU.
        return jnp.dot(w_ref[...], h.astype(jnp.bfloat16),
                       preferred_element_type=jnp.float32)

    # ---- encoder: run ONCE on x||y stacked along the lane (batch) axis ----------
    xy = jnp.concatenate([x_ref[...], y_ref[...]], axis=-1)       # (OBS, 2*tm)
    h = jnp.maximum(dotT(ew0, xy) + eb0[...], 0.0)
    h = jnp.maximum(dotT(ew1, h) + eb1[...], 0.0)
    z = dotT(ew2, h) + eb2[...]                                   # (LATENT, 2*tm)

    if use_action:
        zx = z[:, :tm]                                            # aligned lane slices
        zy = z[:, tm:]
        # latent dynamics MLP on concat([zx, action]) realized as a split matmul
        # (W_z @ zx + W_a @ a), mathematically identical to the concat.
        h = jnp.maximum(dotT(dw0z, zx) + dotT(dw0a, a_ref[...]) + db0[...], 0.0)
        h = jnp.maximum(dotT(dw1, h) + db1[...], 0.0)
        zx = zx + dotT(dw2, h) + db2[...]                         # residual dynamics
        zz = jnp.concatenate([zx, zy], axis=-1)                   # (LATENT, 2*tm)
    else:
        zz = z

    # ---- projector: run ONCE on zx||zy ------------------------------------------
    h = jnp.maximum(dotT(pw0, zz) + pb0[...], 0.0)
    p = dotT(pw1, h) + pb1[...]                                   # (PROJ_OUT, 2*tm)
    px = p[:, :tm]                                                # (PROJ_OUT, tm)
    py = p[:, tm:]

    # ---------------- IQE (interval quasimetric) + maxmean, all f32 --------------
    # Per component: intervals [u_j, max(u_j, v_j)]; component distance = Lebesgue
    # measure of their union.  Sort-free: for each endpoint find the next strictly
    # greater endpoint (index tie-break) and add the segment if covered by some
    # interval.  Batch lives on the lane axis; endpoint/interval axes are leading
    # or sublane axes, so reductions over them are pure VPU / cheap sublane ops.
    k2 = 2 * k_dim
    cid = lax.broadcasted_iota(jnp.int32, (k2, k2, 1), 0)   # candidate index
    qid = lax.broadcasted_iota(jnp.int32, (k2, k2, 1), 1)   # query index
    tie = cid > qid                                         # tiny constant mask
    inf = jnp.float32(jnp.inf)

    comp_max = None
    comp_sum = None
    for c in range(n_comp):
        u = px[c * k_dim:(c + 1) * k_dim, :]                # (K, tm) interval starts
        v = py[c * k_dim:(c + 1) * k_dim, :]
        w = jnp.maximum(u, v)                               # ends (empty if u >= v)
        e = jnp.concatenate([u, w], axis=0)                 # (2K, tm) endpoints (sublane concat)
        e_c = e[:, None, :]                                 # (2K, 1, tm) candidates
        e_q = e[None, :, :]                                 # (1, 2K, tm) queries
        # next endpoint strictly after each endpoint (lexicographic index tie-break)
        greater = (e_c > e_q) | ((e_c == e_q) & tie)        # (2K, 2K, tm)
        nxt = jnp.min(jnp.where(greater, e_c, inf), axis=0)  # (2K, tm), leading-axis reduce
        gap = jnp.where(nxt < inf, nxt - e, 0.0)            # (2K, tm)
        # segment starting at endpoint t is covered iff exists j: u_j <= t < w_j
        cov = jnp.any((u[:, None, :] <= e_q) & (e_q < w[:, None, :]), axis=0)
        comp_c = jnp.sum(jnp.where(cov, gap, 0.0), axis=0, keepdims=True)   # (1, tm)

        comp_max = comp_c if comp_max is None else jnp.maximum(comp_max, comp_c)
        comp_sum = comp_c if comp_sum is None else comp_sum + comp_c

    # learnable maxmean mixing weight (scalar from SMEM)
    alpha = jax.nn.sigmoid(jnp.full((1, 1), alpha_ref[0], jnp.float32))
    out_ref[...] = alpha * comp_max + (1.0 - alpha) * (comp_sum * (1.0 / n_comp))


# ================================ public forward =================================
def quasimetric_critic_forward(params, x, y, *, action=None, block_batch=256):
    use_action = action is not None
    enc, dyn, proj = params["encoder"], params["dynamics"], params["projector"]

    B = x.shape[0]
    b_lane = _round_up(max(B, 1), 128)                  # batch padded to lane tile
    tm = min(_round_up(block_batch, 128), b_lane)
    if tm == b_lane and b_lane > 128:
        # keep >= 2 grid steps so ("parallel",) can shard tiles across TCs (v7x)
        tm = 128 * max(1, (b_lane // 128) // 2)
    b_pad = _round_up(B, tm)
    pad = b_pad - B

    def prep(a):                                        # pad batch, batch -> lanes
        a = jnp.asarray(a, jnp.float32)
        if pad:
            a = jnp.pad(a, ((0, pad), (0, 0)))
        return a.T                                      # (feat, b_pad)

    args = [prep(x), prep(y)]
    if use_action:
        args.append(prep(action))
    args += [enc["w0"], enc["b0"], enc["w1"], enc["b1"], enc["w2"], enc["b2"]]
    if use_action:
        args += [dyn["w0_z"], dyn["w0_a"], dyn["b0"],
                 dyn["w1"], dyn["b1"], dyn["w2"], dyn["b2"]]
    args += [proj["w0"], proj["b0"], proj["w1"], proj["b1"]]
    alpha = jnp.asarray(params["raw_alpha"], jnp.float32).reshape(1)
    args.append(alpha)

    n_batch_args = 3 if use_action else 2
    in_specs = []
    for i, a in enumerate(args[:-1]):
        if i < n_batch_args:
            # batch-tiled activation inputs: (feat, tm) lane blocks
            in_specs.append(pl.BlockSpec((a.shape[0], tm), lambda b: (0, b)))
        else:
            # weights / biases: full array, constant block index -> VMEM resident
            in_specs.append(pl.BlockSpec(a.shape, lambda b: (0, 0)))
    # maxmean mixing scalar lives in SMEM (no (8,128) VMEM padding for one float)
    in_specs.append(pl.BlockSpec(memory_space=pltpu.MemorySpace.SMEM))

    out = pl.pallas_call(
        functools.partial(_critic_fused_kernel, use_action,
                          IQE_COMPONENTS, IQE_DIM_PER_COMP),
        grid=(b_pad // tm,),
        in_specs=in_specs,
        out_specs=pl.BlockSpec((1, tm), lambda b: (0, b)),          # lane-dense output
        out_shape=jax.ShapeDtypeStruct((1, b_pad), jnp.float32),
        compiler_params=pltpu.CompilerParams(
            dimension_semantics=("parallel",)),   # shards batch tiles across TCs (v7x)
    )(*args)
    return out[0, :B]


# ================================ parameter init =================================
def _linear_init(key, fan_in, fan_out):
    kw, kb = jax.random.split(key)
    bound = 1.0 / math.sqrt(fan_in)
    w = jax.random.uniform(kw, (fan_out, fan_in), jnp.float32, -bound, bound)
    b = jax.random.uniform(kb, (fan_out, 1), jnp.float32, -bound, bound)
    return w.astype(jnp.bfloat16), b   # bf16 transposed weights, f32 column biases


def init_params(key):
    ks = jax.random.split(key, 8)
    enc = {}
    enc["w0"], enc["b0"] = _linear_init(ks[0], OBS_DIM, ENC_HIDDEN)
    enc["w1"], enc["b1"] = _linear_init(ks[1], ENC_HIDDEN, ENC_HIDDEN)
    enc["w2"], enc["b2"] = _linear_init(ks[2], ENC_HIDDEN, LATENT)

    dyn = {}
    w0, dyn["b0"] = _linear_init(ks[3], LATENT + ACT_DIM, DYN_HIDDEN)
    dyn["w0_z"], dyn["w0_a"] = w0[:, :LATENT], w0[:, LATENT:]   # split == concat-matmul
    dyn["w1"], dyn["b1"] = _linear_init(ks[4], DYN_HIDDEN, DYN_HIDDEN)
    dyn["w2"], dyn["b2"] = _linear_init(ks[5], DYN_HIDDEN, LATENT)

    proj = {}
    proj["w0"], proj["b0"] = _linear_init(ks[6], LATENT, PROJ_HIDDEN)
    proj["w1"], proj["b1"] = _linear_init(ks[7], PROJ_HIDDEN, PROJ_OUT)

    return {"encoder": enc, "dynamics": dyn, "projector": proj,
            "raw_alpha": jnp.zeros((), jnp.float32)}   # maxmean alpha = sigmoid(0) = 0.5
    # TODO(synk): raw_lagrange_multiplier is a module parameter unused in forward().


# ================================ pure-JAX reference =============================
def _ref_forward(params, x, y, action=None):
    enc, dyn, proj = params["encoder"], params["dynamics"], params["projector"]

    def lin(h, wT, b):   # same bf16-operand / f32-accumulate contract as the kernel
        return jnp.dot(h.astype(jnp.bfloat16), wT.T,
                       preferred_element_type=jnp.float32) + b[:, 0]

    def encoder(h):
        h = jax.nn.relu(lin(h, enc["w0"], enc["b0"]))
        h = jax.nn.relu(lin(h, enc["w1"], enc["b1"]))
        return lin(h, enc["w2"], enc["b2"])

    def projector(h):
        h = jax.nn.relu(lin(h, proj["w0"], proj["b0"]))
        return lin(h, proj["w1"], proj["b1"])

    zx, zy = encoder(x), encoder(y)
    if action is not None:
        h = jax.nn.relu(
            jnp.dot(zx.astype(jnp.bfloat16), dyn["w0_z"].T,
                    preferred_element_type=jnp.float32)
            + jnp.dot(action.astype(jnp.bfloat16), dyn["w0_a"].T,
                      preferred_element_type=jnp.float32)
            + dyn["b0"][:, 0])
        h = jax.nn.relu(lin(h, dyn["w1"], dyn["b1"]))
        zx = zx + lin(h, dyn["w2"], dyn["b2"])

    u = projector(zx).reshape(-1, IQE_COMPONENTS, IQE_DIM_PER_COMP)
    v = projector(zy).reshape(-1, IQE_COMPONENTS, IQE_DIM_PER_COMP)
    w = jnp.maximum(u, v)
    ep = jnp.sort(jnp.concatenate([u, w], axis=-1), axis=-1)
    left, delta = ep[..., :-1], ep[..., 1:] - ep[..., :-1]
    covered = jnp.any((u[..., None, :] <= left[..., :, None]) &
                      (left[..., :, None] < w[..., None, :]), axis=-1)
    comp = jnp.sum(delta * covered, axis=-1)
    alpha = jax.nn.sigmoid(params["raw_alpha"].astype(jnp.float32))
    return alpha * comp.max(-1) + (1.0 - alpha) * comp.mean(-1)


# ===================================== main ======================================
if __name__ == "__main__":
    key = jax.random.PRNGKey(0)
    kp, kx, ky, ka = jax.random.split(key, 4)
    params = init_params(kp)

    BATCH = 2
    x = jax.random.normal(kx, (BATCH, OBS_DIM), jnp.float32)
    y = jax.random.normal(ky, (BATCH, OBS_DIM), jnp.float32)
    action = jax.random.normal(ka, (BATCH, ACT_DIM), jnp.float32)

    # with action (full path: encoder -> latent dynamics -> quasimetric)
    d_act = jax.block_until_ready(quasimetric_critic_forward(params, x, y, action=action))
    np.testing.assert_allclose(np.asarray(d_act),
                               np.asarray(_ref_forward(params, x, y, action)),
                               rtol=1e-3, atol=1e-3)

    # without action (encoder -> quasimetric)
    d_noact = jax.block_until_ready(quasimetric_critic_forward(params, x, y))
    np.testing.assert_allclose(np.asarray(d_noact),
                               np.asarray(_ref_forward(params, x, y)),
                               rtol=1e-3, atol=1e-3)

    # larger (non-multiple) batch: exercises the real batch grid (tm=256, 2 steps, padding)
    kb1, kb2, kb3 = jax.random.split(jax.random.PRNGKey(1), 3)
    xb = jax.random.normal(kb1, (300, OBS_DIM), jnp.float32)
    yb = jax.random.normal(kb2, (300, OBS_DIM), jnp.float32)
    ab = jax.random.normal(kb3, (300, ACT_DIM), jnp.float32)
    d_big = jax.block_until_ready(quasimetric_critic_forward(params, xb, yb, action=ab))
    np.testing.assert_allclose(np.asarray(d_big),
                               np.asarray(_ref_forward(params, xb, yb, ab)),
                               rtol=1e-3, atol=1e-3)

    print("KERNEL_OK")
</pallas_src>

<mosaic_0001>
module attributes {stable_mosaic.version = 11 : i64} {
  func.func @_critic_fused_kernel(%arg0: i32, %arg1: memref<16x128xf32, #tpu.memory_space<vmem>>, %arg2: memref<16x128xf32, #tpu.memory_space<vmem>>, %arg3: memref<4x128xf32, #tpu.memory_space<vmem>>, %arg4: memref<64x16xbf16, #tpu.memory_space<vmem>>, %arg5: memref<64x1xf32, #tpu.memory_space<vmem>>, %arg6: memref<64x64xbf16, #tpu.memory_space<vmem>>, %arg7: memref<64x1xf32, #tpu.memory_space<vmem>>, %arg8: memref<32x64xbf16, #tpu.memory_space<vmem>>, %arg9: memref<32x1xf32, #tpu.memory_space<vmem>>, %arg10: memref<64x32xbf16, #tpu.memory_space<vmem>>, %arg11: memref<64x4xbf16, #tpu.memory_space<vmem>>, %arg12: memref<64x1xf32, #tpu.memory_space<vmem>>, %arg13: memref<64x64xbf16, #tpu.memory_space<vmem>>, %arg14: memref<64x1xf32, #tpu.memory_space<vmem>>, %arg15: memref<32x64xbf16, #tpu.memory_space<vmem>>, %arg16: memref<32x1xf32, #tpu.memory_space<vmem>>, %arg17: memref<64x32xbf16, #tpu.memory_space<vmem>>, %arg18: memref<64x1xf32, #tpu.memory_space<vmem>>, %arg19: memref<64x64xbf16, #tpu.memory_space<vmem>>, %arg20: memref<64x1xf32, #tpu.memory_space<vmem>>, %arg21: memref<1xf32, #tpu.memory_space<smem>>, %arg22: memref<1x128xf32, #tpu.memory_space<vmem>>) attributes {dimension_semantics = [#tpu.dimension_semantics<parallel>], iteration_bounds = array<i64: 1>, scalar_prefetch = 0 : i64, scratch_operands = 0 : i64, tpu.core_type = #tpu.core_type<tc>, window_params = [{transform_indices = @transform_0, window_bounds = array<i64: 16, 128>}, {transform_indices = @transform_1, window_bounds = array<i64: 16, 128>}, {transform_indices = @transform_2, window_bounds = array<i64: 4, 128>}, {pipeline_mode = #tpu.pipeline_mode<synchronous>, transform_indices = @transform_3, window_bounds = array<i64: 64, 16>}, {pipeline_mode = #tpu.pipeline_mode<synchronous>, transform_indices = @transform_4, window_bounds = array<i64: 64, 1>}, {pipeline_mode = #tpu.pipeline_mode<synchronous>, transform_indices = @transform_5, window_bounds = array<i64: 64, 64>}, {pipeline_mode = #tpu.pipeline_mode<synchronous>, transform_indices = @transform_6, window_bounds = array<i64: 64, 1>}, {pipeline_mode = #tpu.pipeline_mode<synchronous>, transform_indices = @transform_7, window_bounds = array<i64: 32, 64>}, {pipeline_mode = #tpu.pipeline_mode<synchronous>, transform_indices = @transform_8, window_bounds = array<i64: 32, 1>}, {pipeline_mode = #tpu.pipeline_mode<synchronous>, transform_indices = @transform_9, window_bounds = array<i64: 64, 32>}, {pipeline_mode = #tpu.pipeline_mode<synchronous>, transform_indices = @transform_10, window_bounds = array<i64: 64, 4>}, {pipeline_mode = #tpu.pipeline_mode<synchronous>, transform_indices = @transform_11, window_bounds = array<i64: 64, 1>}, {pipeline_mode = #tpu.pipeline_mode<synchronous>, transform_indices = @transform_12, window_bounds = array<i64: 64, 64>}, {pipeline_mode = #tpu.pipeline_mode<synchronous>, transform_indices = @transform_13, window_bounds = array<i64: 64, 1>}, {pipeline_mode = #tpu.pipeline_mode<synchronous>, transform_indices = @transform_14, window_bounds = array<i64: 32, 64>}, {pipeline_mode = #tpu.pipeline_mode<synchronous>, transform_indices = @transform_15, window_bounds = array<i64: 32, 1>}, {pipeline_mode = #tpu.pipeline_mode<synchronous>, transform_indices = @transform_16, window_bounds = array<i64: 64, 32>}, {pipeline_mode = #tpu.pipeline_mode<synchronous>, transform_indices = @transform_17, window_bounds = array<i64: 64, 1>}, {pipeline_mode = #tpu.pipeline_mode<synchronous>, transform_indices = @transform_18, window_bounds = array<i64: 64, 64>}, {pipeline_mode = #tpu.pipeline_mode<synchronous>, transform_indices = @transform_19, window_bounds = array<i64: 64, 1>}, {transform_indices = @transform_20, window_bounds = array<i64: 1>}, {transform_indices = @transform_21, window_bounds = array<i64: 1, 128>}]} {
    %c0 = arith.constant 0 : index
    %c0_0 = arith.constant 0 : index
    %0 = vector.load %arg1[%c0, %c0_0] : memref<16x128xf32, #tpu.memory_space<vmem>>, vector<16x128xf32>
    %c0_1 = arith.constant 0 : index
    %c0_2 = arith.constant 0 : index
    %1 = vector.load %arg2[%c0_1, %c0_2] : memref<16x128xf32, #tpu.memory_space<vmem>>, vector<16x128xf32>
    %2 = tpu.concatenate %0, %1 in 1 : vector<16x128xf32>, vector<16x128xf32> -> vector<16x256xf32>
    %c0_3 = arith.constant 0 : index
    %c0_4 = arith.constant 0 : index
    %3 = vector.load %arg4[%c0_3, %c0_4] : memref<64x16xbf16, #tpu.memory_space<vmem>>, vector<64x16xbf16>
    %4 = arith.truncf %2 : vector<16x256xf32> to vector<16x256xbf16>
    %cst = arith.constant dense<0.000000e+00> : vector<64x256xf32>
    %5 = tpu.matmul %3, %4, %cst {dimension_numbers = #tpu.dot_dimension_numbers<[1], [0], [0], [1], [0, 0, 1, 1], [], []>} : vector<64x16xbf16>, vector<16x256xbf16>, vector<64x256xf32> -> vector<64x256xf32>
    %c0_5 = arith.constant 0 : index
    %c0_6 = arith.constant 0 : index
    %6 = vector.load %arg5[%c0_5, %c0_6] : memref<64x1xf32, #tpu.memory_space<vmem>>, vector<64x1xf32>
    %7 = vector.broadcast %6 : vector<64x1xf32> to vector<64x256xf32>
    %8 = arith.addf %5, %7 : vector<64x256xf32>
    %cst_7 = arith.constant 0.000000e+00 : f32
    %9 = vector.broadcast %cst_7 : f32 to vector<64x256xf32>
    %10 = arith.maximumf %8, %9 : vector<64x256xf32>
    %c0_8 = arith.constant 0 : index
    %c0_9 = arith.constant 0 : index
    %11 = vector.load %arg6[%c0_8, %c0_9] : memref<64x64xbf16, #tpu.memory_space<vmem>>, vector<64x64xbf16>
    %12 = arith.truncf %10 : vector<64x256xf32> to vector<64x256xbf16>
    %cst_10 = arith.constant dense<0.000000e+00> : vector<64x256xf32>
    %13 = tpu.matmul %11, %12, %cst_10 {dimension_numbers = #tpu.dot_dimension_numbers<[1], [0], [0], [1], [0, 0, 1, 1], [], []>} : vector<64x64xbf16>, vector<64x256xbf16>, vector<64x256xf32> -> vector<64x256xf32>
    %c0_11 = arith.constant 0 : index
    %c0_12 = arith.constant 0 : index
    %14 = vector.load %arg7[%c0_11, %c0_12] : memref<64x1xf32, #tpu.memory_space<vmem>>, vector<64x1xf32>
    %15 = vector.broadcast %14 : vector<64x1xf32> to vector<64x256xf32>
    %16 = arith.addf %13, %15 : vector<64x256xf32>
    %cst_13 = arith.constant 0.000000e+00 : f32
    %17 = vector.broadcast %cst_13 : f32 to vector<64x256xf32>
    %18 = arith.maximumf %16, %17 : vector<64x256xf32>
    %c0_14 = arith.constant 0 : index
    %c0_15 = arith.constant 0 : index
    %19 = vector.load %arg8[%c0_14, %c0_15] : memref<32x64xbf16, #tpu.memory_space<vmem>>, vector<32x64xbf16>
    %20 = arith.truncf %18 : vector<64x256xf32> to vector<64x256xbf16>
    %cst_16 = arith.constant dense<0.000000e+00> : vector<32x256xf32>
    %21 = tpu.matmul %19, %20, %cst_16 {dimension_numbers = #tpu.dot_dimension_numbers<[1], [0], [0], [1], [0, 0, 1, 1], [], []>} : vector<32x64xbf16>, vector<64x256xbf16>, vector<32x256xf32> -> vector<32x256xf32>
    %c0_17 = arith.constant 0 : index
    %c0_18 = arith.constant 0 : index
    %22 = vector.load %arg9[%c0_17, %c0_18] : memref<32x1xf32, #tpu.memory_space<vmem>>, vector<32x1xf32>
    %23 = vector.broadcast %22 : vector<32x1xf32> to vector<32x256xf32>
    %24 = arith.addf %21, %23 : vector<32x256xf32>
    %25 = vector.extract_strided_slice %24 {offsets = [0, 0], sizes = [32, 128], strides = [1, 1]} : vector<32x256xf32> to vector<32x128xf32>
    %26 = vector.extract_strided_slice %24 {offsets = [0, 128], sizes = [32, 128], strides = [1, 1]} : vector<32x256xf32> to vector<32x128xf32>
    %c0_19 = arith.constant 0 : index
    %c0_20 = arith.constant 0 : index
    %27 = vector.load %arg10[%c0_19, %c0_20] : memref<64x32xbf16, #tpu.memory_space<vmem>>, vector<64x32xbf16>
    %28 = arith.truncf %25 : vector<32x128xf32> to vector<32x128xbf16>
    %cst_21 = arith.constant dense<0.000000e+00> : vector<64x128xf32>
    %29 = tpu.matmul %27, %28, %cst_21 {dimension_numbers = #tpu.dot_dimension_numbers<[1], [0], [0], [1], [0, 0, 1, 1], [], []>} : vector<64x32xbf16>, vector<32x128xbf16>, vector<64x128xf32> -> vector<64x128xf32>
    %c0_22 = arith.constant 0 : index
    %c0_23 = arith.constant 0 : index
    %30 = vector.load %arg3[%c0_22, %c0_23] : memref<4x128xf32, #tpu.memory_space<vmem>>, vector<4x128xf32>
    %c0_24 = arith.constant 0 : index
    %c0_25 = arith.constant 0 : index
    %31 = vector.load %arg11[%c0_24, %c0_25] : memref<64x4xbf16, #tpu.memory_space<vmem>>, vector<64x4xbf16>
    %32 = arith.truncf %30 : vector<4x128xf32> to vector<4x128xbf16>
    %cst_26 = arith.constant dense<0.000000e+00> : vector<64x128xf32>
    %33 = tpu.matmul %31, %32, %cst_26 {dimension_numbers = #tpu.dot_dimension_numbers<[1], [0], [0], [1], [0, 0, 1, 1], [], []>} : vector<64x4xbf16>, vector<4x128xbf16>, vector<64x128xf32> -> vector<64x128xf32>
    %34 = arith.addf %29, %33 : vector<64x128xf32>
    %c0_27 = arith.constant 0 : index
    %c0_28 = arith.constant 0 : index
    %35 = vector.load %arg12[%c0_27, %c0_28] : memref<64x1xf32, #tpu.memory_space<vmem>>, vector<64x1xf32>
    %36 = vector.broadcast %35 : vector<64x1xf32> to vector<64x128xf32>
    %37 = arith.addf %34, %36 : vector<64x128xf32>
    %cst_29 = arith.constant 0.000000e+00 : f32
    %38 = vector.broadcast %cst_29 : f32 to vector<64x128xf32>
    %39 = arith.maximumf %37, %38 : vector<64x128xf32>
    %c0_30 = arith.constant 0 : index
    %c0_31 = arith.constant 0 : index
    %40 = vector.load %arg13[%c0_30, %c0_31] : memref<64x64xbf16, #tpu.memory_space<vmem>>, vector<64x64xbf16>
    %41 = arith.truncf %39 : vector<64x128xf32> to vector<64x128xbf16>
    %cst_32 = arith.constant dense<0.000000e+00> : vector<64x128xf32>
    %42 = tpu.matmul %40, %41, %cst_32 {dimension_numbers = #tpu.dot_dimension_numbers<[1], [0], [0], [1], [0, 0, 1, 1], [], []>} : vector<64x64xbf16>, vector<64x128xbf16>, vector<64x128xf32> -> vector<64x128xf32>
    %c0_33 = arith.constant 0 : index
    %c0_34 = arith.constant 0 : index
    %43 = vector.load %arg14[%c0_33, %c0_34] : memref<64x1xf32, #tpu.memory_space<vmem>>, vector<64x1xf32>
    %44 = vector.broadcast %43 : vector<64x1xf32> to vector<64x128xf32>
    %45 = arith.addf %42, %44 : vector<64x128xf32>
    %cst_35 = arith.constant 0.000000e+00 : f32
    %46 = vector.broadcast %cst_35 : f32 to vector<64x128xf32>
    %47 = arith.maximumf %45, %46 : vector<64x128xf32>
    %c0_36 = arith.constant 0 : index
    %c0_37 = arith.constant 0 : index
    %48 = vector.load %arg15[%c0_36, %c0_37] : memref<32x64xbf16, #tpu.memory_space<vmem>>, vector<32x64xbf16>
    %49 = arith.truncf %47 : vector<64x128xf32> to vector<64x128xbf16>
    %cst_38 = arith.constant dense<0.000000e+00> : vector<32x128xf32>
    %50 = tpu.matmul %48, %49, %cst_38 {dimension_numbers = #tpu.dot_dimension_numbers<[1], [0], [0], [1], [0, 0, 1, 1], [], []>} : vector<32x64xbf16>, vector<64x128xbf16>, vector<32x128xf32> -> vector<32x128xf32>
    %51 = arith.addf %25, %50 : vector<32x128xf32>
    %c0_39 = arith.constant 0 : index
    %c0_40 = arith.constant 0 : index
    %52 = vector.load %arg16[%c0_39, %c0_40] : memref<32x1xf32, #tpu.memory_space<vmem>>, vector<32x1xf32>
    %53 = vector.broadcast %52 : vector<32x1xf32> to vector<32x128xf32>
    %54 = arith.addf %51, %53 : vector<32x128xf32>
    %55 = tpu.concatenate %54, %26 in 1 : vector<32x128xf32>, vector<32x128xf32> -> vector<32x256xf32>
    %c0_41 = arith.constant 0 : index
    %c0_42 = arith.constant 0 : index
    %56 = vector.load %arg17[%c0_41, %c0_42] : memref<64x32xbf16, #tpu.memory_space<vmem>>, vector<64x32xbf16>
    %57 = arith.truncf %55 : vector<32x256xf32> to vector<32x256xbf16>
    %cst_43 = arith.constant dense<0.000000e+00> : vector<64x256xf32>
    %58 = tpu.matmul %56, %57, %cst_43 {dimension_numbers = #tpu.dot_dimension_numbers<[1], [0], [0], [1], [0, 0, 1, 1], [], []>} : vector<64x32xbf16>, vector<32x256xbf16>, vector<64x256xf32> -> vector<64x256xf32>
    %c0_44 = arith.constant 0 : index
    %c0_45 = arith.constant 0 : index
    %59 = vector.load %arg18[%c0_44, %c0_45] : memref<64x1xf32, #tpu.memory_space<vmem>>, vector<64x1xf32>
    %60 = vector.broadcast %59 : vector<64x1xf32> to vector<64x256xf32>
    %61 = arith.addf %58, %60 : vector<64x256xf32>
    %cst_46 = arith.constant 0.000000e+00 : f32
    %62 = vector.broadcast %cst_46 : f32 to vector<64x256xf32>
    %63 = arith.maximumf %61, %62 : vector<64x256xf32>
    %c0_47 = arith.constant 0 : index
    %c0_48 = arith.constant 0 : index
    %64 = vector.load %arg19[%c0_47, %c0_48] : memref<64x64xbf16, #tpu.memory_space<vmem>>, vector<64x64xbf16>
    %65 = arith.truncf %63 : vector<64x256xf32> to vector<64x256xbf16>
    %cst_49 = arith.constant dense<0.000000e+00> : vector<64x256xf32>
    %66 = tpu.matmul %64, %65, %cst_49 {dimension_numbers = #tpu.dot_dimension_numbers<[1], [0], [0], [1], [0, 0, 1, 1], [], []>} : vector<64x64xbf16>, vector<64x256xbf16>, vector<64x256xf32> -> vector<64x256xf32>
    %c0_50 = arith.constant 0 : index
    %c0_51 = arith.constant 0 : index
    %67 = vector.load %arg20[%c0_50, %c0_51] : memref<64x1xf32, #tpu.memory_space<vmem>>, vector<64x1xf32>
    %68 = vector.broadcast %67 : vector<64x1xf32> to vector<64x256xf32>
    %69 = arith.addf %66, %68 : vector<64x256xf32>
    %70 = vector.extract_strided_slice %69 {offsets = [0, 0], sizes = [64, 128], strides = [1, 1]} : vector<64x256xf32> to vector<64x128xf32>
    %71 = vector.extract_strided_slice %69 {offsets = [0, 128], sizes = [64, 128], strides = [1, 1]} : vector<64x256xf32> to vector<64x128xf32>
    %72 = tpu.iota {dimensions = array<i32: 0>} : vector<16x16x1xi32>
    %73 = tpu.iota {dimensions = array<i32: 1>} : vector<16x16x1xi32>
    %74 = arith.cmpi sgt, %72, %73 : vector<16x16x1xi32>
    %75 = vector.extract_strided_slice %70 {offsets = [0, 0], sizes = [8, 128], strides = [1, 1]} : vector<64x128xf32> to vector<8x128xf32>
    %76 = vector.extract_strided_slice %71 {offsets = [0, 0], sizes = [8, 128], strides = [1, 1]} : vector<64x128xf32> to vector<8x128xf32>
    %77 = arith.maximumf %75, %76 : vector<8x128xf32>
    %78 = tpu.concatenate %75, %77 in 0 : vector<8x128xf32>, vector<8x128xf32> -> vector<16x128xf32>
    %79 = vector.shape_cast %78 : vector<16x128xf32> to vector<16x1x128xf32>
    %80 = vector.shape_cast %78 : vector<16x128xf32> to vector<1x16x128xf32>
    %81 = vector.broadcast %79 : vector<16x1x128xf32> to vector<16x16x128xf32>
    %82 = vector.broadcast %80 : vector<1x16x128xf32> to vector<16x16x128xf32>
    %83 = arith.cmpf ogt, %81, %82 : vector<16x16x128xf32>
    %84 = vector.broadcast %79 : vector<16x1x128xf32> to vector<16x16x128xf32>
    %85 = vector.broadcast %80 : vector<1x16x128xf32> to vector<16x16x128xf32>
    %86 = arith.cmpf oeq, %84, %85 : vector<16x16x128xf32>
    %87 = vector.broadcast %74 : vector<16x16x1xi1> to vector<16x16x128xi1>
    %88 = arith.andi %86, %87 : vector<16x16x128xi1>
    %89 = arith.ori %83, %88 : vector<16x16x128xi1>
    %cst_52 = arith.constant 0x7F800000 : f32
    %90 = vector.shape_cast %79 : vector<16x1x128xf32> to vector<16x1x128xf32>
    %91 = vector.broadcast %90 : vector<16x1x128xf32> to vector<16x16x128xf32>
    %92 = vector.broadcast %cst_52 : f32 to vector<16x16x128xf32>
    %93 = arith.select %89, %91, %92 : vector<16x16x128xi1>, vector<16x16x128xf32>
    %cst_53 = arith.constant dense<0x7F800000> : vector<16x128xf32>
    %94 = vector.multi_reduction <minimumf>, %93, %cst_53 [0] : vector<16x16x128xf32> to vector<16x128xf32>
    %cst_54 = arith.constant 0x7F800000 : f32
    %95 = vector.broadcast %cst_54 : f32 to vector<16x128xf32>
    %96 = arith.cmpf olt, %94, %95 : vector<16x128xf32>
    %97 = arith.subf %94, %78 : vector<16x128xf32>
    %cst_55 = arith.constant 0.000000e+00 : f32
    %98 = vector.broadcast %cst_55 : f32 to vector<16x128xf32>
    %99 = arith.select %96, %97, %98 : vector<16x128xi1>, vector<16x128xf32>
    %100 = vector.shape_cast %75 : vector<8x128xf32> to vector<8x1x128xf32>
    %101 = vector.broadcast %100 : vector<8x1x128xf32> to vector<8x16x128xf32>
    %102 = vector.broadcast %80 : vector<1x16x128xf32> to vector<8x16x128xf32>
    %103 = arith.cmpf ole, %101, %102 : vector<8x16x128xf32>
    %104 = vector.shape_cast %77 : vector<8x128xf32> to vector<8x1x128xf32>
    %105 = vector.broadcast %80 : vector<1x16x128xf32> to vector<8x16x128xf32>
    %106 = vector.broadcast %104 : vector<8x1x128xf32> to vector<8x16x128xf32>
    %107 = arith.cmpf olt, %105, %106 : vector<8x16x128xf32>
    %108 = arith.andi %103, %107 : vector<8x16x128xi1>
    %cst_56 = arith.constant 1.000000e+00 : f32
    %cst_57 = arith.constant 0.000000e+00 : f32
    %109 = vector.broadcast %cst_56 : f32 to vector<8x16x128xf32>
    %110 = vector.broadcast %cst_57 : f32 to vector<8x16x128xf32>
    %111 = arith.select %108, %109, %110 : vector<8x16x128xi1>, vector<8x16x128xf32>
    %cst_58 = arith.constant dense<0xFF800000> : vector<16x128xf32>
    %112 = vector.multi_reduction <maximumf>, %111, %cst_58 [0] : vector<8x16x128xf32> to vector<16x128xf32>
    %cst_59 = arith.constant 0.000000e+00 : f32
    %113 = vector.broadcast %cst_59 : f32 to vector<16x128xf32>
    %114 = arith.cmpf ogt, %112, %113 : vector<16x128xf32>
    %cst_60 = arith.constant 0.000000e+00 : f32
    %115 = vector.broadcast %cst_60 : f32 to vector<16x128xf32>
    %116 = arith.select %114, %99, %115 : vector<16x128xi1>, vector<16x128xf32>
    %cst_61 = arith.constant dense<0.000000e+00> : vector<128xf32>
    %117 = vector.multi_reduction <add>, %116, %cst_61 [0] : vector<16x128xf32> to vector<128xf32>
    %118 = vector.shape_cast %117 : vector<128xf32> to vector<1x128xf32>
    %119 = vector.extract_strided_slice %70 {offsets = [8, 0], sizes = [8, 128], strides = [1, 1]} : vector<64x128xf32> to vector<8x128xf32>
    %120 = vector.extract_strided_slice %71 {offsets = [8, 0], sizes = [8, 128], strides = [1, 1]} : vector<64x128xf32> to vector<8x128xf32>
    %121 = arith.maximumf %119, %120 : vector<8x128xf32>
    %122 = tpu.concatenate %119, %121 in 0 : vector<8x128xf32>, vector<8x128xf32> -> vector<16x128xf32>
    %123 = vector.shape_cast %122 : vector<16x128xf32> to vector<16x1x128xf32>
    %124 = vector.shape_cast %122 : vector<16x128xf32> to vector<1x16x128xf32>
    %125 = vector.broadcast %123 : vector<16x1x128xf32> to vector<16x16x128xf32>
    %126 = vector.broadcast %124 : vector<1x16x128xf32> to vector<16x16x128xf32>
    %127 = arith.cmpf ogt, %125, %126 : vector<16x16x128xf32>
    %128 = vector.broadcast %123 : vector<16x1x128xf32> to vector<16x16x128xf32>
    %129 = vector.broadcast %124 : vector<1x16x128xf32> to vector<16x16x128xf32>
    %130 = arith.cmpf oeq, %128, %129 : vector<16x16x128xf32>
    %131 = vector.broadcast %74 : vector<16x16x1xi1> to vector<16x16x128xi1>
    %132 = arith.andi %130, %131 : vector<16x16x128xi1>
    %133 = arith.ori %127, %132 : vector<16x16x128xi1>
    %cst_62 = arith.constant 0x7F800000 : f32
    %134 = vector.shape_cast %123 : vector<16x1x128xf32> to vector<16x1x128xf32>
    %135 = vector.broadcast %134 : vector<16x1x128xf32> to vector<16x16x128xf32>
    %136 = vector.broadcast %cst_62 : f32 to vector<16x16x128xf32>
    %137 = arith.select %133, %135, %136 : vector<16x16x128xi1>, vector<16x16x128xf32>
    %cst_63 = arith.constant dense<0x7F800000> : vector<16x128xf32>
    %138 = vector.multi_reduction <minimumf>, %137, %cst_63 [0] : vector<16x16x128xf32> to vector<16x128xf32>
    %cst_64 = arith.constant 0x7F800000 : f32
    %139 = vector.broadcast %cst_64 : f32 to vector<16x128xf32>
    %140 = arith.cmpf olt, %138, %139 : vector<16x128xf32>
    %141 = arith.subf %138, %122 : vector<16x128xf32>
    %cst_65 = arith.constant 0.000000e+00 : f32
    %142 = vector.broadcast %cst_65 : f32 to vector<16x128xf32>
    %143 = arith.select %140, %141, %142 : vector<16x128xi1>, vector<16x128xf32>
    %144 = vector.shape_cast %119 : vector<8x128xf32> to vector<8x1x128xf32>
    %145 = vector.broadcast %144 : vector<8x1x128xf32> to vector<8x16x128xf32>
    %146 = vector.broadcast %124 : vector<1x16x128xf32> to vector<8x16x128xf32>
    %147 = arith.cmpf ole, %145, %146 : vector<8x16x128xf32>
    %148 = vector.shape_cast %121 : vector<8x128xf32> to vector<8x1x128xf32>
    %149 = vector.broadcast %124 : vector<1x16x128xf32> to vector<8x16x128xf32>
    %150 = vector.broadcast %148 : vector<8x1x128xf32> to vector<8x16x128xf32>
    %151 = arith.cmpf olt, %149, %150 : vector<8x16x128xf32>
    %152 = arith.andi %147, %151 : vector<8x16x128xi1>
    %cst_66 = arith.constant 1.000000e+00 : f32
    %cst_67 = arith.constant 0.000000e+00 : f32
    %153 = vector.broadcast %cst_66 : f32 to vector<8x16x128xf32>
    %154 = vector.broadcast %cst_67 : f32 to vector<8x16x128xf32>
    %155 = arith.select %152, %153, %154 : vector<8x16x128xi1>, vector<8x16x128xf32>
    %cst_68 = arith.constant dense<0xFF800000> : vector<16x128xf32>
    %156 = vector.multi_reduction <maximumf>, %155, %cst_68 [0] : vector<8x16x128xf32> to vector<16x128xf32>
    %cst_69 = arith.constant 0.000000e+00 : f32
    %157 = vector.broadcast %cst_69 : f32 to vector<16x128xf32>
    %158 = arith.cmpf ogt, %156, %157 : vector<16x128xf32>
    %cst_70 = arith.constant 0.000000e+00 : f32
    %159 = vector.broadcast %cst_70 : f32 to vector<16x128xf32>
    %160 = arith.select %158, %143, %159 : vector<16x128xi1>, vector<16x128xf32>
    %cst_71 = arith.constant dense<0.000000e+00> : vector<128xf32>
    %161 = vector.multi_reduction <add>, %160, %cst_71 [0] : vector<16x128xf32> to vector<128xf32>
    %162 = vector.shape_cast %161 : vector<128xf32> to vector<1x128xf32>
    %163 = arith.maximumf %118, %162 : vector<1x128xf32>
    %164 = arith.addf %118, %162 : vector<1x128xf32>
    %165 = vector.extract_strided_slice %70 {offsets = [16, 0], sizes = [8, 128], strides = [1, 1]} : vector<64x128xf32> to vector<8x128xf32>
    %166 = vector.extract_strided_slice %71 {offsets = [16, 0], sizes = [8, 128], strides = [1, 1]} : vector<64x128xf32> to vector<8x128xf32>
    %167 = arith.maximumf %165, %166 : vector<8x128xf32>
    %168 = tpu.concatenate %165, %167 in 0 : vector<8x128xf32>, vector<8x128xf32> -> vector<16x128xf32>
    %169 = vector.shape_cast %168 : vector<16x128xf32> to vector<16x1x128xf32>
    %170 = vector.shape_cast %168 : vector<16x128xf32> to vector<1x16x128xf32>
    %171 = vector.broadcast %169 : vector<16x1x128xf32> to vector<16x16x128xf32>
    %172 = vector.broadcast %170 : vector<1x16x128xf32> to vector<16x16x128xf32>
    %173 = arith.cmpf ogt, %171, %172 : vector<16x16x128xf32>
    %174 = vector.broadcast %169 : vector<16x1x128xf32> to vector<16x16x128xf32>
    %175 = vector.broadcast %170 : vector<1x16x128xf32> to vector<16x16x128xf32>
    %176 = arith.cmpf oeq, %174, %175 : vector<16x16x128xf32>
    %177 = vector.broadcast %74 : vector<16x16x1xi1> to vector<16x16x128xi1>
    %178 = arith.andi %176, %177 : vector<16x16x128xi1>
    %179 = arith.ori %173, %178 : vector<16x16x128xi1>
    %cst_72 = arith.constant 0x7F800000 : f32
    %180 = vector.shape_cast %169 : vector<16x1x128xf32> to vector<16x1x128xf32>
    %181 = vector.broadcast %180 : vector<16x1x128xf32> to vector<16x16x128xf32>
    %182 = vector.broadcast %cst_72 : f32 to vector<16x16x128xf32>
    %183 = arith.select %179, %181, %182 : vector<16x16x128xi1>, vector<16x16x128xf32>
    %cst_73 = arith.constant dense<0x7F800000> : vector<16x128xf32>
    %184 = vector.multi_reduction <minimumf>, %183, %cst_73 [0] : vector<16x16x128xf32> to vector<16x128xf32>
    %cst_74 = arith.constant 0x7F800000 : f32
    %185 = vector.broadcast %cst_74 : f32 to vector<16x128xf32>
    %186 = arith.cmpf olt, %184, %185 : vector<16x128xf32>
    %187 = arith.subf %184, %168 : vector<16x128xf32>
    %cst_75 = arith.constant 0.000000e+00 : f32
    %188 = vector.broadcast %cst_75 : f32 to vector<16x128xf32>
    %189 = arith.select %186, %187, %188 : vector<16x128xi1>, vector<16x128xf32>
    %190 = vector.shape_cast %165 : vector<8x128xf32> to vector<8x1x128xf32>
    %191 = vector.broadcast %190 : vector<8x1x128xf32> to vector<8x16x128xf32>
    %192 = vector.broadcast %170 : vector<1x16x128xf32> to vector<8x16x128xf32>
    %193 = arith.cmpf ole, %191, %192 : vector<8x16x128xf32>
    %194 = vector.shape_cast %167 : vector<8x128xf32> to vector<8x1x128xf32>
    %195 = vector.broadcast %170 : vector<1x16x128xf32> to vector<8x16x128xf32>
    %196 = vector.broadcast %194 : vector<8x1x128xf32> to vector<8x16x128xf32>
    %197 = arith.cmpf olt, %195, %196 : vector<8x16x128xf32>
    %198 = arith.andi %193, %197 : vector<8x16x128xi1>
    %cst_76 = arith.constant 1.000000e+00 : f32
    %cst_77 = arith.constant 0.000000e+00 : f32
    %199 = vector.broadcast %cst_76 : f32 to vector<8x16x128xf32>
    %200 = vector.broadcast %cst_77 : f32 to vector<8x16x128xf32>
    %201 = arith.select %198, %199, %200 : vector<8x16x128xi1>, vector<8x16x128xf32>
    %cst_78 = arith.constant dense<0xFF800000> : vector<16x128xf32>
    %202 = vector.multi_reduction <maximumf>, %201, %cst_78 [0] : vector<8x16x128xf32> to vector<16x128xf32>
    %cst_79 = arith.constant 0.000000e+00 : f32
    %203 = vector.broadcast %cst_79 : f32 to vector<16x128xf32>
    %204 = arith.cmpf ogt, %202, %203 : vector<16x128xf32>
    %cst_80 = arith.constant 0.000000e+00 : f32
    %205 = vector.broadcast %cst_80 : f32 to vector<16x128xf32>
    %206 = arith.select %204, %189, %205 : vector<16x128xi1>, vector<16x128xf32>
    %cst_81 = arith.constant dense<0.000000e+00> : vector<128xf32>
    %207 = vector.multi_reduction <add>, %206, %cst_81 [0] : vector<16x128xf32> to vector<128xf32>
    %208 = vector.shape_cast %207 : vector<128xf32> to vector<1x128xf32>
    %209 = arith.maximumf %163, %208 : vector<1x128xf32>
    %210 = arith.addf %164, %208 : vector<1x128xf32>
    %211 = vector.extract_strided_slice %70 {offsets = [24, 0], sizes = [8, 128], strides = [1, 1]} : vector<64x128xf32> to vector<8x128xf32>
    %212 = vector.extract_strided_slice %71 {offsets = [24, 0], sizes = [8, 128], strides = [1, 1]} : vector<64x128xf32> to vector<8x128xf32>
    %213 = arith.maximumf %211, %212 : vector<8x128xf32>
    %214 = tpu.concatenate %211, %213 in 0 : vector<8x128xf32>, vector<8x128xf32> -> vector<16x128xf32>
    %215 = vector.shape_cast %214 : vector<16x128xf32> to vector<16x1x128xf32>
    %216 = vector.shape_cast %214 : vector<16x128xf32> to vector<1x16x128xf32>
    %217 = vector.broadcast %215 : vector<16x1x128xf32> to vector<16x16x128xf32>
    %218 = vector.broadcast %216 : vector<1x16x128xf32> to vector<16x16x128xf32>
    %219 = arith.cmpf ogt, %217, %218 : vector<16x16x128xf32>
    %220 = vector.broadcast %215 : vector<16x1x128xf32> to vector<16x16x128xf32>
    %221 = vector.broadcast %216 : vector<1x16x128xf32> to vector<16x16x128xf32>
    %222 = arith.cmpf oeq, %220, %221 : vector<16x16x128xf32>
    %223 = vector.broadcast %74 : vector<16x16x1xi1> to vector<16x16x128xi1>
    %224 = arith.andi %222, %223 : vector<16x16x128xi1>
    %225 = arith.ori %219, %224 : vector<16x16x128xi1>
    %cst_82 = arith.constant 0x7F800000 : f32
    %226 = vector.shape_cast %215 : vector<16x1x128xf32> to vector<16x1x128xf32>
    %227 = vector.broadcast %226 : vector<16x1x128xf32> to vector<16x16x128xf32>
    %228 = vector.broadcast %cst_82 : f32 to vector<16x16x128xf32>
    %229 = arith.select %225, %227, %228 : vector<16x16x128xi1>, vector<16x16x128xf32>
    %cst_83 = arith.constant dense<0x7F800000> : vector<16x128xf32>
    %230 = vector.multi_reduction <minimumf>, %229, %cst_83 [0] : vector<16x16x128xf32> to vector<16x128xf32>
    %cst_84 = arith.constant 0x7F800000 : f32
    %231 = vector.broadcast %cst_84 : f32 to vector<16x128xf32>
    %232 = arith.cmpf olt, %230, %231 : vector<16x128xf32>
    %233 = arith.subf %230, %214 : vector<16x128xf32>
    %cst_85 = arith.constant 0.000000e+00 : f32
    %234 = vector.broadcast %cst_85 : f32 to vector<16x128xf32>
    %235 = arith.select %232, %233, %234 : vector<16x128xi1>, vector<16x128xf32>
    %236 = vector.shape_cast %211 : vector<8x128xf32> to vector<8x1x128xf32>
    %237 = vector.broadcast %236 : vector<8x1x128xf32> to vector<8x16x128xf32>
    %238 = vector.broadcast %216 : vector<1x16x128xf32> to vector<8x16x128xf32>
    %239 = arith.cmpf ole, %237, %238 : vector<8x16x128xf32>
    %240 = vector.shape_cast %213 : vector<8x128xf32> to vector<8x1x128xf32>
    %241 = vector.broadcast %216 : vector<1x16x128xf32> to vector<8x16x128xf32>
    %242 = vector.broadcast %240 : vector<8x1x128xf32> to vector<8x16x128xf32>
    %243 = arith.cmpf olt, %241, %242 : vector<8x16x128xf32>
    %244 = arith.andi %239, %243 : vector<8x16x128xi1>
    %cst_86 = arith.constant 1.000000e+00 : f32
    %cst_87 = arith.constant 0.000000e+00 : f32
    %245 = vector.broadcast %cst_86 : f32 to vector<8x16x128xf32>
    %246 = vector.broadcast %cst_87 : f32 to vector<8x16x128xf32>
    %247 = arith.select %244, %245, %246 : vector<8x16x128xi1>, vector<8x16x128xf32>
    %cst_88 = arith.constant dense<0xFF800000> : vector<16x128xf32>
    %248 = vector.multi_reduction <maximumf>, %247, %cst_88 [0] : vector<8x16x128xf32> to vector<16x128xf32>
    %cst_89 = arith.constant 0.000000e+00 : f32
    %249 = vector.broadcast %cst_89 : f32 to vector<16x128xf32>
    %250 = arith.cmpf ogt, %248, %249 : vector<16x128xf32>
    %cst_90 = arith.constant 0.000000e+00 : f32
    %251 = vector.broadcast %cst_90 : f32 to vector<16x128xf32>
    %252 = arith.select %250, %235, %251 : vector<16x128xi1>, vector<16x128xf32>
    %cst_91 = arith.constant dense<0.000000e+00> : vector<128xf32>
    %253 = vector.multi_reduction <add>, %252, %cst_91 [0] : vector<16x128xf32> to vector<128xf32>
    %254 = vector.shape_cast %253 : vector<128xf32> to vector<1x128xf32>
    %255 = arith.maximumf %209, %254 : vector<1x128xf32>
    %256 = arith.addf %210, %254 : vector<1x128xf32>
    %257 = vector.extract_strided_slice %70 {offsets = [32, 0], sizes = [8, 128], strides = [1, 1]} : vector<64x128xf32> to vector<8x128xf32>
    %258 = vector.extract_strided_slice %71 {offsets = [32, 0], sizes = [8, 128], strides = [1, 1]} : vector<64x128xf32> to vector<8x128xf32>
    %259 = arith.maximumf %257, %258 : vector<8x128xf32>
    %260 = tpu.concatenate %257, %259 in 0 : vector<8x128xf32>, vector<8x128xf32> -> vector<16x128xf32>
    %261 = vector.shape_cast %260 : vector<16x128xf32> to vector<16x1x128xf32>
    %262 = vector.shape_cast %260 : vector<16x128xf32> to vector<1x16x128xf32>
    %263 = vector.broadcast %261 : vector<16x1x128xf32> to vector<16x16x128xf32>
    %264 = vector.broadcast %262 : vector<1x16x128xf32> to vector<16x16x128xf32>
    %265 = arith.cmpf ogt, %263, %264 : vector<16x16x128xf32>
    %266 = vector.broadcast %261 : vector<16x1x128xf32> to vector<16x16x128xf32>
    %267 = vector.broadcast %262 : vector<1x16x128xf32> to vector<16x16x128xf32>
    %268 = arith.cmpf oeq, %266, %267 : vector<16x16x128xf32>
    %269 = vector.broadcast %74 : vector<16x16x1xi1> to vector<16x16x128xi1>
    %270 = arith.andi %268, %269 : vector<16x16x128xi1>
    %271 = arith.ori %265, %270 : vector<16x16x128xi1>
    %cst_92 = arith.constant 0x7F800000 : f32
    %272 = vector.shape_cast %261 : vector<16x1x128xf32> to vector<16x1x128xf32>
    %273 = vector.broadcast %272 : vector<16x1x128xf32> to vector<16x16x128xf32>
    %274 = vector.broadcast %cst_92 : f32 to vector<16x16x128xf32>
    %275 = arith.select %271, %273, %274 : vector<16x16x128xi1>, vector<16x16x128xf32>
    %cst_93 = arith.constant dense<0x7F800000> : vector<16x128xf32>
    %276 = vector.multi_reduction <minimumf>, %275, %cst_93 [0] : vector<16x16x128xf32> to vector<16x128xf32>
    %cst_94 = arith.constant 0x7F800000 : f32
    %277 = vector.broadcast %cst_94 : f32 to vector<16x128xf32>
    %278 = arith.cmpf olt, %276, %277 : vector<16x128xf32>
    %279 = arith.subf %276, %260 : vector<16x128xf32>
    %cst_95 = arith.constant 0.000000e+00 : f32
    %280 = vector.broadcast %cst_95 : f32 to vector<16x128xf32>
    %281 = arith.select %278, %279, %280 : vector<16x128xi1>, vector<16x128xf32>
    %282 = vector.shape_cast %257 : vector<8x128xf32> to vector<8x1x128xf32>
    %283 = vector.broadcast %282 : vector<8x1x128xf32> to vector<8x16x128xf32>
    %284 = vector.broadcast %262 : vector<1x16x128xf32> to vector<8x16x128xf32>
    %285 = arith.cmpf ole, %283, %284 : vector<8x16x128xf32>
    %286 = vector.shape_cast %259 : vector<8x128xf32> to vector<8x1x128xf32>
    %287 = vector.broadcast %262 : vector<1x16x128xf32> to vector<8x16x128xf32>
    %288 = vector.broadcast %286 : vector<8x1x128xf32> to vector<8x16x128xf32>
    %289 = arith.cmpf olt, %287, %288 : vector<8x16x128xf32>
    %290 = arith.andi %285, %289 : vector<8x16x128xi1>
    %cst_96 = arith.constant 1.000000e+00 : f32
    %cst_97 = arith.constant 0.000000e+00 : f32
    %291 = vector.broadcast %cst_96 : f32 to vector<8x16x128xf32>
    %292 = vector.broadcast %cst_97 : f32 to vector<8x16x128xf32>
    %293 = arith.select %290, %291, %292 : vector<8x16x128xi1>, vector<8x16x128xf32>
    %cst_98 = arith.constant dense<0xFF800000> : vector<16x128xf32>
    %294 = vector.multi_reduction <maximumf>, %293, %cst_98 [0] : vector<8x16x128xf32> to vector<16x128xf32>
    %cst_99 = arith.constant 0.000000e+00 : f32
    %295 = vector.broadcast %cst_99 : f32 to vector<16x128xf32>
    %296 = arith.cmpf ogt, %294, %295 : vector<16x128xf32>
    %cst_100 = arith.constant 0.000000e+00 : f32
    %297 = vector.broadcast %cst_100 : f32 to vector<16x128xf32>
    %298 = arith.select %296, %281, %297 : vector<16x128xi1>, vector<16x128xf32>
    %cst_101 = arith.constant dense<0.000000e+00> : vector<128xf32>
    %299 = vector.multi_reduction <add>, %298, %cst_101 [0] : vector<16x128xf32> to vector<128xf32>
    %300 = vector.shape_cast %299 : vector<128xf32> to vector<1x128xf32>
    %301 = arith.maximumf %255, %300 : vector<1x128xf32>
    %302 = arith.addf %256, %300 : vector<1x128xf32>
    %303 = vector.extract_strided_slice %70 {offsets = [40, 0], sizes = [8, 128], strides = [1, 1]} : vector<64x128xf32> to vector<8x128xf32>
    %304 = vector.extract_strided_slice %71 {offsets = [40, 0], sizes = [8, 128], strides = [1, 1]} : vector<64x128xf32> to vector<8x128xf32>
    %305 = arith.maximumf %303, %304 : vector<8x128xf32>
    %306 = tpu.concatenate %303, %305 in 0 : vector<8x128xf32>, vector<8x128xf32> -> vector<16x128xf32>
    %307 = vector.shape_cast %306 : vector<16x128xf32> to vector<16x1x128xf32>
    %308 = vector.shape_cast %306 : vector<16x128xf32> to vector<1x16x128xf32>
    %309 = vector.broadcast %307 : vector<16x1x128xf32> to vector<16x16x128xf32>
    %310 = vector.broadcast %308 : vector<1x16x128xf32> to vector<16x16x128xf32>
    %311 = arith.cmpf ogt, %309, %310 : vector<16x16x128xf32>
    %312 = vector.broadcast %307 : vector<16x1x128xf32> to vector<16x16x128xf32>
    %313 = vector.broadcast %308 : vector<1x16x128xf32> to vector<16x16x128xf32>
    %314 = arith.cmpf oeq, %312, %313 : vector<16x16x128xf32>
    %315 = vector.broadcast %74 : vector<16x16x1xi1> to vector<16x16x128xi1>
    %316 = arith.andi %314, %315 : vector<16x16x128xi1>
    %317 = arith.ori %311, %316 : vector<16x16x128xi1>
    %cst_102 = arith.constant 0x7F800000 : f32
    %318 = vector.shape_cast %307 : vector<16x1x128xf32> to vector<16x1x128xf32>
    %319 = vector.broadcast %318 : vector<16x1x128xf32> to vector<16x16x128xf32>
    %320 = vector.broadcast %cst_102 : f32 to vector<16x16x128xf32>
    %321 = arith.select %317, %319, %320 : vector<16x16x128xi1>, vector<16x16x128xf32>
    %cst_103 = arith.constant dense<0x7F800000> : vector<16x128xf32>
    %322 = vector.multi_reduction <minimumf>, %321, %cst_103 [0] : vector<16x16x128xf32> to vector<16x128xf32>
    %cst_104 = arith.constant 0x7F800000 : f32
    %323 = vector.broadcast %cst_104 : f32 to vector<16x128xf32>
    %324 = arith.cmpf olt, %322, %323 : vector<16x128xf32>
    %325 = arith.subf %322, %306 : vector<16x128xf32>
    %cst_105 = arith.constant 0.000000e+00 : f32
    %326 = vector.broadcast %cst_105 : f32 to vector<16x128xf32>
    %327 = arith.select %324, %325, %326 : vector<16x128xi1>, vector<16x128xf32>
    %328 = vector.shape_cast %303 : vector<8x128xf32> to vector<8x1x128xf32>
    %329 = vector.broadcast %328 : vector<8x1x128xf32> to vector<8x16x128xf32>
    %330 = vector.broadcast %308 : vector<1x16x128xf32> to vector<8x16x128xf32>
    %331 = arith.cmpf ole, %329, %330 : vector<8x16x128xf32>
    %332 = vector.shape_cast %305 : vector<8x128xf32> to vector<8x1x128xf32>
    %333 = vector.broadcast %308 : vector<1x16x128xf32> to vector<8x16x128xf32>
    %334 = vector.broadcast %332 : vector<8x1x128xf32> to vector<8x16x128xf32>
    %335 = arith.cmpf olt, %333, %334 : vector<8x16x128xf32>
    %336 = arith.andi %331, %335 : vector<8x16x128xi1>
    %cst_106 = arith.constant 1.000000e+00 : f32
    %cst_107 = arith.constant 0.000000e+00 : f32
    %337 = vector.broadcast %cst_106 : f32 to vector<8x16x128xf32>
    %338 = vector.broadcast %cst_107 : f32 to vector<8x16x128xf32>
    %339 = arith.select %336, %337, %338 : vector<8x16x128xi1>, vector<8x16x128xf32>
    %cst_108 = arith.constant dense<0xFF800000> : vector<16x128xf32>
    %340 = vector.multi_reduction <maximumf>, %339, %cst_108 [0] : vector<8x16x128xf32> to vector<16x128xf32>
    %cst_109 = arith.constant 0.000000e+00 : f32
    %341 = vector.broadcast %cst_109 : f32 to vector<16x128xf32>
    %342 = arith.cmpf ogt, %340, %341 : vector<16x128xf32>
    %cst_110 = arith.constant 0.000000e+00 : f32
    %343 = vector.broadcast %cst_110 : f32 to vector<16x128xf32>
    %344 = arith.select %342, %327, %343 : vector<16x128xi1>, vector<16x128xf32>
    %cst_111 = arith.constant dense<0.000000e+00> : vector<128xf32>
    %345 = vector.multi_reduction <add>, %344, %cst_111 [0] : vector<16x128xf32> to vector<128xf32>
    %346 = vector.shape_cast %345 : vector<128xf32> to vector<1x128xf32>
    %347 = arith.maximumf %301, %346 : vector<1x128xf32>
    %348 = arith.addf %302, %346 : vector<1x128xf32>
    %349 = vector.extract_strided_slice %70 {offsets = [48, 0], sizes = [8, 128], strides = [1, 1]} : vector<64x128xf32> to vector<8x128xf32>
    %350 = vector.extract_strided_slice %71 {offsets = [48, 0], sizes = [8, 128], strides = [1, 1]} : vector<64x128xf32> to vector<8x128xf32>
    %351 = arith.maximumf %349, %350 : vector<8x128xf32>
    %352 = tpu.concatenate %349, %351 in 0 : vector<8x128xf32>, vector<8x128xf32> -> vector<16x128xf32>
    %353 = vector.shape_cast %352 : vector<16x128xf32> to vector<16x1x128xf32>
    %354 = vector.shape_cast %352 : vector<16x128xf32> to vector<1x16x128xf32>
    %355 = vector.broadcast %353 : vector<16x1x128xf32> to vector<16x16x128xf32>
    %356 = vector.broadcast %354 : vector<1x16x128xf32> to vector<16x16x128xf32>
    %357 = arith.cmpf ogt, %355, %356 : vector<16x16x128xf32>
    %358 = vector.broadcast %353 : vector<16x1x128xf32> to vector<16x16x128xf32>
    %359 = vector.broadcast %354 : vector<1x16x128xf32> to vector<16x16x128xf32>
    %360 = arith.cmpf oeq, %358, %359 : vector<16x16x128xf32>
    %361 = vector.broadcast %74 : vector<16x16x1xi1> to vector<16x16x128xi1>
    %362 = arith.andi %360, %361 : vector<16x16x128xi1>
    %363 = arith.ori %357, %362 : vector<16x16x128xi1>
    %cst_112 = arith.constant 0x7F800000 : f32
    %364 = vector.shape_cast %353 : vector<16x1x128xf32> to vector<16x1x128xf32>
    %365 = vector.broadcast %364 : vector<16x1x128xf32> to vector<16x16x128xf32>
    %366 = vector.broadcast %cst_112 : f32 to vector<16x16x128xf32>
    %367 = arith.select %363, %365, %366 : vector<16x16x128xi1>, vector<16x16x128xf32>
    %cst_113 = arith.constant dense<0x7F800000> : vector<16x128xf32>
    %368 = vector.multi_reduction <minimumf>, %367, %cst_113 [0] : vector<16x16x128xf32> to vector<16x128xf32>
    %cst_114 = arith.constant 0x7F800000 : f32
    %369 = vector.broadcast %cst_114 : f32 to vector<16x128xf32>
    %370 = arith.cmpf olt, %368, %369 : vector<16x128xf32>
    %371 = arith.subf %368, %352 : vector<16x128xf32>
    %cst_115 = arith.constant 0.000000e+00 : f32
    %372 = vector.broadcast %cst_115 : f32 to vector<16x128xf32>
    %373 = arith.select %370, %371, %372 : vector<16x128xi1>, vector<16x128xf32>
    %374 = vector.shape_cast %349 : vector<8x128xf32> to vector<8x1x128xf32>
    %375 = vector.broadcast %374 : vector<8x1x128xf32> to vector<8x16x128xf32>
    %376 = vector.broadcast %354 : vector<1x16x128xf32> to vector<8x16x128xf32>
    %377 = arith.cmpf ole, %375, %376 : vector<8x16x128xf32>
    %378 = vector.shape_cast %351 : vector<8x128xf32> to vector<8x1x128xf32>
    %379 = vector.broadcast %354 : vector<1x16x128xf32> to vector<8x16x128xf32>
    %380 = vector.broadcast %378 : vector<8x1x128xf32> to vector<8x16x128xf32>
    %381 = arith.cmpf olt, %379, %380 : vector<8x16x128xf32>
    %382 = arith.andi %377, %381 : vector<8x16x128xi1>
    %cst_116 = arith.constant 1.000000e+00 : f32
    %cst_117 = arith.constant 0.000000e+00 : f32
    %383 = vector.broadcast %cst_116 : f32 to vector<8x16x128xf32>
    %384 = vector.broadcast %cst_117 : f32 to vector<8x16x128xf32>
    %385 = arith.select %382, %383, %384 : vector<8x16x128xi1>, vector<8x16x128xf32>
    %cst_118 = arith.constant dense<0xFF800000> : vector<16x128xf32>
    %386 = vector.multi_reduction <maximumf>, %385, %cst_118 [0] : vector<8x16x128xf32> to vector<16x128xf32>
    %cst_119 = arith.constant 0.000000e+00 : f32
    %387 = vector.broadcast %cst_119 : f32 to vector<16x128xf32>
    %388 = arith.cmpf ogt, %386, %387 : vector<16x128xf32>
    %cst_120 = arith.constant 0.000000e+00 : f32
    %389 = vector.broadcast %cst_120 : f32 to vector<16x128xf32>
    %390 = arith.select %388, %373, %389 : vector<16x128xi1>, vector<16x128xf32>
    %cst_121 = arith.constant dense<0.000000e+00> : vector<128xf32>
    %391 = vector.multi_reduction <add>, %390, %cst_121 [0] : vector<16x128xf32> to vector<128xf32>
    %392 = vector.shape_cast %391 : vector<128xf32> to vector<1x128xf32>
    %393 = arith.maximumf %347, %392 : vector<1x128xf32>
    %394 = arith.addf %348, %392 : vector<1x128xf32>
    %395 = vector.extract_strided_slice %70 {offsets = [56, 0], sizes = [8, 128], strides = [1, 1]} : vector<64x128xf32> to vector<8x128xf32>
    %396 = vector.extract_strided_slice %71 {offsets = [56, 0], sizes = [8, 128], strides = [1, 1]} : vector<64x128xf32> to vector<8x128xf32>
    %397 = arith.maximumf %395, %396 : vector<8x128xf32>
    %398 = tpu.concatenate %395, %397 in 0 : vector<8x128xf32>, vector<8x128xf32> -> vector<16x128xf32>
    %399 = vector.shape_cast %398 : vector<16x128xf32> to vector<16x1x128xf32>
    %400 = vector.shape_cast %398 : vector<16x128xf32> to vector<1x16x128xf32>
    %401 = vector.broadcast %399 : vector<16x1x128xf32> to vector<16x16x128xf32>
    %402 = vector.broadcast %400 : vector<1x16x128xf32> to vector<16x16x128xf32>
    %403 = arith.cmpf ogt, %401, %402 : vector<16x16x128xf32>
    %404 = vector.broadcast %399 : vector<16x1x128xf32> to vector<16x16x128xf32>
    %405 = vector.broadcast %400 : vector<1x16x128xf32> to vector<16x16x128xf32>
    %406 = arith.cmpf oeq, %404, %405 : vector<16x16x128xf32>
    %407 = vector.broadcast %74 : vector<16x16x1xi1> to vector<16x16x128xi1>
    %408 = arith.andi %406, %407 : vector<16x16x128xi1>
    %409 = arith.ori %403, %408 : vector<16x16x128xi1>
    %cst_122 = arith.constant 0x7F800000 : f32
    %410 = vector.shape_cast %399 : vector<16x1x128xf32> to vector<16x1x128xf32>
    %411 = vector.broadcast %410 : vector<16x1x128xf32> to vector<16x16x128xf32>
    %412 = vector.broadcast %cst_122 : f32 to vector<16x16x128xf32>
    %413 = arith.select %409, %411, %412 : vector<16x16x128xi1>, vector<16x16x128xf32>
    %cst_123 = arith.constant dense<0x7F800000> : vector<16x128xf32>
    %414 = vector.multi_reduction <minimumf>, %413, %cst_123 [0] : vector<16x16x128xf32> to vector<16x128xf32>
    %cst_124 = arith.constant 0x7F800000 : f32
    %415 = vector.broadcast %cst_124 : f32 to vector<16x128xf32>
    %416 = arith.cmpf olt, %414, %415 : vector<16x128xf32>
    %417 = arith.subf %414, %398 : vector<16x128xf32>
    %cst_125 = arith.constant 0.000000e+00 : f32
    %418 = vector.broadcast %cst_125 : f32 to vector<16x128xf32>
    %419 = arith.select %416, %417, %418 : vector<16x128xi1>, vector<16x128xf32>
    %420 = vector.shape_cast %395 : vector<8x128xf32> to vector<8x1x128xf32>
    %421 = vector.broadcast %420 : vector<8x1x128xf32> to vector<8x16x128xf32>
    %422 = vector.broadcast %400 : vector<1x16x128xf32> to vector<8x16x128xf32>
    %423 = arith.cmpf ole, %421, %422 : vector<8x16x128xf32>
    %424 = vector.shape_cast %397 : vector<8x128xf32> to vector<8x1x128xf32>
    %425 = vector.broadcast %400 : vector<1x16x128xf32> to vector<8x16x128xf32>
    %426 = vector.broadcast %424 : vector<8x1x128xf32> to vector<8x16x128xf32>
    %427 = arith.cmpf olt, %425, %426 : vector<8x16x128xf32>
    %428 = arith.andi %423, %427 : vector<8x16x128xi1>
    %cst_126 = arith.constant 1.000000e+00 : f32
    %cst_127 = arith.constant 0.000000e+00 : f32
    %429 = vector.broadcast %cst_126 : f32 to vector<8x16x128xf32>
    %430 = vector.broadcast %cst_127 : f32 to vector<8x16x128xf32>
    %431 = arith.select %428, %429, %430 : vector<8x16x128xi1>, vector<8x16x128xf32>
    %cst_128 = arith.constant dense<0xFF800000> : vector<16x128xf32>
    %432 = vector.multi_reduction <maximumf>, %431, %cst_128 [0] : vector<8x16x128xf32> to vector<16x128xf32>
    %cst_129 = arith.constant 0.000000e+00 : f32
    %433 = vector.broadcast %cst_129 : f32 to vector<16x128xf32>
    %434 = arith.cmpf ogt, %432, %433 : vector<16x128xf32>
    %cst_130 = arith.constant 0.000000e+00 : f32
    %435 = vector.broadcast %cst_130 : f32 to vector<16x128xf32>
    %436 = arith.select %434, %419, %435 : vector<16x128xi1>, vector<16x128xf32>
    %cst_131 = arith.constant dense<0.000000e+00> : vector<128xf32>
    %437 = vector.multi_reduction <add>, %436, %cst_131 [0] : vector<16x128xf32> to vector<128xf32>
    %438 = vector.shape_cast %437 : vector<128xf32> to vector<1x128xf32>
    %439 = arith.maximumf %393, %438 : vector<1x128xf32>
    %440 = arith.addf %394, %438 : vector<1x128xf32>
    %c0_132 = arith.constant 0 : index
    %441 = memref.load %arg21[%c0_132] : memref<1xf32, #tpu.memory_space<smem>>
    %442 = vector.broadcast %441 : f32 to vector<1x1xf32>
    %443 = arith.negf %442 : vector<1x1xf32>
    %444 = math.exp %443 : vector<1x1xf32>
    %cst_133 = arith.constant 1.000000e+00 : f32
    %445 = vector.broadcast %cst_133 : f32 to vector<1x1xf32>
    %446 = arith.addf %445, %444 : vector<1x1xf32>
    %447 = arith.divf %445, %446 : vector<1x1xf32>
    %448 = vector.broadcast %447 : vector<1x1xf32> to vector<1x128xf32>
    %449 = arith.mulf %448, %439 : vector<1x128xf32>
    %cst_134 = arith.constant 1.000000e+00 : f32
    %450 = vector.broadcast %cst_134 : f32 to vector<1x1xf32>
    %451 = arith.subf %450, %447 : vector<1x1xf32>
    %cst_135 = arith.constant 1.250000e-01 : f32
    %452 = vector.broadcast %cst_135 : f32 to vector<1x128xf32>
    %453 = arith.mulf %440, %452 : vector<1x128xf32>
    %454 = vector.broadcast %451 : vector<1x1xf32> to vector<1x128xf32>
    %455 = arith.mulf %454, %453 : vector<1x128xf32>
    %456 = arith.addf %449, %455 : vector<1x128xf32>
    %c0_136 = arith.constant 0 : index
    %c0_137 = arith.constant 0 : index
    %457 = vector.load %arg22[%c0_136, %c0_137] : memref<1x128xf32, #tpu.memory_space<vmem>>, vector<1x128xf32>
    tpu.vector_store %arg22[%c0_136, %c0_137], %456 {strides = array<i32>} : memref<1x128xf32, #tpu.memory_space<vmem>>, vector<1x128xf32>,
    return
  }
  func.func @transform_0(%arg0: i32) -> (i32, i32) {
    %c0_i32 = arith.constant 0 : i32
    %c0_i32_0 = arith.constant 0 : i32
    return %c0_i32, %arg0 : i32, i32
  }
  func.func @transform_1(%arg0: i32) -> (i32, i32) {
    %c0_i32 = arith.constant 0 : i32
    %c0_i32_0 = arith.constant 0 : i32
    return %c0_i32, %arg0 : i32, i32
  }
  func.func @transform_2(%arg0: i32) -> (i32, i32) {
    %c0_i32 = arith.constant 0 : i32
    %c0_i32_0 = arith.constant 0 : i32
    return %c0_i32, %arg0 : i32, i32
  }
  func.func @transform_3(%arg0: i32) -> (i32, i32) {
    %c0_i32 = arith.constant 0 : i32
    %c0_i32_0 = arith.constant 0 : i32
    %c0_i32_1 = arith.constant 0 : i32
    return %c0_i32, %c0_i32_0 : i32, i32
  }
  func.func @transform_4(%arg0: i32) -> (i32, i32) {
    %c0_i32 = arith.constant 0 : i32
    %c0_i32_0 = arith.constant 0 : i32
    %c0_i32_1 = arith.constant 0 : i32
    return %c0_i32, %c0_i32_0 : i32, i32
  }
  func.func @transform_5(%arg0: i32) -> (i32, i32) {
    %c0_i32 = arith.constant 0 : i32
    %c0_i32_0 = arith.constant 0 : i32
    %c0_i32_1 = arith.constant 0 : i32
    return %c0_i32, %c0_i32_0 : i32, i32
  }
  func.func @transform_6(%arg0: i32) -> (i32, i32) {
    %c0_i32 = arith.constant 0 : i32
    %c0_i32_0 = arith.constant 0 : i32
    %c0_i32_1 = arith.constant 0 : i32
    return %c0_i32, %c0_i32_0 : i32, i32
  }
  func.func @transform_7(%arg0: i32) -> (i32, i32) {
    %c0_i32 = arith.constant 0 : i32
    %c0_i32_0 = arith.constant 0 : i32
    %c0_i32_1 = arith.constant 0 : i32
    return %c0_i32, %c0_i32_0 : i32, i32
  }
  func.func @transform_8(%arg0: i32) -> (i32, i32) {
    %c0_i32 = arith.constant 0 : i32
    %c0_i32_0 = arith.constant 0 : i32
    %c0_i32_1 = arith.constant 0 : i32
    return %c0_i32, %c0_i32_0 : i32, i32
  }
  func.func @transform_9(%arg0: i32) -> (i32, i32) {
    %c0_i32 = arith.constant 0 : i32
    %c0_i32_0 = arith.constant 0 : i32
    %c0_i32_1 = arith.constant 0 : i32
    return %c0_i32, %c0_i32_0 : i32, i32
  }
  func.func @transform_10(%arg0: i32) -> (i32, i32) {
    %c0_i32 = arith.constant 0 : i32
    %c0_i32_0 = arith.constant 0 : i32
    %c0_i32_1 = arith.constant 0 : i32
    return %c0_i32, %c0_i32_0 : i32, i32
  }
  func.func @transform_11(%arg0: i32) -> (i32, i32) {
    %c0_i32 = arith.constant 0 : i32
    %c0_i32_0 = arith.constant 0 : i32
    %c0_i32_1 = arith.constant 0 : i32
    return %c0_i32, %c0_i32_0 : i32, i32
  }
  func.func @transform_12(%arg0: i32) -> (i32, i32) {
    %c0_i32 = arith.constant 0 : i32
    %c0_i32_0 = arith.constant 0 : i32
    %c0_i32_1 = arith.constant 0 : i32
    return %c0_i32, %c0_i32_0 : i32, i32
  }
  func.func @transform_13(%arg0: i32) -> (i32, i32) {
    %c0_i32 = arith.constant 0 : i32
    %c0_i32_0 = arith.constant 0 : i32
    %c0_i32_1 = arith.constant 0 : i32
    return %c0_i32, %c0_i32_0 : i32, i32
  }
  func.func @transform_14(%arg0: i32) -> (i32, i32) {
    %c0_i32 = arith.constant 0 : i32
    %c0_i32_0 = arith.constant 0 : i32
    %c0_i32_1 = arith.constant 0 : i32
    return %c0_i32, %c0_i32_0 : i32, i32
  }
  func.func @transform_15(%arg0: i32) -> (i32, i32) {
    %c0_i32 = arith.constant 0 : i32
    %c0_i32_0 = arith.constant 0 : i32
    %c0_i32_1 = arith.constant 0 : i32
    return %c0_i32, %c0_i32_0 : i32, i32
  }
  func.func @transform_16(%arg0: i32) -> (i32, i32) {
    %c0_i32 = arith.constant 0 : i32
    %c0_i32_0 = arith.constant 0 : i32
    %c0_i32_1 = arith.constant 0 : i32
    return %c0_i32, %c0_i32_0 : i32, i32
  }
  func.func @transform_17(%arg0: i32) -> (i32, i32) {
    %c0_i32 = arith.constant 0 : i32
    %c0_i32_0 = arith.constant 0 : i32
    %c0_i32_1 = arith.constant 0 : i32
    return %c0_i32, %c0_i32_0 : i32, i32
  }
  func.func @transform_18(%arg0: i32) -> (i32, i32) {
    %c0_i32 = arith.constant 0 : i32
    %c0_i32_0 = arith.constant 0 : i32
    %c0_i32_1 = arith.constant 0 : i32
    return %c0_i32, %c0_i32_0 : i32, i32
  }
  func.func @transform_19(%arg0: i32) -> (i32, i32) {
    %c0_i32 = arith.constant 0 : i32
    %c0_i32_0 = arith.constant 0 : i32
    %c0_i32_1 = arith.constant 0 : i32
    return %c0_i32, %c0_i32_0 : i32, i32
  }
  func.func @transform_20(%arg0: i32) -> i32 {
    %c0_i32 = arith.constant 0 : i32
    %c0_i32_0 = arith.constant 0 : i32
    return %c0_i32 : i32
  }
  func.func @transform_21(%arg0: i32) -> (i32, i32) {
    %c0_i32 = arith.constant 0 : i32
    %c0_i32_0 = arith.constant 0 : i32
    return %c0_i32, %arg0 : i32, i32
  }
}

</mosaic_0001>

<bundles_post_ra>
// kernel: tpu_custom_call.1
= control target key start
LH: loop header
LB: loop body
LE: loop exit
PB: predicated region body
PF: predicated region fallthrough
CT: control target
= control target key end

     0   :  { %s11823_s0 = inlined_call_operand.vmem [shape: f32[16,128], index: 0, kind: input, shape index: {}]   ;;  %s11824_s1 = inlined_call_operand.vmem [shape: f32[16,128], index: 1, kind: input, shape index: {}]   ;;  %s11825_s2 = inlined_call_operand.vmem [shape: f32[4,128], index: 2, kind: input, shape index: {}]   ;;  %s11826_s3 = inlined_call_operand.vmem [shape: bf16[64,16], index: 3, kind: input, shape index: {}]   ;;  %s11827_s4 = inlined_call_operand.vmem [shape: f32[64,1], index: 4, kind: input, shape index: {}]   ;;  %s11828_s5 = inlined_call_operand.vmem [shape: bf16[64,64], index: 5, kind: input, shape index: {}]   ;;  %s11829_s6 = inlined_call_operand.vmem [shape: f32[64,1], index: 6, kind: input, shape index: {}]   ;;  %s11830_s7 = inlined_call_operand.vmem [shape: bf16[32,64], index: 7, kind: input, shape index: {}]   ;;  %s11831_s8 = inlined_call_operand.vmem [shape: f32[32,1], index: 8, kind: input, shape index: {}]   ;;  %s11832_s9 = inlined_call_operand.vmem [shape: bf16[64,32], index: 9, kind: input, shape index: {}]   ;;  %s11833_s10 = inlined_call_operand.vmem [shape: bf16[64,4], index: 10, kind: input, shape index: {}]   ;;  %s11834_s11 = inlined_call_operand.vmem [shape: f32[64,1], index: 11, kind: input, shape index: {}]   ;;  %s11835_s12 = inlined_call_operand.vmem [shape: bf16[64,64], index: 12, kind: input, shape index: {}]   ;;  %s11836_s13 = inlined_call_operand.vmem [shape: f32[64,1], index: 13, kind: input, shape index: {}]   ;;  %s11837_s14 = inlined_call_operand.vmem [shape: bf16[32,64], index: 14, kind: input, shape index: {}]   ;;  %s11838_s15 = inlined_call_operand.vmem [shape: f32[32,1], index: 15, kind: input, shape index: {}]   ;;  %s11839_s16 = inlined_call_operand.vmem [shape: bf16[64,32], index: 16, kind: input, shape index: {}]   ;;  %s11840_s17 = inlined_call_operand.vmem [shape: f32[64,1], index: 17, kind: input, shape index: {}]   ;;  %s11841_s18 = inlined_call_operand.vmem [shape: bf16[64,64], index: 18, kind: input, shape index: {}]   ;;  %s11842_s19 = inlined_call_operand.vmem [shape: f32[64,1], index: 19, kind: input, shape index: {}]   ;;  %s11843_s20 = inlined_call_operand.<no memory space> [shape: f32[1], index: 20, kind: input, shape index: {}]   ;;  %s11844_s21 = inlined_call_operand.hbm [shape: f32[1,128], index: 21, kind: output, shape index: {}]  }
   0x1   :  { %11857 = sst [smem:[#allocation6_spill]] %s11823_s0 }
   0x2   :  { %11858 = sst [smem:[#allocation7_spill]] %s11824_s1 }
   0x3   :  { %11859 = sst [smem:[#allocation8_spill]] %s11825_s2 }
   0x4   :  { %11860 = sst [smem:[#allocation9_spill]] %s11826_s3 }
   0x5   :  { %11861 = sst [smem:[#allocation10_spill]] %s11827_s4 }
   0x6   :  { %11862 = sst [smem:[#allocation11_spill]] %s11828_s5 }
   0x7   :  { %s11863_s26 = sld [smem:[#allocation10_spill]]  ;;  %v4313_v3 = vmov 0   ;;  %vm153_vm0 = vcmask 130048  }
   0x8   :  { %4282 = vset.pattern.permute.xlu2 %v4313_v3  ;;  %4281 = vset.pattern.permute.xlu1 %v4313_v3  ;;  %s11864_s30 = sld [smem:[#allocation6_spill]] }
   0x9   :  { %4280 = vset.pattern.permute.xlu0 %v4313_v3  ;;  %s11865_s24 = sld [smem:[#allocation9_spill]] }
   0xa   :  { %s11866_s28 = sld [smem:[#allocation7_spill]] }
   0xd   :  { %v91_v0 = vld [vmem:[%s11863_s26 + $0x30] sm:$0xff]  ;;  %v89_v1 = vld [vmem:[%s11863_s26 + $0x20] sm:$0xff]  ;;  %v90_v12 = vld [vmem:[%s11863_s26 + $0x28] sm:$0xff] }
   0xe   :  { %v87_v2 = vld [vmem:[%s11863_s26 + $0x10] sm:$0xff]  ;;  %v71_v4 = vld [vmem:[%s11864_s30] sm:$0xff]  ;;  %v72_v5 = vld [vmem:[%s11864_s30 + $0x8] sm:$0xff]  ;;  %115 = vperm.xlu1 %4281, %v89_v1   ;;  %125 = vperm.xlu0 %4280, %v91_v0  }
   0xf   :  { %v83_v6 = vpack.c.bf16 %v72_v5, %v71_v4  ;;  %105 = vperm.xlu2 %4282, %v87_v2   ;;  %v4244_v7 = vld [vmem:[%s11865_s24] sm:$0xff]  ;;  %v4447_v8 = vld [vmem:[%s11865_s24 + $0x18] sm:$0xff] }
  0x10   :  { %v73_v9 = vld [vmem:[%s11866_s28] sm:$0xff]  ;;  %v74_v10 = vld [vmem:[%s11866_s28 + $0x8] sm:$0xff]  ;;  %v92_v13 = vld [vmem:[%s11863_s26 + $0x38] sm:$0xff] }
  0x11   :  { %173 = vmatpush.bf16.msra.mxu0 %v83_v6  ;;  %4276 = vmatpush.bf16.msra.mxu1 %v83_v6  ;;  %v84_v11 = vpack.c.bf16 %v74_v10, %v73_v9  ;;  %v88_v14 = vld [vmem:[%s11863_s26 + $0x18] sm:$0xff] }
  0x14   :  { %4081 = vmatmul.msk.bf16.vlgmr.msra.gmra.mxu0 %vm153_vm0, %v4244_v7  ;;  %4084 = vmatmul.msk.bf16.vlgmr.msra.gmra.mxu1 %vm153_vm0, %v4447_v8 }
  0x15   :  { %202 = vmatpush.bf16.msrb.mxu1 %v84_v11 }
  0x16   :  { %27 = vsyncpa [#allocation4], 0  ;;  %120 = vperm.xlu1 %4281, %v90_v12   ;;  %130 = vperm.xlu0 %4280, %v92_v13   ;;  %v86_v15 = vld [vmem:[%s11863_s26 + $0x8] sm:$0xff]  ;;  %v262_v16 = vld [vmem:[%s11829_s6 + $0x30] sm:$0xff]  ;;  %s11867_s2 = sld [smem:[#allocation11_spill]]  ;;  %vm324_vm1 = vcmask 523264  }
  0x17   :  { %110 = vperm.xlu2 %4282, %v88_v14   ;;  %v85_v17 = vld [vmem:[%s11863_s26] sm:$0xff]  ;;  %v4245_v18 = vld [vmem:[%s11865_s24 + $0x8] sm:$0xff]  ;;  %v263_v21 = vld [vmem:[%s11829_s6 + $0x38] sm:$0xff]  ;;  %s11868_s5 = sld [smem:[#allocation8_spill]]  ;;  %vm554_vm2 = vcmask 1041408   ;;  %vm541_vm3 = vcmask 31744  }
  0x18   :  { %v260_v19 = vld [vmem:[%s11829_s6 + $0x20] sm:$0xff]  ;;  %v261_v20 = vld [vmem:[%s11829_s6 + $0x28] sm:$0xff]  ;;  %v259_v22 = vld [vmem:[%s11829_s6 + $0x18] sm:$0xff]  ;;  %vm607_vm4 = vcmask 261120  }
  0x19   :  { %v256_v23 = vld [vmem:[%s11829_s6] sm:$0xff]  ;;  %v258_v24 = vld [vmem:[%s11829_s6 + $0x10] sm:$0xff]  ;;  %v426_v27 = vld [vmem:[%s11831_s8 + $0x18] sm:$0xff] }
  0x1a   :  { %v4246_v25 = vld [vmem:[%s11865_s24 + $0x10] sm:$0xff]  ;;  %v257_v28 = vld [vmem:[%s11829_s6 + $0x8] sm:$0xff]  ;;  %v423_v31 = vld [vmem:[%s11831_s8] sm:$0xff] }
  0x1b   :  { %v425_v26 = vld [vmem:[%s11831_s8 + $0x10] sm:$0xff]  ;;  %v424_v29 = vld [vmem:[%s11831_s8 + $0x8] sm:$0xff]  ;;  %v653_v32 = vld [vmem:[%s11834_s11 + $0x20] sm:$0xff] }
  0x1c   :  { %v655_v30 = vld [vmem:[%s11834_s11 + $0x30] sm:$0xff]  ;;  %v654_v33 = vld [vmem:[%s11834_s11 + $0x28] sm:$0xff]  ;;  %v656_v34 = vld [vmem:[%s11834_s11 + $0x38] sm:$0xff] }
  0x1d   :  { %v652_v35 = vld [vmem:[%s11834_s11 + $0x18] sm:$0xff]  ;;  %v649_v36 = vld [vmem:[%s11834_s11] sm:$0xff]  ;;  %v651_v37 = vld [vmem:[%s11834_s11 + $0x10] sm:$0xff] }
  0x1e   :  { %100 = vperm.xlu1 %4281, %v86_v15   ;;  %95 = vperm.xlu0 %4280, %v85_v17   ;;  %v731_v38 = vld [vmem:[%s11836_s13 + $0x30] sm:$0xff]  ;;  %v732_v39 = vld [vmem:[%s11836_s13 + $0x38] sm:$0xff]  ;;  %v650_v40 = vld [vmem:[%s11834_s11 + $0x8] sm:$0xff] }
  0x1f   :  { %296 = vperm.xlu2 %4282, %v262_v16   ;;  %v730_v41 = vld [vmem:[%s11836_s13 + $0x28] sm:$0xff]  ;;  %v727_v42 = vld [vmem:[%s11836_s13 + $0x10] sm:$0xff]  ;;  %v729_v43 = vld [vmem:[%s11836_s13 + $0x20] sm:$0xff] }
  0x20   :  { %v725_v44 = vld [vmem:[%s11836_s13] sm:$0xff]  ;;  %v726_v45 = vld [vmem:[%s11836_s13 + $0x8] sm:$0xff]  ;;  %v728_v46 = vld [vmem:[%s11836_s13 + $0x18] sm:$0xff] }
  0x21   :  { %v892_v47 = vld [vmem:[%s11838_s15 + $0x18] sm:$0xff]  ;;  %v889_v48 = vld [vmem:[%s11838_s15] sm:$0xff]  ;;  %v891_v49 = vld [vmem:[%s11838_s15 + $0x10] sm:$0xff] }
  0x22   :  { %v935_v50 = vld [vmem:[%s11840_s17 + $0x30] sm:$0xff]  ;;  %v936_v51 = vld [vmem:[%s11840_s17 + $0x38] sm:$0xff]  ;;  %v890_v52 = vld [vmem:[%s11838_s15 + $0x8] sm:$0xff] }
  0x23   :  { %v934_v53 = vld [vmem:[%s11840_s17 + $0x28] sm:$0xff]  ;;  %v931_v54 = vld [vmem:[%s11840_s17 + $0x10] sm:$0xff]  ;;  %v933_v55 = vld [vmem:[%s11840_s17 + $0x20] sm:$0xff] }
  0x24   :  { %4082 = vmatmul.msk.bf16.gmra.mxu0 %vm153_vm0, %v4245_v18  ;;  %4085 = vmatmul.msk.bf16.vlgmr.msrb.gmra.mxu1 %vm153_vm0, %v4244_v7  ;;  %v929_v56 = vld [vmem:[%s11840_s17] sm:$0xff]  ;;  %v930_v57 = vld [vmem:[%s11840_s17 + $0x8] sm:$0xff]  ;;  %v932_v58 = vld [vmem:[%s11840_s17 + $0x18] sm:$0xff]  ;;  %s4056_s17 = sshll.u32 %s11844_s21, 4  ;;  %s4057_s17 = int_to_ptr.hbm [resolvable:$true] %s4056_s17 }
  0x25   :  { %v1100_v59 = vld [vmem:[%s11842_s19 + $0x8] sm:$0xff]  ;;  %v1101_v60 = vld [vmem:[%s11842_s19 + $0x10] sm:$0xff]  ;;  %v1099_v61 = vld [vmem:[%s11842_s19] sm:$0xff] }
  0x26   :  { %286 = vperm.xlu1 %4281, %v260_v19   ;;  %301 = vperm.xlu0 %4280, %v263_v21   ;;  %v1103_v1 = vld [vmem:[%s11842_s19 + $0x20] sm:$0xff]  ;;  %v1104_v2 = vld [vmem:[%s11842_s19 + $0x28] sm:$0xff]  ;;  %v1102_v3 = vld [vmem:[%s11842_s19 + $0x18] sm:$0xff] }
  0x27   :  { %291 = vperm.xlu2 %4282, %v261_v20   ;;  %v1106_v10 = vld [vmem:[%s11842_s19 + $0x38] sm:$0xff]  ;;  %v1105_v12 = vld [vmem:[%s11842_s19 + $0x30] sm:$0xff] }
  0x2e   :  { %281 = vperm.xlu1 %4281, %v259_v22   ;;  %276 = vperm.xlu0 %4280, %v258_v24  }
  0x2f   :  { %266 = vperm.xlu2 %4282, %v256_v23  }
  0x34   :  { %4083 = vmatmul.msk.bf16.gmra.mxu0 %vm153_vm0, %v4246_v25  ;;  %4086 = vmatmul.msk.bf16.gmra.mxu1 %vm153_vm0, %v4245_v18 }
  0x36   :  { %439 = vperm.xlu1 %4281, %v425_v26   ;;  %271 = vperm.xlu0 %4280, %v257_v28  }
  0x37   :  { %444 = vperm.xlu2 %4282, %v426_v27  }
  0x3e   :  { %434 = vperm.xlu1 %4281, %v424_v29   ;;  %429 = vperm.xlu0 %4280, %v423_v31  }
  0x3f   :  { %689 = vperm.xlu2 %4282, %v655_v30  }
  0x44   :  { %4087 = vmatmul.msk.bf16.gmra.mxu1 %vm153_vm0, %v4246_v25 }
  0x46   :  { %679 = vperm.xlu1 %4281, %v653_v32   ;;  %694 = vperm.xlu0 %4280, %v656_v34  }
  0x47   :  { %684 = vperm.xlu2 %4282, %v654_v33  }
  0x4e   :  { %674 = vperm.xlu1 %4281, %v652_v35   ;;  %669 = vperm.xlu0 %4280, %v651_v37  }
  0x4f   :  { %659 = vperm.xlu2 %4282, %v649_v36  }
  0x54   :  { %4088 = vmatmul.msk.bf16.gmra.mxu1 %vm153_vm0, %v4447_v8 }
  0x56   :  { %765 = vperm.xlu1 %4281, %v731_v38   ;;  %664 = vperm.xlu0 %4280, %v650_v40  }
  0x57   :  { %770 = vperm.xlu2 %4282, %v732_v39  }
  0x5e   :  { %760 = vperm.xlu1 %4281, %v730_v41   ;;  %755 = vperm.xlu0 %4280, %v729_v43  }
  0x5f   :  { %745 = vperm.xlu2 %4282, %v727_v42  }
  0x66   :  { %735 = vperm.xlu1 %4281, %v725_v44   ;;  %750 = vperm.xlu0 %4280, %v728_v46   ;;  %v4248_v44 = vld [vmem:[%s11867_s2] sm:$0xff] }
  0x67   :  { %740 = vperm.xlu2 %4282, %v726_v45  }
  0x69   :  { %v106_v19 = vpop.permute.xlu2 %105 }
  0x6e   :  { %910 = vperm.xlu1 %4281, %v892_v47   ;;  %905 = vperm.xlu0 %4280, %v891_v49   ;;  %v4249_v47 = vld [vmem:[%s11867_s2 + $0x8] sm:$0xff] }
  0x6f   :  { %895 = vperm.xlu2 %4282, %v889_v48  }
  0x71   :  { %v111_v23 = vpop.permute.xlu2 %110 }
  0x76   :  { %969 = vperm.xlu1 %4281, %v935_v50   ;;  %900 = vperm.xlu0 %4280, %v890_v52  }
  0x77   :  { %974 = vperm.xlu2 %4282, %v936_v51  }
  0x7e   :  { %964 = vperm.xlu1 %4281, %v934_v53   ;;  %959 = vperm.xlu0 %4280, %v933_v55  }
  0x7f   :  { %949 = vperm.xlu2 %4282, %v931_v54  }
  0x80   :  { %v4615_v62 = vpop.permute.xlu0 %125  ;;  %v116_v16 = vpop.permute.xlu1 %115 }
  0x86   :  { %939 = vperm.xlu1 %4281, %v929_v56   ;;  %954 = vperm.xlu0 %4280, %v932_v58  }
  0x87   :  { %944 = vperm.xlu2 %4282, %v930_v57  }
  0x88   :  { %v131_v5 = vpop.permute.xlu0 %130  ;;  %v121_v22 = vpop.permute.xlu1 %120 }
  0x8e   :  { %1114 = vperm.xlu1 %4281, %v1100_v59   ;;  %1109 = vperm.xlu0 %4280, %v1099_v61  }
  0x8f   :  { %1119 = vperm.xlu2 %4282, %v1101_v60  }
  0x90   :  { %v101_v32 = vpop.permute.xlu1 %100  ;;  %v96_v33 = vpop.permute.xlu0 %95 }
  0x91   :  { %v175_v63 = vpop.f32.mrf.mxu0  ;;  %v190_v0 = vpop.f32.mrf.mxu1 }
  0x92   :  { %v191_v4 = vadd.f32 %v190_v0, %v4615_v62  ;;  %v176_v37 = vadd.f32 %v175_v63, %v96_v33 }
  0x94   :  { %v236_v8 = vmax.f32 %v191_v4, 0.0  ;;  %v224_v42 = vmax.f32 %v176_v37, 0.0  ;;  %v4250_v4 = vld [vmem:[%s11867_s2 + $0x10] sm:$0xff] }
  0x96   :  { %1129 = vperm.xlu1 %4281, %v1103_v1   ;;  %1124 = vperm.xlu0 %4280, %v1102_v3  }
  0x97   :  { %1134 = vperm.xlu2 %4282, %v1104_v2  }
  0x99   :  { %v177_v6 = vpop.f32.mrf.mxu0  ;;  %v192_v7 = vpop.f32.mrf.mxu1 }
  0x9a   :  { %v193_v9 = vadd.f32 %v192_v7, %v131_v5  ;;  %v178_v34 = vadd.f32 %v177_v6, %v101_v32  ;;  %v4251_v6 = vld [vmem:[%s11867_s2 + $0x18] sm:$0xff] }
  0x9c   :  { %v238_v11 = vmax.f32 %v193_v9, 0.0  ;;  %v226_v40 = vmax.f32 %v178_v34, 0.0 }
  0x9e   :  { %v254_v13 = vpack.c.bf16 %v238_v11, %v236_v8  ;;  %1144 = vperm.xlu1 %4281, %v1106_v10   ;;  %1139 = vperm.xlu0 %4280, %v1105_v12   ;;  %v248_v43 = vpack.c.bf16 %v226_v40, %v224_v42 }
  0xa0   :  { %341 = vmatpush.bf16.msra.mxu2 %v254_v13 }
  0xa1   :  { %v180_v14 = vpop.f32.mrf.mxu0  ;;  %v204_v15 = vpop.f32.mrf.mxu1 }
  0xa2   :  { %v181_v29 = vadd.f32 %v180_v14, %v106_v19  ;;  %v205_v60 = vadd.f32 %v204_v15, %v96_v33  ;;  %v302_v14 = vpop.permute.xlu0 %301 }
  0xa4   :  { %v228_v38 = vmax.f32 %v181_v29, 0.0 }
  0xa9   :  { %v182_v17 = vpop.f32.mrf.mxu0  ;;  %v206_v18 = vpop.f32.mrf.mxu1 }
  0xaa   :  { %v183_v27 = vadd.f32 %v182_v17, %v111_v23  ;;  %v207_v61 = vadd.f32 %v206_v18, %v101_v32  ;;  %v287_v18 = vpop.permute.xlu1 %286 }
  0xac   :  { %v230_v35 = vmax.f32 %v183_v27, 0.0  ;;  %v227_v2 = vmax.f32 %v207_v61, 0.0 }
  0xae   :  { %v250_v41 = vpack.c.bf16 %v230_v35, %v228_v38 }
  0xb1   :  { %v185_v20 = vpop.f32.mrf.mxu0  ;;  %v209_v21 = vpop.f32.mrf.mxu1 }
  0xb2   :  { %v186_v24 = vadd.f32 %v185_v20, %v116_v16  ;;  %v210_v58 = vadd.f32 %v209_v21, %v106_v19  ;;  %v277_v20 = vpop.permute.xlu0 %276  ;;  %v282_v29 = vpop.permute.xlu1 %281 }
  0xb4   :  { %v232_v30 = vmax.f32 %v186_v24, 0.0  ;;  %v229_v1 = vmax.f32 %v210_v58, 0.0 }
  0xb9   :  { %v187_v25 = vpop.f32.mrf.mxu0  ;;  %v211_v26 = vpop.f32.mrf.mxu1 }
  0xba   :  { %v188_v28 = vadd.f32 %v187_v25, %v121_v22  ;;  %v212_v55 = vadd.f32 %v211_v26, %v111_v23 }
  0xbc   :  { %v234_v31 = vmax.f32 %v188_v28, 0.0  ;;  %v231_v63 = vmax.f32 %v212_v55, 0.0 }
  0xbe   :  { %v252_v36 = vpack.c.bf16 %v234_v31, %v232_v30  ;;  %v251_v3 = vpack.c.bf16 %v231_v63, %v229_v1 }
  0xc0   :  { %342 = vmatpush.bf16.msra.mxu2 %v252_v36  ;;  %v272_v36 = vpop.permute.xlu0 %271 }
  0xc1   :  { %v214_v39 = vpop.f32.mrf.mxu1 }
  0xc2   :  { %v215_v52 = vadd.f32 %v214_v39, %v116_v16  ;;  %v297_v16 = vpop.permute.xlu2 %296 }
  0xc4   :  { %343 = vmatpush.bf16.msra.mxu2 %v250_v41  ;;  %v233_v59 = vmax.f32 %v215_v52, 0.0 }
  0xc8   :  { %344 = vmatpush.bf16.msra.mxu2 %v248_v43 }
  0xc9   :  { %v216_v45 = vpop.f32.mrf.mxu1 }
  0xca   :  { %v217_v50 = vadd.f32 %v216_v45, %v121_v22  ;;  %v292_v22 = vpop.permute.xlu2 %291 }
  0xcb   :  { %4105 = vmatmul.msk.bf16.vlgmr.msra.gmra.mxu2 %vm324_vm1, %v4248_v44 }
  0xcc   :  { %v235_v56 = vmax.f32 %v217_v50, 0.0 }
  0xce   :  { %v253_v0 = vpack.c.bf16 %v235_v56, %v233_v59 }
  0xd1   :  { %v219_v46 = vpop.f32.mrf.mxu1 }
  0xd2   :  { %v220_v48 = vadd.f32 %v219_v46, %v4615_v62  ;;  %v225_v62 = vmax.f32 %v205_v60, 0.0  ;;  %v267_v40 = vpop.permute.xlu2 %266 }
  0xd4   :  { %v237_v53 = vmax.f32 %v220_v48, 0.0  ;;  %v4252_v48 = vld [vmem:[%s11830_s7] sm:$0xff] }
  0xd9   :  { %v221_v49 = vpop.f32.mrf.mxu1 }
  0xda   :  { %v222_v51 = vadd.f32 %v221_v49, %v131_v5  ;;  %v249_v5 = vpack.c.bf16 %v227_v2, %v225_v62 }
  0xdb   :  { %4106 = vmatmul.msk.bf16.gmra.mxu2 %vm324_vm1, %v4249_v47 }
  0xdc   :  { %v239_v54 = vmax.f32 %v222_v51, 0.0  ;;  %v4253_v51 = vld [vmem:[%s11830_s7 + $0x8] sm:$0xff] }
  0xde   :  { %v255_v57 = vpack.c.bf16 %v239_v54, %v237_v53 }
  0xe0   :  { %370 = vmatpush.bf16.msra.mxu3 %v255_v57 }
  0xe4   :  { %371 = vmatpush.bf16.msra.mxu3 %v253_v0 }
  0xe8   :  { %372 = vmatpush.bf16.msra.mxu3 %v251_v3 }
  0xeb   :  { %4107 = vmatmul.msk.bf16.gmra.mxu2 %vm324_vm1, %v4250_v4 }
  0xec   :  { %373 = vmatpush.bf16.msra.mxu3 %v249_v5 }
  0xef   :  { %4109 = vmatmul.msk.bf16.vlgmr.msra.gmra.mxu3 %vm324_vm1, %v4248_v44 }
  0xfb   :  { %4108 = vmatmul.msk.bf16.gmra.mxu2 %vm324_vm1, %v4251_v6 }
  0xff   :  { %4110 = vmatmul.msk.bf16.gmra.mxu3 %vm324_vm1, %v4249_v47 }
 0x10f   :  { %4111 = vmatmul.msk.bf16.gmra.mxu3 %vm324_vm1, %v4250_v4 }
 0x11f   :  { %4112 = vmatmul.msk.bf16.gmra.mxu3 %vm324_vm1, %v4251_v6 }
 0x14e   :  { %v346_v7 = vpop.f32.mrf.mxu2 }
 0x14f   :  { %v347_v41 = vadd.f32 %v346_v7, %v267_v40 }
 0x151   :  { %v395_v46 = vmax.f32 %v347_v41, 0.0 }
 0x156   :  { %v348_v8 = vpop.f32.mrf.mxu2 }
 0x157   :  { %v349_v37 = vadd.f32 %v348_v8, %v272_v36 }
 0x159   :  { %v397_v44 = vmax.f32 %v349_v37, 0.0 }
 0x15b   :  { %v415_v47 = vpack.c.bf16 %v397_v44, %v395_v46  ;;  %v4257_v44 = vld [vmem:[%s11832_s9 + $0x18] sm:$0xff]  ;;  %v4724_v46 = vld [vmem:[%s11839_s16 + $0x10] sm:$0xff] }
 0x15e   :  { %v351_v9 = vpop.f32.mrf.mxu2 }
 0x15f   :  { %v352_v34 = vadd.f32 %v351_v9, %v277_v20  ;;  %v511_v9 = vld [vmem:[%s11868_s5] sm:$0xf] }
 0x161   :  { %v399_v42 = vmax.f32 %v352_v34, 0.0 }
 0x166   :  { %v353_v10 = vpop.f32.mrf.mxu2 }
 0x167   :  { %v354_v31 = vadd.f32 %v353_v10, %v282_v29  ;;  %v520_v10 = vpack.c.bf16 %v511_v9, %v511_v9 }
 0x169   :  { %v401_v38 = vmax.f32 %v354_v31, 0.0 }
 0x16b   :  { %v417_v45 = vpack.c.bf16 %v401_v38, %v399_v42 }
 0x16e   :  { %v356_v11 = vpop.f32.mrf.mxu2 }
 0x16f   :  { %v357_v26 = vadd.f32 %v356_v11, %v287_v18  ;;  %v556_v11 = vsel %vm554_vm2, %v520_v10, 0 }
 0x170   :  { %565 = vmatpush.bf16.msrb.mxu2 %v556_v11 }
 0x171   :  { %v403_v35 = vmax.f32 %v357_v26, 0.0 }
 0x172   :  { %v375_v12 = vpop.f32.mrf.mxu3 }
 0x173   :  { %v376_v3 = vadd.f32 %v375_v12, %v267_v40  ;;  %v4258_v12 = vld [vmem:[%s11833_s10] sm:$0xff]  ;;  %v4256_v40 = vld [vmem:[%s11832_s9 + $0x10] sm:$0xff] }
 0x174   :  { %4141 = vmatmul.msk.bf16.vlgmr.msrb.gmra.mxu2 %vm541_vm3, %v4258_v12 }
 0x175   :  { %v396_v7 = vmax.f32 %v376_v3, 0.0 }
 0x176   :  { %v358_v13 = vpop.f32.mrf.mxu2 }
 0x177   :  { %v359_v24 = vadd.f32 %v358_v13, %v292_v22  ;;  %v4259_v13 = vld [vmem:[%s11833_s10 + $0x8] sm:$0xff] }
 0x179   :  { %v405_v32 = vmax.f32 %v359_v24, 0.0 }
 0x17a   :  { %v377_v15 = vpop.f32.mrf.mxu3 }
 0x17b   :  { %v419_v39 = vpack.c.bf16 %v405_v32, %v403_v35  ;;  %v378_v1 = vadd.f32 %v377_v15, %v272_v36  ;;  %v4260_v15 = vld [vmem:[%s11833_s10 + $0x10] sm:$0xff] }
 0x17d   :  { %v398_v5 = vmax.f32 %v378_v1, 0.0 }
 0x17e   :  { %v361_v17 = vpop.f32.mrf.mxu2 }
 0x17f   :  { %v362_v21 = vadd.f32 %v361_v17, %v297_v16  ;;  %v416_v8 = vpack.c.bf16 %v398_v5, %v396_v7  ;;  %v440_v17 = vpop.permute.xlu1 %439 }
 0x181   :  { %v407_v27 = vmax.f32 %v362_v21, 0.0 }
 0x182   :  { %v380_v19 = vpop.f32.mrf.mxu3 }
 0x183   :  { %v381_v63 = vadd.f32 %v380_v19, %v277_v20  ;;  %v4261_v19 = vld [vmem:[%s11833_s10 + $0x18] sm:$0xff]  ;;  %v445_v20 = vpop.permute.xlu2 %444 }
 0x184   :  { %4142 = vmatmul.msk.bf16.gmra.mxu2 %vm541_vm3, %v4259_v13 }
 0x185   :  { %v400_v4 = vmax.f32 %v381_v63, 0.0 }
 0x186   :  { %v363_v23 = vpop.f32.mrf.mxu2 }
 0x187   :  { %v364_v25 = vadd.f32 %v363_v23, %v302_v14  ;;  %v435_v24 = vpop.permute.xlu1 %434 }
 0x189   :  { %v409_v28 = vmax.f32 %v364_v25, 0.0 }
 0x18a   :  { %v382_v30 = vpop.f32.mrf.mxu3 }
 0x18b   :  { %v421_v33 = vpack.c.bf16 %v409_v28, %v407_v27  ;;  %v383_v59 = vadd.f32 %v382_v30, %v282_v29  ;;  %v430_v27 = vpop.permute.xlu0 %429  ;;  %v4254_v30 = vld [vmem:[%s11832_s9] sm:$0xff] }
 0x18d   :  { %467 = vmatpush.bf16.msrb.mxu0 %v421_v33  ;;  %v402_v62 = vmax.f32 %v383_v59, 0.0  ;;  %v4255_v33 = vld [vmem:[%s11832_s9 + $0x8] sm:$0xff] }
 0x18f   :  { %v418_v6 = vpack.c.bf16 %v402_v62, %v400_v4  ;;  %v680_v4 = vpop.permute.xlu1 %679 }
 0x191   :  { %468 = vmatpush.bf16.msrb.mxu0 %v419_v39 }
 0x192   :  { %v385_v43 = vpop.f32.mrf.mxu3 }
 0x193   :  { %v386_v56 = vadd.f32 %v385_v43, %v287_v18  ;;  %v4706_v43 = vld [vmem:[%s11839_s16] sm:$0xff] }
 0x194   :  { %4143 = vmatmul.msk.bf16.gmra.mxu2 %vm541_vm3, %v4260_v15 }
 0x195   :  { %469 = vmatpush.bf16.msrb.mxu0 %v417_v45  ;;  %v404_v0 = vmax.f32 %v386_v56, 0.0  ;;  %v4717_v45 = vld [vmem:[%s11839_s16 + $0x8] sm:$0xff] }
 0x197   :  { %v675_v12 = vpop.permute.xlu1 %674 }
 0x199   :  { %470 = vmatpush.bf16.msrb.mxu0 %v415_v47  ;;  %v4731_v47 = vld [vmem:[%s11839_s16 + $0x18] sm:$0xff] }
 0x19a   :  { %v387_v49 = vpop.f32.mrf.mxu3 }
 0x19b   :  { %v388_v54 = vadd.f32 %v387_v49, %v292_v22 }
 0x19c   :  { %4121 = vmatmul.msk.bf16.vlgmr.msrb.gmra.mxu0 %vm324_vm1, %v4252_v48 }
 0x19d   :  { %v406_v60 = vmax.f32 %v388_v54, 0.0 }
 0x19f   :  { %v420_v2 = vpack.c.bf16 %v406_v60, %v404_v0 }
 0x1a2   :  { %v390_v50 = vpop.f32.mrf.mxu3 }
 0x1a3   :  { %v391_v52 = vadd.f32 %v390_v50, %v297_v16 }
 0x1a4   :  { %4144 = vmatmul.msk.bf16.gmra.mxu2 %vm541_vm3, %v4261_v19 }
 0x1a5   :  { %v408_v57 = vmax.f32 %v391_v52, 0.0  ;;  %v690_v52 = vpop.permute.xlu2 %689 }
 0x1aa   :  { %v392_v53 = vpop.f32.mrf.mxu3 }
 0x1ab   :  { %v393_v55 = vadd.f32 %v392_v53, %v302_v14  ;;  %v695_v53 = vpop.permute.xlu0 %694 }
 0x1ac   :  { %4122 = vmatmul.msk.bf16.gmra.mxu0 %vm324_vm1, %v4253_v51 }
 0x1ad   :  { %v410_v58 = vmax.f32 %v393_v55, 0.0  ;;  %v685_v55 = vpop.permute.xlu2 %684 }
 0x1af   :  { %v422_v61 = vpack.c.bf16 %v410_v58, %v408_v57 }
 0x1b1   :  { %486 = vmatpush.bf16.msra.mxu1 %v422_v61 }
 0x1b3   :  { %v670_v56 = vpop.permute.xlu0 %669 }
 0x1b5   :  { %487 = vmatpush.bf16.msra.mxu1 %v420_v2  ;;  %v660_v60 = vpop.permute.xlu2 %659 }
 0x1b9   :  { %488 = vmatpush.bf16.msra.mxu1 %v418_v6 }
 0x1bb   :  { %v665_v1 = vpop.permute.xlu0 %664 }
 0x1bd   :  { %489 = vmatpush.bf16.msra.mxu1 %v416_v8 }
 0x1c0   :  { %4123 = vmatmul.msk.bf16.vlgmr.msra.gmra.mxu1 %vm324_vm1, %v4252_v48 }
 0x1d0   :  { %4124 = vmatmul.msk.bf16.gmra.mxu1 %vm324_vm1, %v4253_v51 }
 0x1f7   :  { %v567_v48 = vpop.f32.mrf.mxu2 }
 0x1ff   :  { %v569_v49 = vpop.f32.mrf.mxu2 }
 0x207   :  { %v572_v50 = vpop.f32.mrf.mxu2 }
 0x20f   :  { %v574_v51 = vpop.f32.mrf.mxu2 }
 0x217   :  { %v577_v54 = vpop.f32.mrf.mxu2 }
 0x219   :  { %v472_v14 = vpop.f32.mrf.mxu0 }
 0x21a   :  { %v4687_v28 = vadd.f32 %v472_v14, %v430_v27 }
 0x21f   :  { %v579_v59 = vpop.f32.mrf.mxu2 }
 0x221   :  { %v474_v16 = vpop.f32.mrf.mxu0 }
 0x222   :  { %v4683_v25 = vadd.f32 %v474_v16, %v435_v24 }
 0x224   :  { %v509_v29 = vpack.c.bf16 %v4683_v25, %v4687_v28 }
 0x227   :  { %v582_v7 = vpop.f32.mrf.mxu2 }
 0x229   :  { %v477_v18 = vpop.f32.mrf.mxu0 }
 0x22a   :  { %v4679_v22 = vadd.f32 %v477_v18, %v440_v17 }
 0x22f   :  { %v584_v13 = vpop.f32.mrf.mxu2 }
 0x231   :  { %v479_v21 = vpop.f32.mrf.mxu0 }
 0x232   :  { %v4681_v23 = vadd.f32 %v479_v21, %v445_v20 }
 0x234   :  { %v510_v26 = vpack.c.bf16 %v4681_v23, %v4679_v22 }
 0x236   :  { %626 = vmatpush.bf16.msrb.mxu3 %v510_v26 }
 0x23a   :  { %627 = vmatpush.bf16.msrb.mxu3 %v509_v29 }
 0x23d   :  { %v491_v31 = vpop.f32.mrf.mxu1  ;;  %4161 = vmatmul.msk.bf16.vlgmr.msrb.gmra.mxu3 %vm607_vm4, %v4254_v30 }
 0x23e   :  { %v492_v41 = vadd.f32 %v491_v31, %v430_v27  ;;  %v4741_v27 = vpop.permute.xlu0 %755 }
 0x245   :  { %v493_v32 = vpop.f32.mrf.mxu1 }
 0x246   :  { %v494_v38 = vadd.f32 %v493_v32, %v435_v24  ;;  %v4739_v24 = vpop.permute.xlu1 %765 }
 0x248   :  { %v926_v42 = vpack.c.bf16 %v494_v38, %v492_v41 }
 0x24d   :  { %v496_v34 = vpop.f32.mrf.mxu1  ;;  %4162 = vmatmul.msk.bf16.gmra.mxu3 %vm607_vm4, %v4255_v33 }
 0x24e   :  { %v497_v36 = vadd.f32 %v496_v34, %v440_v17  ;;  %v4745_v31 = vpop.permute.xlu1 %760 }
 0x255   :  { %v498_v35 = vpop.f32.mrf.mxu1 }
 0x256   :  { %v499_v37 = vadd.f32 %v498_v35, %v445_v20  ;;  %v4737_v20 = vpop.permute.xlu2 %770  ;;  %v4747_v35 = vpop.permute.xlu0 %750 }
 0x258   :  { %v928_v39 = vpack.c.bf16 %v499_v37, %v497_v36 }
 0x25a   :  { %1044 = vmatpush.bf16.msra.mxu2 %v928_v39 }
 0x25d   :  { %4163 = vmatmul.msk.bf16.gmra.mxu3 %vm607_vm4, %v4256_v40 }
 0x25e   :  { %1045 = vmatpush.bf16.msra.mxu2 %v926_v42  ;;  %v4743_v30 = vpop.permute.xlu2 %745 }
 0x261   :  { %4215 = vmatmul.msk.bf16.vlgmr.msra.gmra.mxu2 %vm607_vm4, %v4706_v43 }
 0x266   :  { %v4749_v42 = vpop.permute.xlu2 %740 }
 0x26d   :  { %4164 = vmatmul.msk.bf16.gmra.mxu3 %vm607_vm4, %v4257_v44 }
 0x271   :  { %4216 = vmatmul.msk.bf16.gmra.mxu2 %vm607_vm4, %v4717_v45 }
 0x281   :  { %4217 = vmatmul.msk.bf16.gmra.mxu2 %vm607_vm4, %v4724_v46 }
 0x291   :  { %4218 = vmatmul.msk.bf16.gmra.mxu2 %vm607_vm4, %v4731_v47 }
 0x2c0   :  { %v629_v57 = vpop.f32.mrf.mxu3 }
 0x2c1   :  { %v630_v58 = vadd.f32 %v629_v57, %v567_v48 }
 0x2c3   :  { %v697_v63 = vadd.f32 %v660_v60, %v630_v58 }
 0x2c5   :  { %v705_v2 = vmax.f32 %v697_v63, 0.0  ;;  %v4262_v63 = vld [vmem:[%s11835_s12] sm:$0xff] }
 0x2c8   :  { %v631_v61 = vpop.f32.mrf.mxu3 }
 0x2c9   :  { %v632_v0 = vadd.f32 %v631_v61, %v569_v49 }
 0x2cb   :  { %v698_v62 = vadd.f32 %v665_v1, %v632_v0 }
 0x2cd   :  { %v706_v3 = vmax.f32 %v698_v62, 0.0 }
 0x2cf   :  { %v721_v5 = vpack.c.bf16 %v706_v3, %v705_v2 }
 0x2d0   :  { %v634_v6 = vpop.f32.mrf.mxu3 }
 0x2d1   :  { %v635_v8 = vadd.f32 %v634_v6, %v572_v50 }
 0x2d3   :  { %v699_v10 = vadd.f32 %v670_v56, %v635_v8 }
 0x2d5   :  { %v707_v15 = vmax.f32 %v699_v10, 0.0 }
 0x2d8   :  { %v636_v9 = vpop.f32.mrf.mxu3 }
 0x2d9   :  { %v637_v11 = vadd.f32 %v636_v9, %v574_v51  ;;  %v4751_v51 = vpop.permute.xlu1 %735 }
 0x2db   :  { %v700_v14 = vadd.f32 %v675_v12, %v637_v11 }
 0x2dd   :  { %v708_v16 = vmax.f32 %v700_v14, 0.0 }
 0x2df   :  { %v722_v17 = vpack.c.bf16 %v708_v16, %v707_v15 }
 0x2e0   :  { %v639_v18 = vpop.f32.mrf.mxu3 }
 0x2e1   :  { %v640_v37 = vadd.f32 %v639_v18, %v577_v54 }
 0x2e3   :  { %v701_v48 = vadd.f32 %v680_v4, %v640_v37 }
 0x2e4   :  { %v4735_v19 = vpop.f32.mrf.mxu2 }
 0x2e5   :  { %v709_v58 = vmax.f32 %v701_v48, 0.0  ;;  %v4812_v48 = vld [vmem:[%s11841_s18 + $0x8] sm:$0xff] }
 0x2e8   :  { %v641_v21 = vpop.f32.mrf.mxu3 }
 0x2e9   :  { %v642_v34 = vadd.f32 %v641_v21, %v579_v59  ;;  %v4753_v59 = vpop.permute.xlu0 %905 }
 0x2eb   :  { %v702_v40 = vadd.f32 %v685_v55, %v642_v34 }
 0x2ec   :  { %v1049_v26 = vpop.f32.mrf.mxu2 }
 0x2ed   :  { %v710_v56 = vmax.f32 %v702_v40, 0.0 }
 0x2ef   :  { %v723_v60 = vpack.c.bf16 %v710_v56, %v709_v58 }
 0x2f0   :  { %v644_v29 = vpop.f32.mrf.mxu3 }
 0x2f1   :  { %v645_v33 = vadd.f32 %v644_v29, %v582_v7  ;;  %v4759_v55 = vpop.permute.xlu0 %900 }
 0x2f3   :  { %v703_v38 = vadd.f32 %v690_v52, %v645_v33  ;;  %v4755_v52 = vpop.permute.xlu2 %895 }
 0x2f4   :  { %v1052_v32 = vpop.f32.mrf.mxu2 }
 0x2f5   :  { %v711_v49 = vmax.f32 %v703_v38, 0.0 }
 0x2f8   :  { %v646_v36 = vpop.f32.mrf.mxu3 }
 0x2f9   :  { %v647_v39 = vadd.f32 %v646_v36, %v584_v13  ;;  %v4769_v2 = vpop.permute.xlu0 %959 }
 0x2fb   :  { %v704_v41 = vadd.f32 %v695_v53, %v647_v39  ;;  %v4757_v53 = vpop.permute.xlu1 %910  ;;  %v4764_v0 = vpop.permute.xlu2 %974 }
 0x2fc   :  { %v1054_v44 = vpop.f32.mrf.mxu2 }
 0x2fd   :  { %v712_v50 = vmax.f32 %v704_v41, 0.0 }
 0x2ff   :  { %v724_v57 = vpack.c.bf16 %v712_v50, %v711_v49  ;;  %v4819_v49 = vld [vmem:[%s11841_s18 + $0x10] sm:$0xff]  ;;  %v4826_v50 = vld [vmem:[%s11841_s18 + $0x18] sm:$0xff] }
 0x301   :  { %809 = vmatpush.bf16.msra.mxu0 %v724_v57  ;;  %v4782_v13 = vpop.permute.xlu0 %954 }
 0x302   :  { %v1055_v14 = vadd.f32 %v1054_v44, %v4782_v13 }
 0x303   :  { %v4767_v1 = vpop.permute.xlu1 %969  ;;  %v4771_v3 = vpop.permute.xlu2 %949 }
 0x304   :  { %v1057_v54 = vpop.f32.mrf.mxu2  ;;  %v1074_v33 = vmax.f32 %v1055_v14, 0.0 }
 0x305   :  { %810 = vmatpush.bf16.msra.mxu0 %v723_v60  ;;  %v1058_v10 = vadd.f32 %v1057_v54, %v4769_v2 }
 0x307   :  { %v1076_v18 = vmax.f32 %v1058_v10, 0.0 }
 0x309   :  { %811 = vmatpush.bf16.msra.mxu0 %v722_v17  ;;  %v1053_v17 = vadd.f32 %v1052_v32, %v4771_v3  ;;  %v4264_v32 = vld [vmem:[%s11835_s12 + $0x10] sm:$0xff] }
 0x30b   :  { %v4774_v6 = vpop.permute.xlu1 %964  ;;  %v4787_v21 = vpop.permute.xlu2 %944  ;;  %v1072_v38 = vmax.f32 %v1053_v17, 0.0 }
 0x30c   :  { %v1059_v61 = vpop.f32.mrf.mxu2  ;;  %v1050_v29 = vadd.f32 %v1049_v26, %v4787_v21  ;;  %v4265_v26 = vld [vmem:[%s11835_s12 + $0x18] sm:$0xff] }
 0x30d   :  { %812 = vmatpush.bf16.msra.mxu0 %v721_v5  ;;  %v4263_v5 = vld [vmem:[%s11835_s12 + $0x8] sm:$0xff]  ;;  %v1060_v8 = vadd.f32 %v1059_v61, %v4774_v6  ;;  %v1094_v40 = vpack.c.bf16 %v1074_v33, %v1072_v38 }
 0x30e   :  { %v1070_v39 = vmax.f32 %v1050_v29, 0.0 }
 0x30f   :  { %v1078_v15 = vmax.f32 %v1060_v8, 0.0 }
 0x310   :  { %4181 = vmatmul.msk.bf16.vlgmr.msra.gmra.mxu0 %vm324_vm1, %v4262_v63 }
 0x311   :  { %v1096_v34 = vpack.c.bf16 %v1078_v15, %v1076_v18 }
 0x313   :  { %v4790_v36 = vpop.permute.xlu1 %939 }
 0x314   :  { %v1062_v62 = vpop.f32.mrf.mxu2  ;;  %v1048_v37 = vadd.f32 %v4735_v19, %v4790_v36  ;;  %v4805_v19 = vld [vmem:[%s11841_s18] sm:$0xff] }
 0x315   :  { %v1063_v4 = vadd.f32 %v1062_v62, %v4767_v1 }
 0x316   :  { %v1068_v41 = vmax.f32 %v1048_v37, 0.0 }
 0x317   :  { %v1080_v11 = vmax.f32 %v1063_v4, 0.0 }
 0x318   :  { %v1092_v44 = vpack.c.bf16 %v1070_v39, %v1068_v41 }
 0x31c   :  { %v1064_v7 = vpop.f32.mrf.mxu2 }
 0x31d   :  { %v1065_v9 = vadd.f32 %v1064_v7, %v4764_v0 }
 0x31f   :  { %v1082_v12 = vmax.f32 %v1065_v9, 0.0 }
 0x320   :  { %4182 = vmatmul.msk.bf16.gmra.mxu0 %vm324_vm1, %v4263_v5 }
 0x321   :  { %v1098_v16 = vpack.c.bf16 %v1082_v12, %v1080_v11 }
 0x323   :  { %1212 = vmatpush.bf16.msrb.mxu0 %v1098_v16 }
 0x327   :  { %1213 = vmatpush.bf16.msrb.mxu0 %v1096_v34 }
 0x32b   :  { %1214 = vmatpush.bf16.msrb.mxu0 %v1094_v40 }
 0x32f   :  { %1215 = vmatpush.bf16.msrb.mxu0 %v1092_v44 }
 0x330   :  { %4183 = vmatmul.msk.bf16.gmra.mxu0 %vm324_vm1, %v4264_v32 }
 0x340   :  { %4184 = vmatmul.msk.bf16.gmra.mxu0 %vm324_vm1, %v4265_v26 }
 0x350   :  { %4239 = vmatmul.msk.bf16.vlgmr.msrb.gmra.mxu0 %vm324_vm1, %v4805_v19 }
 0x360   :  { %4240 = vmatmul.msk.bf16.gmra.mxu0 %vm324_vm1, %v4812_v48 }
 0x370   :  { %4241 = vmatmul.msk.bf16.gmra.mxu0 %vm324_vm1, %v4819_v49 }
 0x380   :  { %4242 = vmatmul.msk.bf16.gmra.mxu0 %vm324_vm1, %v4826_v50 }
 0x38d   :  { %v814_v56 = vpop.f32.mrf.mxu0 }
 0x395   :  { %v816_v57 = vpop.f32.mrf.mxu0 }
 0x396   :  { %v817_v17 = vadd.f32 %v816_v57, %v4749_v42 }
 0x39d   :  { %v819_v58 = vpop.f32.mrf.mxu0 }
 0x39e   :  { %v820_v15 = vadd.f32 %v819_v58, %v4743_v30  ;;  %v4267_v30 = vld [vmem:[%s11837_s14 + $0x8] sm:$0xff] }
 0x3a0   :  { %v836_v29 = vmax.f32 %v820_v15, 0.0 }
 0x3a5   :  { %v821_v60 = vpop.f32.mrf.mxu0 }
 0x3a6   :  { %v822_v11 = vadd.f32 %v821_v60, %v4747_v35  ;;  %v4266_v35 = vld [vmem:[%s11837_s14] sm:$0xff] }
 0x3ad   :  { %v824_v54 = vpop.f32.mrf.mxu0 }
 0x3ae   :  { %v825_v8 = vadd.f32 %v824_v54, %v4741_v27 }
 0x3b0   :  { %v838_v16 = vmax.f32 %v825_v8, 0.0 }
 0x3b5   :  { %v826_v61 = vpop.f32.mrf.mxu0 }
 0x3b6   :  { %v827_v7 = vadd.f32 %v826_v61, %v4745_v31  ;;  %v815_v31 = vadd.f32 %v814_v56, %v4751_v51 }
 0x3b8   :  { %v839_v12 = vmax.f32 %v827_v7, 0.0  ;;  %v834_v33 = vmax.f32 %v815_v31, 0.0  ;;  %v4878_v31 = vpop.permute.xlu2 %1119 }
 0x3ba   :  { %v848_v18 = vpack.c.bf16 %v839_v12, %v838_v16 }
 0x3bd   :  { %v829_v63 = vpop.f32.mrf.mxu0 }
 0x3be   :  { %v830_v62 = vadd.f32 %v829_v63, %v4739_v24  ;;  %v837_v24 = vmax.f32 %v822_v11, 0.0 }
 0x3c0   :  { %v840_v9 = vmax.f32 %v830_v62, 0.0  ;;  %v847_v27 = vpack.c.bf16 %v837_v24, %v836_v29  ;;  %v1110_v24 = vpop.permute.xlu0 %1109 }
 0x3c5   :  { %v831_v4 = vpop.f32.mrf.mxu0 }
 0x3c6   :  { %v832_v5 = vadd.f32 %v831_v4, %v4737_v20  ;;  %v835_v20 = vmax.f32 %v817_v17, 0.0  ;;  %v1115_v17 = vpop.permute.xlu1 %1114 }
 0x3c8   :  { %v841_v10 = vmax.f32 %v832_v5, 0.0  ;;  %v846_v34 = vpack.c.bf16 %v835_v20, %v834_v33  ;;  %v4882_v29 = vpop.permute.xlu0 %1124 }
 0x3ca   :  { %v849_v14 = vpack.c.bf16 %v841_v10, %v840_v9 }
 0x3cc   :  { %870 = vmatpush.bf16.msrb.mxu1 %v849_v14 }
 0x3d0   :  { %871 = vmatpush.bf16.msrb.mxu1 %v848_v18 }
 0x3d4   :  { %872 = vmatpush.bf16.msrb.mxu1 %v847_v27 }
 0x3d8   :  { %873 = vmatpush.bf16.msrb.mxu1 %v846_v34  ;;  %v4890_v34 = vpop.permute.xlu2 %1134 }
 0x3db   :  { %4193 = vmatmul.msk.bf16.vlgmr.msrb.gmra.mxu1 %vm324_vm1, %v4266_v35 }
 0x3eb   :  { %4194 = vmatmul.msk.bf16.gmra.mxu1 %vm324_vm1, %v4267_v30 }
 0x458   :  { %v875_v42 = vpop.f32.mrf.mxu1 }
 0x459   :  { %v885_v32 = vadd.f32 %v875_v42, %v4687_v28 }
 0x45b   :  { %v913_v58 = vadd.f32 %v4755_v52, %v885_v32 }
 0x460   :  { %v877_v51 = vpop.f32.mrf.mxu1 }
 0x461   :  { %v886_v40 = vadd.f32 %v877_v51, %v4683_v25 }
 0x463   :  { %v914_v56 = vadd.f32 %v4759_v55, %v886_v40 }
 0x465   :  { %v925_v60 = vpack.c.bf16 %v914_v56, %v913_v58 }
 0x468   :  { %v880_v37 = vpop.f32.mrf.mxu1 }
 0x469   :  { %v887_v38 = vadd.f32 %v880_v37, %v4679_v22 }
 0x46b   :  { %v915_v44 = vadd.f32 %v4753_v59, %v887_v38  ;;  %v4898_v38 = vpop.permute.xlu0 %1139 }
 0x470   :  { %v882_v39 = vpop.f32.mrf.mxu1 }
 0x471   :  { %v888_v41 = vadd.f32 %v882_v39, %v4681_v23 }
 0x473   :  { %v916_v26 = vadd.f32 %v4757_v53, %v888_v41 }
 0x475   :  { %v927_v57 = vpack.c.bf16 %v916_v26, %v915_v44 }
 0x477   :  { %1015 = vmatpush.bf16.msra.mxu1 %v927_v57 }
 0x47b   :  { %1016 = vmatpush.bf16.msra.mxu1 %v925_v60 }
 0x47e   :  { %4211 = vmatmul.msk.bf16.vlgmr.msra.gmra.mxu1 %vm607_vm4, %v4706_v43 }
 0x48e   :  { %4212 = vmatmul.msk.bf16.gmra.mxu1 %vm607_vm4, %v4717_v45 }
 0x49e   :  { %4213 = vmatmul.msk.bf16.gmra.mxu1 %vm607_vm4, %v4724_v46 }
 0x4ae   :  { %4214 = vmatmul.msk.bf16.gmra.mxu1 %vm607_vm4, %v4731_v47 }
 0x4fb   :  { %v1018_v22 = vpop.f32.mrf.mxu1 }
 0x503   :  { %v1020_v23 = vpop.f32.mrf.mxu1 }
 0x504   :  { %v1021_v8 = vadd.f32 %v1020_v23, %v4787_v21 }
 0x50b   :  { %v1023_v25 = vpop.f32.mrf.mxu1 }
 0x50c   :  { %v1024_v7 = vadd.f32 %v1023_v25, %v4771_v3  ;;  %v1217_v3 = vpop.f32.mrf.mxu0 }
 0x50d   :  { %v1218_v35 = vadd.f32 %v1217_v3, %v1110_v24 }
 0x50e   :  { %v1071_v10 = vmax.f32 %v1024_v7, 0.0 }
 0x513   :  { %v1025_v28 = vpop.f32.mrf.mxu1 }
 0x514   :  { %v1026_v47 = vadd.f32 %v1025_v28, %v4782_v13  ;;  %v1219_v13 = vpop.f32.mrf.mxu0 }
 0x515   :  { %v1220_v30 = vadd.f32 %v1219_v13, %v1115_v17 }
 0x51b   :  { %v1028_v59 = vpop.f32.mrf.mxu1 }
 0x51c   :  { %v1029_v61 = vadd.f32 %v1028_v59, %v4769_v2  ;;  %v1222_v21 = vpop.f32.mrf.mxu0 }
 0x51d   :  { %v4893_v42 = vadd.f32 %v1222_v21, %v4878_v31 }
 0x51e   :  { %v1075_v5 = vmax.f32 %v1029_v61, 0.0 }
 0x523   :  { %v1030_v52 = vpop.f32.mrf.mxu1 }
 0x524   :  { %v1031_v43 = vadd.f32 %v1030_v52, %v4774_v6  ;;  %v1019_v6 = vadd.f32 %v1018_v22, %v4790_v36  ;;  %v1224_v36 = vpop.f32.mrf.mxu0 }
 0x525   :  { %v4901_v39 = vadd.f32 %v1224_v36, %v4882_v29 }
 0x526   :  { %v1077_v62 = vmax.f32 %v1031_v43, 0.0  ;;  %v1067_v11 = vmax.f32 %v1019_v6, 0.0 }
 0x528   :  { %v1095_v9 = vpack.c.bf16 %v1077_v62, %v1075_v5 }
 0x52b   :  { %v1033_v53 = vpop.f32.mrf.mxu1 }
 0x52c   :  { %v1034_v55 = vadd.f32 %v1033_v53, %v4767_v1  ;;  %v1073_v1 = vmax.f32 %v1026_v47, 0.0  ;;  %v1227_v14 = vpop.f32.mrf.mxu0 }
 0x52e   :  { %v1079_v46 = vmax.f32 %v1034_v55, 0.0  ;;  %v1093_v2 = vpack.c.bf16 %v1073_v1, %v1071_v10 }
 0x533   :  { %v1035_v54 = vpop.f32.mrf.mxu1 }
 0x534   :  { %v1036_v45 = vadd.f32 %v1035_v54, %v4764_v0  ;;  %v1069_v0 = vmax.f32 %v1021_v8, 0.0  ;;  %v1229_v15 = vpop.f32.mrf.mxu0 }
 0x535   :  { %v4907_v41 = vadd.f32 %v1229_v15, %v4890_v34 }
 0x536   :  { %v1081_v63 = vmax.f32 %v1036_v45, 0.0  ;;  %v1091_v12 = vpack.c.bf16 %v1069_v0, %v1067_v11 }
 0x538   :  { %v1097_v4 = vpack.c.bf16 %v1081_v63, %v1079_v46 }
 0x53a   :  { %1183 = vmatpush.bf16.msra.mxu3 %v1097_v4 }
 0x53c   :  { %v1232_v18 = vpop.f32.mrf.mxu0 }
 0x53d   :  { %v4911_v44 = vadd.f32 %v1232_v18, %v4898_v38 }
 0x53e   :  { %1184 = vmatpush.bf16.msra.mxu3 %v1095_v9 }
 0x542   :  { %1185 = vmatpush.bf16.msra.mxu3 %v1093_v2 }
 0x546   :  { %1186 = vmatpush.bf16.msra.mxu3 %v1091_v12 }
 0x549   :  { %4235 = vmatmul.msk.bf16.vlgmr.msra.gmra.mxu3 %vm324_vm1, %v4805_v19 }
 0x559   :  { %4236 = vmatmul.msk.bf16.gmra.mxu3 %vm324_vm1, %v4812_v48  ;;  %v4880_v48 = vpop.permute.xlu1 %1129 }
 0x55a   :  { %v4904_v40 = vadd.f32 %v1227_v14, %v4880_v48 }
 0x561   :  { %v4896_v37 = vpop.permute.xlu1 %1144 }
 0x569   :  { %4237 = vmatmul.msk.bf16.gmra.mxu3 %vm324_vm1, %v4819_v49  ;;  %v1237_v49 = vlaneseq }
 0x56b   :  { %v4888_v33 = vshrl.u32 %v1237_v49, 7 }
 0x56d   :  { %v4921_v58 = vadd.s32 8, %v4888_v33  ;;  %vm11850_vm5 = vcmp.lt.s32.totalorder %v4888_v33, 1  ;;  %vm11851_vm6 = vcmp.lt.s32.totalorder %v4888_v33, 2  ;;  %vm11852_vm7 = vcmp.lt.s32.totalorder %v4888_v33, 3 }
 0x56e   :  { %vm11853_vm8 = vcmp.lt.s32.totalorder %v4888_v33, 4  ;;  %vm11854_vm9 = vcmp.lt.s32.totalorder %v4888_v33, 5  ;;  %vm11855_vm10 = vcmp.lt.s32.totalorder %v4888_v33, 6  ;;  %vm11856_vm11 = vcmp.lt.s32.totalorder %v4888_v33, 7 }
 0x579   :  { %4238 = vmatmul.msk.bf16.gmra.mxu3 %vm324_vm1, %v4826_v50  ;;  %v1234_v50 = vpop.f32.mrf.mxu0 }
 0x57a   :  { %v4914_v26 = vadd.f32 %v1234_v50, %v4896_v37 }
 0x5cc   :  { %v1188_v16 = vpop.f32.mrf.mxu3 }
 0x5cd   :  { %v4884_v20 = vadd.f32 %v1188_v16, %v1110_v24 }
 0x5cf   :  { %v1275_v51 = vrot.slane %v4884_v20, 1  ;;  %v1276_v32 = vrot.slane %v4884_v20, 2  ;;  %v4917_v56 = vmax.f32 %v4884_v20, %v1218_v35  ;;  %v1277_v57 = vrot.slane %v4884_v20, 3 }
 0x5d0   :  { %v1278_v60 = vrot.slane %v4884_v20, 4  ;;  %v1279_v22 = vrot.slane %v4884_v20, 5  ;;  %v1280_v25 = vrot.slane %v4884_v20, 6  ;;  %v1281_v59 = vrot.slane %v4884_v20, 7 }
 0x5d1   :  { %v4929_v23 = vperm.slane %v1275_v51, 0  ;;  %v4934_v28 = vperm.slane %v1276_v32, 0  ;;  %v1282_v52 = vrot.slane %v4917_v56, 1  ;;  %v4939_v53 = vperm.slane %v1277_v57, 0 }
 0x5d2   :  { %v1283_v55 = vrot.slane %v4917_v56, 2  ;;  %v1284_v54 = vrot.slane %v4917_v56, 3  ;;  %v1285_v43 = vrot.slane %v4917_v56, 4  ;;  %v4945_v45 = vperm.slane %v1278_v60, 0 }
 0x5d3   :  { %v1286_v61 = vrot.slane %v4917_v56, 5  ;;  %v1287_v46 = vrot.slane %v4917_v56, 6  ;;  %v4949_v63 = vperm.slane %v1279_v22, 0  ;;  %vm1355_vm13 = vcmp.eq.f32.partialorder %v4929_v23, %v4884_v20 }
 0x5d4   :  { %v1190_v19 = vpop.f32.mrf.mxu3  ;;  %v1288_v4 = vrot.slane %v4917_v56, 7  ;;  %v4958_v7 = vperm.slane %v1280_v25, 0  ;;  %vm1357_vm14 = vcmp.eq.f32.partialorder %v4934_v28, %v4884_v20  ;;  %v4964_v5 = vperm.slane %v4884_v20, 0  ;;  %vm4985_vm3 = vmand %vm1355_vm13, %vm11850_vm5 }
 0x5d5   :  { %v4953_v47 = vadd.f32 %v1190_v19, %v1115_v17  ;;  %v4966_v8 = vperm.slane %v1281_v59, 0  ;;  %vm1359_vm0 = vcmp.eq.f32.partialorder %v4939_v53, %v4884_v20  ;;  %v4972_v1 = vperm.slane %v4917_v56, 0  ;;  %vm5002_vm1 = vmand %vm1357_vm14, %vm11851_vm6 }
 0x5d6   :  { %v4974_v9 = vperm.slane %v1282_v52, 0  ;;  %v4976_v6 = vperm.slane %v1283_v55, 0  ;;  %vm1361_vm2 = vcmp.eq.f32.partialorder %v4945_v45, %v4884_v20  ;;  %v4989_v0 = vperm.slane %v1284_v54, 0  ;;  %vm5021_vm14 = vmand %vm1359_vm0, %vm11852_vm7 }
 0x5d7   :  { %v4991_v2 = vperm.slane %v1285_v43, 0  ;;  %v4993_v11 = vperm.slane %v1286_v61, 0  ;;  %vm1363_vm4 = vcmp.eq.f32.partialorder %v4949_v63, %v4884_v20  ;;  %v5007_v3 = vmax.f32 %v4953_v47, %v1220_v30  ;;  %vm5038_vm0 = vmand %vm1361_vm2, %vm11853_vm8 }
 0x5d8   :  { %v5010_v13 = vperm.slane %v1287_v46, 0  ;;  %v5012_v21 = vperm.slane %v1288_v4, 0  ;;  %vm1365_vm5 = vcmp.eq.f32.partialorder %v4958_v7, %v4884_v20  ;;  %vm1325_vm15 = vcmp.gt.f32.partialorder %v4934_v28, %v4884_v20  ;;  %vm5056_vm2 = vmand %vm1363_vm4, %vm11854_vm9 }
 0x5d9   :  { %vm1372_vm12 = vcmp.eq.f32.partialorder %v4974_v9, %v4917_v56  ;;  %vm5073_vm4 = vmand %vm1365_vm5, %vm11855_vm10  ;;  %vm11881_vm6 = vcmp.eq.f32.partialorder %v4966_v8, %v4884_v20  ;;  %vm11884_vm5 = vcmp.gt.f32.partialorder %v4934_v28, %v4917_v56  ;;  %vm1376_vm9 = vcmp.eq.f32.partialorder %v4989_v0, %v4917_v56 }
 0x5da   :  { %vm5088_vm8 = vmand %vm11881_vm6, %vm11856_vm11  ;;  %v1518_v24 = vsel %vm11884_vm5, %v4934_v28, inf  ;;  %vm1374_vm6 = vcmp.eq.f32.partialorder %v4976_v6, %v4917_v56  ;;  %vm11885_vm11 = vcmp.lt.s32.totalorder %v4921_v58, 9  ;;  %vm11893_vm7 = vcmp.gt.f32.partialorder %v4964_v5, %v4917_v56 }
 0x5db   :  { %vm5110_vm5 = vmand %vm1372_vm12, %vm11885_vm11  ;;  %v1514_v35 = vsel %vm11893_vm7, %v4964_v5, inf  ;;  %vm11897_vm13 = vcmp.lt.s32.totalorder %v4921_v58, 10  ;;  %vm11902_vm7 = vcmp.lt.s32.totalorder %v4921_v58, 11  ;;  %vm11905_vm12 = vcmp.gt.f32.partialorder %v4945_v45, %v4884_v20 }
 0x5dc   :  { %v4886_v27 = vpop.f32.mrf.mxu3  ;;  %vm5119_vm10 = vmor %vm1325_vm15, %vm5002_vm1  ;;  %vm11890_vm15 = vcmp.gt.f32.partialorder %v4929_v23, %v4884_v20  ;;  %v1560_v32 = vmin.f32 %v1514_v35, %v1518_v24  ;;  %v11934_v19 = vmov 0  ;;  %v11961_v22 = vmov 0 }
 0x5dd   :  { %vm5138_vm1 = vmor %vm11890_vm15, %vm4985_vm3  ;;  %v5148_v30 = vadd.f32 %v4886_v27, %v4878_v31  ;;  %vm11894_vm3 = vcmp.gt.f32.partialorder %v4939_v53, %v4884_v20  ;;  %v1517_v57 = vsel %vm5119_vm10, %v4934_v28, inf  ;;  %v1678_v18 = vrot.slane %v4953_v47, 6 }
 0x5de   :  { %vm5159_vm15 = vmor %vm11894_vm3, %vm5021_vm14  ;;  %vm11900_vm14 = vcmp.gt.f32.partialorder %v4929_v23, %v4917_v56  ;;  %vm11901_vm3 = vcmp.gt.f32.partialorder %v4939_v53, %v4917_v56  ;;  %v1515_v52 = vsel %vm5138_vm1, %v4929_v23, inf  ;;  %vm11911_vm1 = vcmp.eq.f32.partialorder %v4991_v2, %v4917_v56 }
 0x5df   :  { %vm5170_vm11 = vmand %vm1374_vm6, %vm11897_vm13  ;;  %v1516_v27 = vsel %vm11900_vm14, %v4929_v23, inf  ;;  %v1520_v60 = vsel %vm11901_vm3, %v4939_v53, inf  ;;  %vm1380_vm14 = vcmp.eq.f32.partialorder %v4993_v11, %v4917_v56  ;;  %v1519_v55 = vsel %vm5159_vm15, %v4939_v53, inf }
 0x5e0   :  { %vm5198_vm10 = vmand %vm1376_vm9, %vm11902_vm7  ;;  %vm11908_vm9 = vcmp.gt.f32.partialorder %v4964_v5, %v4884_v20  ;;  %vm11914_vm15 = vcmp.gt.f32.partialorder %v4949_v63, %v4884_v20  ;;  %v1561_v4 = vmin.f32 %v1516_v27, %v1520_v60  ;;  %v5252_v12 = vmax.f32 %v5148_v30, %v4893_v42 }
 0x5e1   :  { %vm5210_vm13 = vmor %vm11905_vm12, %vm5038_vm0  ;;  %v1513_v59 = vsel %vm11908_vm9, %v4964_v5, inf  ;;  %vm11909_vm0 = vcmp.gt.f32.partialorder %v4945_v45, %v4917_v56  ;;  %vm11910_vm9 = vcmp.lt.s32.totalorder %v4921_v58, 12  ;;  %vm11920_vm7 = vcmp.lt.s32.totalorder %v4921_v58, 13 }
 0x5e2   :  { %v1522_v54 = vsel %vm11909_vm0, %v4945_v45, inf  ;;  %vm5237_vm6 = vmand %vm11911_vm1, %vm11910_vm9  ;;  %v1545_v46 = vmin.f32 %v1513_v59, %v1517_v57  ;;  %v1546_v14 = vmin.f32 %v1515_v52, %v1519_v55  ;;  %vm11927_vm1 = vcmp.gt.f32.partialorder %v4972_v1, %v4884_v20 }
 0x5e3   :  { %vm5246_vm0 = vmor %vm11914_vm15, %vm5056_vm2  ;;  %v1562_v10 = vmin.f32 %v1560_v32, %v1522_v54  ;;  %vm11917_vm15 = vcmp.gt.f32.partialorder %v4958_v7, %v4884_v20  ;;  %v1521_v16 = vsel %vm5210_vm13, %v4945_v45, inf  ;;  %vm11931_vm9 = vcmp.gt.f32.partialorder %v4958_v7, %v4917_v56 }
 0x5e4   :  { %v4955_v62 = vpop.f32.mrf.mxu3  ;;  %vm5269_vm12 = vmor %vm11917_vm15, %vm5073_vm4  ;;  %vm11923_vm15 = vcmp.gt.f32.partialorder %v4966_v8, %v4884_v20  ;;  %v1526_v24 = vsel %vm11931_vm9, %v4958_v7, inf  ;;  %vm11933_vm2 = vcmp.gt.f32.partialorder %v4974_v9, %v4884_v20  ;;  %v1547_v50 = vmin.f32 %v1545_v46, %v1521_v16 }
 0x5e5   :  { %v5256_v36 = vadd.f32 %v4955_v62, %v4882_v29  ;;  %vm5286_vm4 = vmand %vm1380_vm14, %vm11920_vm7  ;;  %vm11926_vm7 = vcmp.eq.f32.partialorder %v4972_v1, %v4884_v20  ;;  %v1564_v51 = vmin.f32 %v1562_v10, %v1526_v24  ;;  %vm11940_vm9 = vcmp.gt.f32.partialorder %v4974_v9, %v4917_v56 }
 0x5e6   :  { %vm5295_vm3 = vmor %vm11923_vm15, %vm5088_vm8  ;;  %vm11930_vm15 = vcmp.gt.f32.partialorder %v4949_v63, %v4917_v56  ;;  %v1523_v60 = vsel %vm5246_vm0, %v4949_v63, inf  ;;  %vm11948_vm0 = vcmp.gt.f32.partialorder %v4972_v1, %v4917_v56  ;;  %v1525_v55 = vsel %vm5269_vm12, %v4958_v7, inf }
 0x5e7   :  { %vm5311_vm8 = vmor %vm11927_vm1, %vm11926_vm7  ;;  %v1524_v17 = vsel %vm11930_vm15, %v4949_v63, inf  ;;  %vm11932_vm7 = vcmp.eq.f32.partialorder %v4974_v9, %v4884_v20  ;;  %v5342_v32 = vmax.f32 %v5256_v36, %v4901_v39  ;;  %vm11937_vm1 = vcmp.eq.f32.partialorder %v5010_v13, %v4917_v56 }
 0x5e8   :  { %vm5334_vm13 = vmor %vm11933_vm2, %vm11932_vm7  ;;  %v5338_v35 = vmin.f32 %v1561_v4, %v1524_v17  ;;  %vm11936_vm7 = vcmp.lt.s32.totalorder %v4921_v58, 14  ;;  %vm11952_vm2 = vcmp.eq.f32.partialorder %v4989_v0, %v4884_v20  ;;  %v1549_v54 = vmin.f32 %v1547_v50, %v1525_v55 }
 0x5e9   :  { %v11935_v19 = vsel %vm5334_vm13, 4294967295, %v11934_v19  ;;  %vm5355_vm14 = vmand %vm11937_vm1, %vm11936_vm7  ;;  %vm11943_vm1 = vcmp.eq.f32.partialorder %v4976_v6, %v4884_v20  ;;  %vm11944_vm7 = vcmp.gt.f32.partialorder %v4976_v6, %v4884_v20  ;;  %v11957_v10 = vmov 0 }
 0x5ea   :  { %vm5364_vm13 = vmor %vm11940_vm9, %vm5110_vm5  ;;  %vm11947_vm5 = vcmp.gt.f32.partialorder %v4966_v8, %v4917_v56  ;;  %vm11949_vm9 = vcmp.gt.f32.partialorder %v4976_v6, %v4917_v56  ;;  %v1527_v42 = vsel %vm5295_vm3, %v4966_v8, inf  ;;  %vm11960_vm3 = vcmp.eq.f32.partialorder %v5012_v21, %v4917_v56 }
 0x5eb   :  { %vm5381_vm15 = vmor %vm11944_vm7, %vm11943_vm1  ;;  %v1528_v59 = vsel %vm11947_vm5, %v4966_v8, inf  ;;  %vm11964_vm12 = vcmp.gt.f32.partialorder %v4991_v2, %v4884_v20  ;;  %v1529_v16 = vsel %vm5311_vm8, %v4972_v1, inf  ;;  %vm11971_vm8 = vcmp.gt.f32.partialorder %v4993_v11, %v4884_v20 }
 0x5ec   :  { %v5123_v49 = vpop.f32.mrf.mxu3  ;;  %vm5398_vm1 = vmor %vm11949_vm9, %vm5170_vm11  ;;  %vm11953_vm11 = vcmp.gt.f32.partialorder %v4989_v0, %v4884_v20  ;;  %v1565_v61 = vmin.f32 %v5338_v35, %v1528_v59  ;;  %v1551_v15 = vmin.f32 %v1549_v54, %v1529_v16  ;;  %v1673_v17 = vrot.slane %v4953_v47, 1 }
 0x5ed   :  { %v5373_v25 = vadd.f32 %v5123_v49, %v4880_v48  ;;  %v1530_v48 = vsel %vm11948_vm0, %v4972_v1, inf  ;;  %v1548_v49 = vmin.f32 %v1546_v14, %v1523_v60  ;;  %vm5417_vm9 = vmor %vm11953_vm11, %vm11952_vm2  ;;  %vm11956_vm0 = vcmp.gt.f32.partialorder %v4989_v0, %v4917_v56 }
 0x5ee   :  { %v1566_v46 = vmin.f32 %v1564_v51, %v1530_v48  ;;  %vm5432_vm5 = vmor %vm11956_vm0, %vm5198_vm10  ;;  %vm11959_vm0 = vcmp.lt.s32.totalorder %v4921_v58, 15  ;;  %vm11963_vm2 = vcmp.eq.f32.partialorder %v4991_v2, %v4884_v20  ;;  %v1675_v29 = vrot.slane %v4953_v47, 3 }
 0x5ef   :  { %v11958_v10 = vsel %vm5432_vm5, 4294967295, %v11957_v10  ;;  %vm5456_vm7 = vmand %vm11960_vm3, %vm11959_vm0  ;;  %v1550_v62 = vmin.f32 %v1548_v49, %v1527_v42  ;;  %vm11986_vm3 = vcmp.lt.f32.partialorder %v4884_v20, %v4972_v1  ;;  %v1676_v39 = vrot.slane %v4953_v47, 4 }
 0x5f0   :  { %v11962_v22 = vsel %vm5456_vm7, 4294967295, %v11961_v22  ;;  %vm5466_vm11 = vmor %vm11964_vm12, %vm11963_vm2  ;;  %vm11967_vm7 = vcmp.gt.f32.partialorder %v4991_v2, %v4917_v56  ;;  %vm11974_vm12 = vcmp.gt.f32.partialorder %v4993_v11, %v4917_v56  ;;  %vm11983_vm2 = vcmp.gt.f32.partialorder %v5012_v21, %v4884_v20 }
 0x5f1   :  { %vm5481_vm5 = vmor %vm11967_vm7, %vm5237_vm6  ;;  %vm11970_vm7 = vcmp.eq.f32.partialorder %v4993_v11, %v4884_v20  ;;  %v1677_v48 = vrot.slane %v4953_v47, 5  ;;  %v1533_v55 = vsel %vm5381_vm15, %v4976_v6, inf  ;;  %vm11994_vm15 = vcmp.gt.f32.partialorder %v5010_v13, %v4917_v56 }
 0x5f2   :  { %vm5504_vm0 = vmor %vm11971_vm8, %vm11970_vm7  ;;  %vm11977_vm7 = vnez %v11935_v19  ;;  %v1534_v16 = vsel %vm5398_vm1, %v4976_v6, inf  ;;  %v1680_v52 = vrot.slane %v5007_v3, 1  ;;  %vm12007_vm1 = vcmp.le.f32.partialorder %v4939_v53, %v4884_v20 }
 0x5f3   :  { %vm5520_vm6 = vmor %vm11974_vm12, %vm5286_vm4  ;;  %v1531_v35 = vsel %vm11977_vm7, %v4974_v9, inf  ;;  %vm11978_vm4 = vcmp.eq.f32.partialorder %v5010_v13, %v4884_v20  ;;  %vm11979_vm12 = vcmp.gt.f32.partialorder %v5010_v13, %v4884_v20  ;;  %vm11982_vm7 = vcmp.eq.f32.partialorder %v5012_v21, %v4884_v20 }
 0x5f4   :  { %v1200_v27 = vpop.f32.mrf.mxu3  ;;  %vm5539_vm10 = vmor %vm11979_vm12, %vm11978_vm4  ;;  %v1552_v60 = vmin.f32 %v1550_v62, %v1531_v35  ;;  %v11995_v62 = vmov 0  ;;  %v1553_v35 = vmin.f32 %v1551_v15, %v1533_v55  ;;  %v1568_v55 = vmin.f32 %v1566_v46, %v1534_v16 }
 0x5f5   :  { %v5425_v4 = vadd.f32 %v1200_v27, %v4890_v34  ;;  %v5447_v34 = vmax.f32 %v5373_v25, %v4904_v40  ;;  %vm5549_vm8 = vmor %vm11983_vm2, %vm11982_vm7  ;;  %v1532_v27 = vsel %vm5364_vm13, %v4974_v9, inf  ;;  %vm11987_vm2 = vcmp.le.f32.partialorder %v4964_v5, %v4884_v20 }
 0x5f6   :  { %vm5566_vm7 = vmand %vm11987_vm2, %vm11986_vm3  ;;  %v1567_v54 = vmin.f32 %v1565_v61, %v1532_v27  ;;  %vm11990_vm3 = vcmp.lt.f32.partialorder %v4884_v20, %v4974_v9  ;;  %vm11991_vm2 = vcmp.le.f32.partialorder %v4929_v23, %v4884_v20  ;;  %v1679_v61 = vrot.slane %v4953_v47, 7 }
 0x5f7   :  { %v5513_v24 = vmax.f32 %v5425_v4, %v4907_v41  ;;  %v1674_v41 = vrot.slane %v4953_v47, 2  ;;  %vm5585_vm4 = vmand %vm11991_vm2, %vm11990_vm3  ;;  %vm11997_vm13 = vcmp.lt.f32.partialorder %v4917_v56, %v4974_v9  ;;  %v1535_v27 = vsel %vm5417_vm9, %v4989_v0, inf }
 0x5f8   :  { %vm5596_vm12 = vmor %vm11994_vm15, %vm5355_vm14  ;;  %vm11998_vm14 = vcmp.le.f32.partialorder %v4929_v23, %v4917_v56  ;;  %v1682_v9 = vrot.slane %v5007_v3, 3  ;;  %vm12005_vm9 = vnez %v11958_v10  ;;  %v1554_v15 = vmin.f32 %v1552_v60, %v1535_v27 }
 0x5f9   :  { %v11996_v62 = vsel %vm5596_vm12, 4294967295, %v11995_v62  ;;  %vm5613_vm15 = vmand %vm11998_vm14, %vm11997_vm13  ;;  %vm12001_vm13 = vcmp.lt.f32.partialorder %v4884_v20, %v4976_v6  ;;  %vm12002_vm14 = vcmp.le.f32.partialorder %v4934_v28, %v4884_v20  ;;  %v1536_v16 = vsel %vm12005_vm9, %v4989_v0, inf }
 0x5fa   :  { %vm5632_vm3 = vmand %vm12002_vm14, %vm12001_vm13  ;;  %vm12006_vm14 = vcmp.lt.f32.partialorder %v4884_v20, %v4989_v0  ;;  %v1537_v60 = vsel %vm5466_vm11, %v4991_v2, inf  ;;  %vm12010_vm2 = vcmp.lt.f32.partialorder %v4917_v56, %v4976_v6  ;;  %vm12014_vm13 = vcmp.lt.f32.partialorder %v4917_v56, %v4989_v0 }
 0x5fb   :  { %vm5654_vm12 = vmand %vm12007_vm1, %vm12006_vm14  ;;  %vm12011_vm1 = vcmp.le.f32.partialorder %v4934_v28, %v4917_v56  ;;  %v1555_v10 = vmin.f32 %v1553_v35, %v1537_v60  ;;  %v5694_v6 = vperm.slane %v4953_v47, 0  ;;  %vm12019_vm11 = vcmp.gt.f32.partialorder %v5012_v21, %v4917_v56 }
 0x5fc   :  { %v1203_v49 = vpop.f32.mrf.mxu3  ;;  %vm5672_vm14 = vmand %vm12011_vm1, %vm12010_vm2  ;;  %vm12015_vm2 = vcmp.le.f32.partialorder %v4939_v53, %v4917_v56  ;;  %v1539_v53 = vsel %vm5504_vm0, %v4993_v11, inf  ;;  %v4314_v0 = vmov 0.0   ;;  %v1540_v60 = vsel %vm5520_vm6, %v4993_v11, inf }
 0x5fd   :  { %v5639_v46 = vadd.f32 %v1203_v49, %v4898_v38  ;;  %v1569_v49 = vmin.f32 %v1567_v54, %v1536_v16  ;;  %v1538_v16 = vsel %vm5481_vm5, %v4991_v2, inf  ;;  %vm5689_vm1 = vmand %vm12015_vm2, %vm12014_vm13  ;;  %v5696_v54 = vperm.slane %v1673_v17, 0 }
 0x5fe   :  { %vm12018_vm5 = vnez %v11962_v22  ;;  %vm1596_vm13 = vcmp.le.f32.partialorder %v4966_v8, %v4917_v56  ;;  %v1631_v17 = vsel %vm5585_vm4, 1.0, %v4314_v0  ;;  %v1633_v22 = vsel %vm5632_vm3, 1.0, %v4314_v0 }
 0x5ff   :  { %vm5703_vm9 = vmor %vm12019_vm11, %vm12018_vm5  ;;  %v1635_v35 = vsel %vm5654_vm12, 1.0, %v4314_v0  ;;  %v5723_v43 = vmax.f32 %v5639_v46, %v4911_v44  ;;  %v1556_v40 = vmin.f32 %v1554_v15, %v1539_v53  ;;  %v1570_v31 = vmin.f32 %v1568_v55, %v1538_v16 }
 0x600   :  { %vm12022_vm0 = vcmp.lt.f32.partialorder %v4917_v56, %v4972_v1  ;;  %vm12023_vm4 = vcmp.le.f32.partialorder %v4964_v5, %v4917_v56  ;;  %vm12024_vm12 = vcmp.lt.f32.partialorder %v4884_v20, %v4991_v2  ;;  %vm12025_vm11 = vcmp.le.f32.partialorder %v4945_v45, %v4884_v20 }
 0x601   :  { %vm1614_vm3 = vmand %vm12023_vm4, %vm12022_vm0  ;;  %v1629_v50 = vsel %vm5566_vm7, 1.0, %v4314_v0  ;;  %v1632_v1 = vsel %vm5613_vm15, 1.0, %v4314_v0  ;;  %v1634_v5 = vsel %vm5672_vm14, 1.0, %v4314_v0  ;;  %v1636_v42 = vsel %vm5689_vm1, 1.0, %v4314_v0 }
 0x602   :  { %vm5740_vm2 = vmand %vm12025_vm11, %vm12024_vm12  ;;  %v1571_v15 = vmin.f32 %v1569_v49, %v1540_v60  ;;  %vm12028_vm6 = vcmp.lt.f32.partialorder %v4884_v20, %v4993_v11  ;;  %vm12029_vm5 = vcmp.le.f32.partialorder %v4949_v63, %v4884_v20  ;;  %v1645_v57 = vmax.f32 %v1629_v50, %v1633_v22 }
 0x603   :  { %vm5762_vm7 = vmand %vm12029_vm5, %vm12028_vm6  ;;  %v1646_v55 = vmax.f32 %v1631_v17, %v1635_v35  ;;  %v5768_v23 = vperm.slane %v1674_v41, 0  ;;  %v1541_v38 = vsel %vm5539_vm10, %v5010_v13, inf  ;;  %v1543_v49 = vsel %vm5549_vm8, %v5012_v21, inf }
 0x604   :  { %vm12032_vm15 = vcmp.lt.f32.partialorder %v4917_v56, %v4991_v2  ;;  %vm12033_vm14 = vcmp.le.f32.partialorder %v4945_v45, %v4917_v56  ;;  %v1630_v41 = vsel %vm1614_vm3, 1.0, %v4314_v0  ;;  %v5789_v51 = vperm.slane %v1675_v29, 0 }
 0x605   :  { %vm5782_vm1 = vmand %vm12033_vm14, %vm12032_vm15  ;;  %v1557_v16 = vmin.f32 %v1555_v10, %v1541_v38  ;;  %v1558_v28 = vmin.f32 %v1556_v40, %v1543_v49  ;;  %vm12036_vm10 = vcmp.lt.f32.partialorder %v4917_v56, %v4993_v11  ;;  %vm12037_vm8 = vcmp.le.f32.partialorder %v4949_v63, %v4917_v56 }
 0x606   :  { %vm1624_vm0 = vmand %vm12037_vm8, %vm12036_vm10  ;;  %v1652_v45 = vmax.f32 %v1630_v41, %v1634_v5  ;;  %v1653_v2 = vmax.f32 %v1632_v1, %v1636_v42  ;;  %vm12038_vm4 = vnez %v11996_v62  ;;  %v1544_v29 = vsel %vm5703_vm9, %v5012_v21, inf }
 0x607   :  { %v1542_v19 = vsel %vm12038_vm4, %v5010_v13, inf  ;;  %vm12039_vm3 = vcmp.lt.f32.partialorder %v4884_v20, %v5010_v13  ;;  %vm12040_vm12 = vcmp.le.f32.partialorder %v4958_v7, %v4884_v20  ;;  %v1637_v63 = vsel %vm5740_vm2, 1.0, %v4314_v0 }
 0x608   :  { %vm5809_vm11 = vmand %vm12040_vm12, %vm12039_vm3  ;;  %v1639_v62 = vsel %vm5762_vm7, 1.0, %v4314_v0  ;;  %v1572_v10 = vmin.f32 %v1570_v31, %v1542_v19  ;;  %v1573_v40 = vmin.f32 %v1571_v15, %v1544_v29  ;;  %vm12043_vm9 = vcmp.lt.f32.partialorder %v4884_v20, %v5012_v21 }
 0x609   :  { %vm12044_vm6 = vcmp.le.f32.partialorder %v4966_v8, %v4884_v20  ;;  %v1647_v14 = vmax.f32 %v1645_v57, %v1637_v63  ;;  %v1648_v53 = vmax.f32 %v1646_v55, %v1639_v62  ;;  %vm12045_vm15 = vcmp.lt.f32.partialorder %v4917_v56, %v5010_v13  ;;  %v1205_v8 = vpop.f32.mrf.mxu3 }
 0x60a   :  { %vm1627_vm5 = vmand %vm12044_vm6, %vm12043_vm9  ;;  %vm12046_vm2 = vcmp.le.f32.partialorder %v4958_v7, %v4917_v56  ;;  %v1638_v31 = vsel %vm5782_vm1, 1.0, %v4314_v0  ;;  %v1640_v22 = vsel %vm1624_vm0, 1.0, %v4314_v0  ;;  %v5841_v35 = vperm.slane %v1676_v39, 0 }
 0x60b   :  { %vm5831_vm14 = vmand %vm12046_vm2, %vm12045_vm15  ;;  %v5845_v13 = vperm.slane %v1677_v48, 0  ;;  %v1559_v60 = vmin.f32 %v1557_v16, %v1558_v28  ;;  %vm12049_vm7 = vcmp.lt.f32.partialorder %v4917_v56, %v5012_v21  ;;  %v1654_v7 = vmax.f32 %v1652_v45, %v1638_v31 }
 0x60c   :  { %vm1628_vm10 = vmand %vm1596_vm13, %vm12049_vm7  ;;  %v1655_v44 = vmax.f32 %v1653_v2, %v1640_v22  ;;  %v5855_v50 = vperm.slane %v1678_v18, 0  ;;  %v1641_v39 = vsel %vm5809_vm11, 1.0, %v4314_v0  ;;  %v1643_v48 = vsel %vm1627_vm5, 1.0, %v4314_v0 }
 0x60d   :  { %v5863_v1 = vperm.slane %v1679_v61, 0  ;;  %v5866_v21 = vperm.slane %v5007_v3, 0  ;;  %v1574_v5 = vmin.f32 %v1572_v10, %v1573_v40  ;;  %v1649_v42 = vmax.f32 %v1647_v14, %v1641_v39 }
 0x60e   :  { %v1650_v15 = vmax.f32 %v1648_v53, %v1643_v48  ;;  %vm1753_vm13 = vcmp.eq.f32.partialorder %v5696_v54, %v4953_v47  ;;  %v1642_v18 = vsel %vm5831_vm14, 1.0, %v4314_v0  ;;  %v1644_v59 = vsel %vm1628_vm10, 1.0, %v4314_v0 }
 0x60f   :  { %v5876_v61 = vperm.slane %v1680_v52, 0  ;;  %vm1755_vm1 = vcmp.eq.f32.partialorder %v5768_v23, %v4953_v47  ;;  %v1577_v57 = vsub.f32 %v1559_v60, %v4884_v20  ;;  %v1656_v55 = vmax.f32 %v1654_v7, %v1642_v18 }
 0x610   :  { %v1657_v38 = vmax.f32 %v1655_v44, %v1644_v59  ;;  %vm1757_vm8 = vcmp.eq.f32.partialorder %v5789_v51, %v4953_v47  ;;  %v5884_v49 = vadd.f32 %v1205_v8, %v4896_v37  ;;  %vm1575_vm0 = vcmp.lt.f32.partialorder %v1559_v60, inf }
 0x611   :  { %v12050_v27 = vrot.slane %v5007_v3, 2  ;;  %vm1759_vm4 = vcmp.eq.f32.partialorder %v5841_v35, %v4953_v47  ;;  %vm12051_vm3 = vcmp.lt.s32.totalorder %v4888_v33, 1  ;;  %v1578_v52 = vsub.f32 %v1574_v5, %v4917_v56 }
 0x612   :  { %vm5894_vm12 = vmand %vm1753_vm13, %vm12051_vm3  ;;  %v1651_v16 = vmax.f32 %v1649_v42, %v1650_v15  ;;  %v5901_v37 = vperm.slane %v1682_v9, 0  ;;  %vm1761_vm11 = vcmp.eq.f32.partialorder %v5845_v13, %v4953_v47  ;;  %vm12054_vm9 = vcmp.lt.s32.totalorder %v4888_v33, 2 }
 0x613   :  { %v5888_v41 = vperm.slane %v12050_v27, 0  ;;  %vm5907_vm6 = vmand %vm1755_vm1, %vm12054_vm9  ;;  %vm1576_vm5 = vcmp.lt.f32.partialorder %v1574_v5, inf  ;;  %v12057_v45 = vrot.slane %v5007_v3, 4  ;;  %v12058_v56 = vrot.slane %v5007_v3, 5 }
 0x614   :  { %vm1763_vm15 = vcmp.eq.f32.partialorder %v5855_v50, %v4953_v47  ;;  %vm12059_vm2 = vcmp.lt.s32.totalorder %v4888_v33, 3  ;;  %v1579_v29 = vsel %vm1575_vm0, %v1577_v57, 0.0  ;;  %v1658_v11 = vmax.f32 %v1656_v55, %v1657_v38 }
 0x615   :  { %v5913_v2 = vperm.slane %v12057_v45, 0  ;;  %v5917_v19 = vperm.slane %v12058_v56, 0  ;;  %vm5926_vm14 = vmand %vm1757_vm8, %vm12059_vm2  ;;  %v12062_v63 = vrot.slane %v5007_v3, 6  ;;  %vm1765_vm7 = vcmp.eq.f32.partialorder %v5863_v1, %v4953_v47 }
 0x616   :  { %vm12063_vm10 = vcmp.lt.s32.totalorder %v4888_v33, 4  ;;  %v5947_v40 = vmax.f32 %v5884_v49, %v4914_v26  ;;  %v12066_v14 = vrot.slane %v5007_v3, 7  ;;  %vm1721_vm8 = vcmp.gt.f32.partialorder %v5696_v54, %v4953_v47 }
 0x617   :  { %v5932_v62 = vperm.slane %v12062_v63, 0  ;;  %vm5941_vm13 = vmand %vm1759_vm4, %vm12063_vm10  ;;  %vm12067_vm0 = vcmp.lt.s32.totalorder %v4888_v33, 5  ;;  %v1580_v26 = vsel %vm1576_vm5, %v1578_v52, 0.0  ;;  %vm1659_vm3 = vcmp.gt.f32.partialorder %v1651_v16, 0.0 }
 0x618   :  { %v5951_v53 = vperm.slane %v12066_v14, 0  ;;  %vm5962_vm4 = vmand %vm1761_vm11, %vm12067_vm0  ;;  %vm12070_vm10 = vcmp.lt.s32.totalorder %v4888_v33, 6  ;;  %v1661_v22 = vsel %vm1659_vm3, %v1579_v29, 0.0  ;;  %vm1725_vm0 = vcmp.gt.f32.partialorder %v5789_v51, %v4953_v47 }
 0x619   :  { %vm5976_vm1 = vmand %vm1763_vm15, %vm12070_vm10  ;;  %vm12073_vm9 = vcmp.lt.s32.totalorder %v4888_v33, 7  ;;  %vm1660_vm15 = vcmp.gt.f32.partialorder %v1658_v11, 0.0  ;;  %vm1772_vm3 = vcmp.eq.f32.partialorder %v5888_v41, %v5007_v3  ;;  %vm12078_vm10 = vcmp.gt.f32.partialorder %v5768_v23, %v4953_v47 }
 0x61a   :  { %vm5991_vm2 = vmand %vm1765_vm7, %vm12073_vm9  ;;  %v1662_v44 = vsel %vm1660_vm15, %v1580_v26, 0.0  ;;  %vm12090_vm9 = vcmp.lt.s32.totalorder %v4921_v58, 11  ;;  %v12096_v38 = vmov 0  ;;  %v12109_v56 = vmov 0 }
 0x61b   :  { %vm6006_vm5 = vmor %vm1721_vm8, %vm5894_vm12  ;;  %v1663_v48 = vadd.f32 %v1662_v44, %v1661_v22  ;;  %vm1778_vm12 = vcmp.eq.f32.partialorder %v5917_v19, %v5007_v3  ;;  %v12151_v9 = vmov 0  ;;  %v12175_v26 = vmov 0 }
 0x61c   :  { %vm6021_vm11 = vmor %vm12078_vm10, %vm5907_vm6  ;;  %v1849_v18 = vsel %vm6006_vm5, %v5696_v54, inf  ;;  %vm12095_vm5 = vcmp.eq.f32.partialorder %v5913_v2, %v5007_v3  ;;  %v12186_v39 = vmov 0 }
 0x61d   :  { %vm6038_vm6 = vmor %vm1725_vm0, %vm5926_vm14  ;;  %vm12083_vm14 = vcmp.lt.s32.totalorder %v4921_v58, 9  ;;  %vm12084_vm0 = vcmp.eq.f32.partialorder %v5876_v61, %v5007_v3  ;;  %v1851_v59 = vsel %vm6021_vm11, %v5768_v23, inf  ;;  %v1664_v55 = vrot.slane %v1663_v48, 4 }
 0x61e   :  { %vm6057_vm7 = vmand %vm12084_vm0, %vm12083_vm14  ;;  %vm12087_vm0 = vcmp.lt.s32.totalorder %v4921_v58, 10  ;;  %vm12091_vm14 = vcmp.eq.f32.partialorder %v5901_v37, %v5007_v3  ;;  %v1853_v57 = vsel %vm6038_vm6, %v5789_v51, inf  ;;  %vm12098_vm11 = vcmp.gt.f32.partialorder %v5841_v35, %v4953_v47 }
 0x61f   :  { %vm6078_vm10 = vmand %vm1772_vm3, %vm12087_vm0  ;;  %vm12101_vm3 = vcmp.gt.f32.partialorder %v5768_v23, %v5007_v3  ;;  %v1880_v63 = vmin.f32 %v1849_v18, %v1853_v57  ;;  %v6192_v17 = vadd.f32 %v1664_v55, %v1663_v48 }
 0x620   :  { %vm6091_vm8 = vmand %vm12091_vm14, %vm12090_vm9  ;;  %vm1767_vm9 = vcmp.eq.f32.partialorder %v5866_v21, %v4953_v47  ;;  %vm12094_vm14 = vcmp.lt.s32.totalorder %v4921_v58, 12  ;;  %v1852_v20 = vsel %vm12101_vm3, %v5768_v23, inf  ;;  %vm12106_vm3 = vcmp.gt.f32.partialorder %v5696_v54, %v5007_v3 }
 0x621   :  { %vm6113_vm0 = vmand %vm12095_vm5, %vm12094_vm14  ;;  %vm12102_vm5 = vcmp.gt.f32.partialorder %v5845_v13, %v4953_v47  ;;  %v1850_v28 = vsel %vm12106_vm3, %v5696_v54, inf  ;;  %v1666_v55 = vrot.slane %v6192_v17, 2 }
 0x622   :  { %v12097_v38 = vsel %vm6113_vm0, 4294967295, %v12096_v38  ;;  %vm6122_vm6 = vmor %vm12098_vm11, %vm5941_vm13  ;;  %vm12105_vm13 = vcmp.gt.f32.partialorder %v5694_v6, %v4953_v47  ;;  %vm12107_vm11 = vcmp.gt.f32.partialorder %v5789_v51, %v5007_v3 }
 0x623   :  { %vm6137_vm15 = vmor %vm12102_vm5, %vm5962_vm4  ;;  %v1847_v16 = vsel %vm12105_vm13, %v5694_v6, inf  ;;  %v1854_v45 = vsel %vm12107_vm11, %v5789_v51, inf  ;;  %vm12108_vm5 = vcmp.lt.s32.totalorder %v4921_v58, 13  ;;  %vm12111_vm13 = vcmp.gt.f32.partialorder %v5855_v50, %v4953_v47 }
 0x624   :  { %vm6160_vm14 = vmand %vm1778_vm12, %vm12108_vm5  ;;  %vm12114_vm11 = vcmp.gt.f32.partialorder %v5694_v6, %v5007_v3  ;;  %v1879_v11 = vmin.f32 %v1847_v16, %v1851_v59  ;;  %vm12118_vm4 = vcmp.gt.f32.partialorder %v5866_v21, %v4953_v47  ;;  %v1895_v31 = vmin.f32 %v1850_v28, %v1854_v45 }
 0x625   :  { %v12110_v56 = vsel %vm6160_vm14, 4294967295, %v12109_v56  ;;  %vm6169_vm3 = vmor %vm12111_vm13, %vm5976_vm1  ;;  %v1848_v29 = vsel %vm12114_vm11, %v5694_v6, inf  ;;  %vm12115_vm1 = vcmp.gt.f32.partialorder %v5863_v1, %v4953_v47  ;;  %vm12121_vm5 = vcmp.lt.s32.totalorder %v4921_v58, 14 }
 0x626   :  { %vm6188_vm13 = vmor %vm12115_vm1, %vm5991_vm2  ;;  %v1894_v14 = vmin.f32 %v1848_v29, %v1852_v20  ;;  %vm1773_vm1 = vcmp.eq.f32.partialorder %v5901_v37, %v4953_v47  ;;  %vm12122_vm14 = vcmp.eq.f32.partialorder %v5932_v62, %v5007_v3  ;;  %v1855_v7 = vsel %vm6122_vm6, %v5841_v35, inf }
 0x627   :  { %vm6204_vm12 = vmor %vm12118_vm4, %vm1767_vm9  ;;  %vm12125_vm9 = vcmp.eq.f32.partialorder %v5876_v61, %v4953_v47  ;;  %vm12126_vm4 = vcmp.gt.f32.partialorder %v5876_v61, %v4953_v47  ;;  %v1857_v44 = vsel %vm6137_vm15, %v5845_v13, inf  ;;  %vm12132_vm6 = vcmp.gt.f32.partialorder %v5841_v35, %v5007_v3 }
 0x628   :  { %vm6219_vm0 = vmand %vm12122_vm14, %vm12121_vm5  ;;  %vm12129_vm5 = vcmp.gt.f32.partialorder %v5876_v61, %v5007_v3  ;;  %v1856_v48 = vsel %vm12132_vm6, %v5841_v35, inf  ;;  %v1881_v8 = vmin.f32 %v1879_v11, %v1855_v7  ;;  %v1882_v18 = vmin.f32 %v1880_v63, %v1857_v44 }
 0x629   :  { %vm6229_vm2 = vmor %vm12126_vm4, %vm12125_vm9  ;;  %vm1782_vm4 = vcmp.eq.f32.partialorder %v5951_v53, %v5007_v3  ;;  %vm12133_vm14 = vcmp.eq.f32.partialorder %v5888_v41, %v4953_v47  ;;  %vm12137_vm6 = vcmp.gt.f32.partialorder %v5845_v13, %v5007_v3  ;;  %v1896_v57 = vmin.f32 %v1894_v14, %v1856_v48 }
 0x62a   :  { %vm6246_vm9 = vmor %vm12129_vm5, %vm6057_vm7  ;;  %vm12134_vm7 = vcmp.gt.f32.partialorder %v5888_v41, %v4953_v47  ;;  %v1858_v59 = vsel %vm12137_vm6, %v5845_v13, inf  ;;  %vm12138_vm11 = vcmp.gt.f32.partialorder %v5888_v41, %v5007_v3  ;;  %vm12144_vm15 = vcmp.gt.f32.partialorder %v5855_v50, %v5007_v3 }
 0x62b   :  { %vm6264_vm5 = vmor %vm12134_vm7, %vm12133_vm14  ;;  %vm12141_vm7 = vcmp.gt.f32.partialorder %v5901_v37, %v4953_v47  ;;  %v1860_v42 = vsel %vm12144_vm15, %v5855_v50, inf  ;;  %v1897_v52 = vmin.f32 %v1895_v31, %v1858_v59  ;;  %v12146_v16 = vmov 0 }
 0x62c   :  { %vm6280_vm14 = vmor %vm12138_vm11, %vm6078_vm10  ;;  %vm12145_vm10 = vcmp.gt.f32.partialorder %v5901_v37, %v5007_v3  ;;  %v1859_v28 = vsel %vm6169_vm3, %v5855_v50, inf  ;;  %v1861_v45 = vsel %vm6188_vm13, %v5863_v1, inf  ;;  %vm12153_vm13 = vcmp.eq.f32.partialorder %v5913_v2, %v4953_v47 }
 0x62d   :  { %vm6290_vm6 = vmor %vm12141_vm7, %vm1773_vm1  ;;  %vm12148_vm1 = vcmp.gt.f32.partialorder %v5863_v1, %v5007_v3  ;;  %vm12150_vm7 = vcmp.lt.s32.totalorder %v4921_v58, 15  ;;  %v12155_v11 = vmov 0  ;;  %v1883_v63 = vmin.f32 %v1881_v8, %v1859_v28 }
 0x62e   :  { %vm6303_vm11 = vmor %vm12145_vm10, %vm6091_vm8  ;;  %v1862_v15 = vsel %vm12148_vm1, %v5863_v1, inf  ;;  %vm12149_vm8 = vcmp.gt.f32.partialorder %v5866_v21, %v5007_v3  ;;  %vm12154_vm10 = vcmp.gt.f32.partialorder %v5913_v2, %v4953_v47  ;;  %v1884_v10 = vmin.f32 %v1882_v18, %v1861_v45 }
 0x62f   :  { %v12147_v16 = vsel %vm6303_vm11, 4294967295, %v12146_v16  ;;  %v1864_v29 = vsel %vm12149_vm8, %v5866_v21, inf  ;;  %vm6328_vm3 = vmand %vm1782_vm4, %vm12150_vm7  ;;  %vm12157_vm7 = vnez %v12097_v38  ;;  %vm12158_vm15 = vcmp.gt.f32.partialorder %v5913_v2, %v5007_v3 }
 0x630   :  { %v12152_v9 = vsel %vm6328_vm3, 4294967295, %v12151_v9  ;;  %vm6338_vm1 = vmor %vm12154_vm10, %vm12153_vm13  ;;  %v12159_v14 = vmov 0  ;;  %v1898_v31 = vmin.f32 %v1896_v57, %v1860_v42  ;;  %vm12161_vm4 = vcmp.eq.f32.partialorder %v5917_v19, %v4953_v47 }
 0x631   :  { %v12156_v11 = vsel %vm6338_vm1, 4294967295, %v12155_v11  ;;  %vm6351_vm3 = vmor %vm12158_vm15, %vm12157_vm7  ;;  %vm12162_vm1 = vcmp.gt.f32.partialorder %v5917_v19, %v4953_v47  ;;  %v1899_v7 = vmin.f32 %v1897_v52, %v1862_v15  ;;  %vm12165_vm8 = vnez %v12110_v56 }
 0x632   :  { %v12160_v14 = vsel %vm6351_vm3, 4294967295, %v12159_v14  ;;  %vm6367_vm15 = vmor %vm12162_vm1, %vm12161_vm4  ;;  %vm12166_vm3 = vcmp.gt.f32.partialorder %v5917_v19, %v5007_v3  ;;  %v1863_v48 = vsel %vm6204_vm12, %v5866_v21, inf  ;;  %v1865_v8 = vsel %vm6229_vm2, %v5876_v61, inf }
 0x633   :  { %vm6382_vm11 = vmor %vm12166_vm3, %vm12165_vm8  ;;  %vm12169_vm8 = vcmp.eq.f32.partialorder %v5932_v62, %v4953_v47  ;;  %vm12170_vm7 = vcmp.gt.f32.partialorder %v5932_v62, %v4953_v47  ;;  %v12171_v56 = vmov 0  ;;  %vm12173_vm2 = vcmp.eq.f32.partialorder %v5951_v53, %v4953_v47 }
 0x634   :  { %vm6404_vm12 = vmor %vm12170_vm7, %vm12169_vm8  ;;  %vm12174_vm1 = vcmp.gt.f32.partialorder %v5951_v53, %v4953_v47  ;;  %v1885_v60 = vmin.f32 %v1883_v63, %v1863_v48  ;;  %v1886_v18 = vmin.f32 %v1884_v10, %v1865_v8  ;;  %vm12177_vm8 = vcmp.lt.f32.partialorder %v4953_v47, %v5866_v21 }
 0x635   :  { %v12172_v56 = vsel %vm6404_vm12, 4294967295, %v12171_v56  ;;  %vm6414_vm4 = vmor %vm12174_vm1, %vm12173_vm2  ;;  %vm12178_vm3 = vcmp.le.f32.partialorder %v5694_v6, %v4953_v47  ;;  %v1866_v57 = vsel %vm6246_vm9, %v5876_v61, inf  ;;  %v1900_v42 = vmin.f32 %v1898_v31, %v1864_v29 }
 0x636   :  { %v12176_v26 = vsel %vm6414_vm4, 4294967295, %v12175_v26  ;;  %vm6428_vm13 = vmand %vm12178_vm3, %vm12177_vm8  ;;  %vm12181_vm10 = vcmp.lt.f32.partialorder %v4953_v47, %v5876_v61  ;;  %vm12182_vm3 = vcmp.le.f32.partialorder %v5696_v54, %v4953_v47  ;;  %vm12185_vm9 = vcmp.gt.f32.partialorder %v5932_v62, %v5007_v3 }
 0x637   :  { %vm6445_vm8 = vmand %vm12182_vm3, %vm12181_vm10  ;;  %v1901_v28 = vmin.f32 %v1899_v7, %v1866_v57  ;;  %vm1936_vm10 = vcmp.lt.f32.partialorder %v5007_v3, %v5888_v41  ;;  %vm12188_vm4 = vcmp.lt.f32.partialorder %v5007_v3, %v5876_v61  ;;  %v1867_v45 = vsel %vm6264_vm5, %v5888_v41, inf }
 0x638   :  { %vm6454_vm7 = vmor %vm12185_vm9, %vm6219_vm0  ;;  %vm12189_vm0 = vcmp.le.f32.partialorder %v5696_v54, %v5007_v3  ;;  %v1869_v15 = vsel %vm6290_vm6, %v5901_v37, inf  ;;  %vm12193_vm3 = vcmp.le.f32.partialorder %v5768_v23, %v4953_v47  ;;  %v1887_v61 = vmin.f32 %v1885_v60, %v1867_v45 }
 0x639   :  { %v12187_v39 = vsel %vm6454_vm7, 4294967295, %v12186_v39  ;;  %vm6472_vm9 = vmand %vm12189_vm0, %vm12188_vm4  ;;  %vm12192_vm0 = vcmp.lt.f32.partialorder %v4953_v47, %v5888_v41  ;;  %v1888_v5 = vmin.f32 %v1886_v18, %v1869_v15  ;;  %vm12196_vm2 = vcmp.lt.f32.partialorder %v4953_v47, %v5901_v37 }
 0x63a   :  { %vm6494_vm5 = vmand %vm12193_vm3, %vm12192_vm0  ;;  %vm12197_vm3 = vcmp.le.f32.partialorder %v5789_v51, %v4953_v47  ;;  %v1868_v29 = vsel %vm6280_vm14, %v5888_v41, inf  ;;  %vm12200_vm6 = vnez %v12147_v16  ;;  %vm1928_vm4 = vcmp.le.f32.partialorder %v5855_v50, %v5007_v3 }
 0x63b   :  { %vm6510_vm0 = vmand %vm12197_vm3, %vm12196_vm2  ;;  %v1870_v63 = vsel %vm12200_vm6, %v5901_v37, inf  ;;  %vm12201_vm3 = vcmp.le.f32.partialorder %v5768_v23, %v5007_v3  ;;  %vm12204_vm6 = vnez %v12156_v11  ;;  %v1902_v10 = vmin.f32 %v1900_v42, %v1868_v29 }
 0x63c   :  { %vm6532_vm14 = vmand %vm12201_vm3, %vm1936_vm10  ;;  %v1871_v16 = vsel %vm12204_vm6, %v5913_v2, inf  ;;  %v1903_v31 = vmin.f32 %v1901_v28, %v1870_v63  ;;  %vm1945_vm2 = vcmp.lt.f32.partialorder %v4953_v47, %v5951_v53  ;;  %vm12205_vm1 = vcmp.lt.f32.partialorder %v5007_v3, %v5901_v37 }
 0x63d   :  { %vm12206_vm10 = vcmp.le.f32.partialorder %v5789_v51, %v5007_v3  ;;  %vm12207_vm7 = vnez %v12152_v9  ;;  %vm12208_vm6 = vcmp.gt.f32.partialorder %v5951_v53, %v5007_v3  ;;  %v1873_v41 = vsel %vm6367_vm15, %v5917_v19, inf }
 0x63e   :  { %vm1954_vm3 = vmand %vm12206_vm10, %vm12205_vm1  ;;  %v1965_v37 = vsel %vm6445_vm8, 1.0, %v4314_v0  ;;  %v1967_v51 = vsel %vm6494_vm5, 1.0, %v4314_v0  ;;  %v1969_v9 = vsel %vm6510_vm0, 1.0, %v4314_v0  ;;  %v1874_v38 = vsel %vm6382_vm11, %v5917_v19, inf }
 0x63f   :  { %vm6554_vm12 = vmor %vm12208_vm6, %vm12207_vm7  ;;  %vm12211_vm7 = vnez %v12160_v14  ;;  %v1889_v7 = vmin.f32 %v1887_v61, %v1871_v16  ;;  %v1890_v48 = vmin.f32 %v1888_v5, %v1873_v41  ;;  %vm12212_vm15 = vcmp.lt.f32.partialorder %v5007_v3, %v5866_v21 }
 0x640   :  { %v1872_v11 = vsel %vm12211_vm7, %v5913_v2, inf  ;;  %vm12213_vm1 = vcmp.le.f32.partialorder %v5694_v6, %v5007_v3  ;;  %vm12216_vm5 = vcmp.lt.f32.partialorder %v4953_v47, %v5913_v2  ;;  %vm12217_vm0 = vcmp.le.f32.partialorder %v5841_v35, %v4953_v47 }
 0x641   :  { %vm6582_vm8 = vmand %vm12213_vm1, %vm12212_vm15  ;;  %v1963_v21 = vsel %vm6428_vm13, 1.0, %v4314_v0  ;;  %v1966_v6 = vsel %vm6472_vm9, 1.0, %v4314_v0  ;;  %v1968_v44 = vsel %vm6532_vm14, 1.0, %v4314_v0  ;;  %v1970_v60 = vsel %vm1954_vm3, 1.0, %v4314_v0 }
 0x642   :  { %vm6592_vm10 = vmand %vm12217_vm0, %vm12216_vm5  ;;  %v1904_v18 = vmin.f32 %v1902_v10, %v1872_v11  ;;  %v1905_v57 = vmin.f32 %v1903_v31, %v1874_v38  ;;  %vm12220_vm11 = vcmp.lt.f32.partialorder %v4953_v47, %v5917_v19  ;;  %vm12221_vm6 = vcmp.le.f32.partialorder %v5845_v13, %v4953_v47 }
 0x643   :  { %vm6612_vm7 = vmand %vm12221_vm6, %vm12220_vm11  ;;  %v1979_v42 = vmax.f32 %v1963_v21, %v1967_v51  ;;  %v1980_v52 = vmax.f32 %v1965_v37, %v1969_v9  ;;  %vm12224_vm13 = vnez %v12172_v56  ;;  %vm12225_vm9 = vnez %v12176_v26 }
 0x644   :  { %v1875_v28 = vsel %vm12224_vm13, %v5932_v62, inf  ;;  %v1877_v22 = vsel %vm12225_vm9, %v5951_v53, inf  ;;  %vm1946_vm14 = vcmp.lt.f32.partialorder %v5007_v3, %v5951_v53  ;;  %vm12226_vm3 = vcmp.lt.f32.partialorder %v5007_v3, %v5913_v2 }
 0x645   :  { %vm12227_vm15 = vcmp.le.f32.partialorder %v5841_v35, %v5007_v3  ;;  %v1964_v56 = vsel %vm6582_vm8, 1.0, %v4314_v0  ;;  %v1891_v15 = vmin.f32 %v1889_v7, %v1875_v28  ;;  %v1892_v26 = vmin.f32 %v1890_v48, %v1877_v22 }
 0x646   :  { %vm6630_vm1 = vmand %vm12227_vm15, %vm12226_vm3  ;;  %vm12230_vm5 = vcmp.lt.f32.partialorder %v5007_v3, %v5917_v19  ;;  %vm12231_vm0 = vcmp.le.f32.partialorder %v5845_v13, %v5007_v3  ;;  %v1986_v35 = vmax.f32 %v1964_v56, %v1968_v44  ;;  %v1987_v54 = vmax.f32 %v1966_v6, %v1970_v60 }
 0x647   :  { %vm6643_vm11 = vmand %vm12231_vm0, %vm12230_vm5  ;;  %vm12234_vm6 = vnez %v12187_v39  ;;  %v1878_v5 = vsel %vm6554_vm12, %v5951_v53, inf  ;;  %vm12235_vm8 = vcmp.lt.f32.partialorder %v4953_v47, %v5932_v62  ;;  %vm12236_vm13 = vcmp.le.f32.partialorder %v5855_v50, %v4953_v47 }
 0x648   :  { %v1876_v61 = vsel %vm12234_vm6, %v5932_v62, inf  ;;  %vm6659_vm9 = vmand %vm12236_vm13, %vm12235_vm8  ;;  %v1971_v19 = vsel %vm6592_vm10, 1.0, %v4314_v0  ;;  %v1973_v39 = vsel %vm6612_vm7, 1.0, %v4314_v0  ;;  %v1907_v29 = vmin.f32 %v1905_v57, %v1878_v5 }
 0x649   :  { %v1906_v20 = vmin.f32 %v1904_v18, %v1876_v61  ;;  %vm12239_vm12 = vcmp.le.f32.partialorder %v5863_v1, %v4953_v47  ;;  %v1981_v63 = vmax.f32 %v1979_v42, %v1971_v19  ;;  %v1982_v27 = vmax.f32 %v1980_v52, %v1973_v39 }
 0x64a   :  { %vm1961_vm3 = vmand %vm12239_vm12, %vm1945_vm2  ;;  %v6678_v16 = vadd.f32 %v1666_v55, %v6192_v17  ;;  %vm1930_vm10 = vcmp.le.f32.partialorder %v5863_v1, %v5007_v3  ;;  %vm12240_vm7 = vcmp.lt.f32.partialorder %v5007_v3, %v5932_v62  ;;  %v1972_v31 = vsel %vm6630_vm1, 1.0, %v4314_v0 }
 0x64b   :  { %vm6688_vm15 = vmand %vm1928_vm4, %vm12240_vm7  ;;  %v1974_v17 = vsel %vm6643_vm11, 1.0, %v4314_v0  ;;  %v1893_v55 = vmin.f32 %v1891_v15, %v1892_v26  ;;  %v1988_v1 = vmax.f32 %v1986_v35, %v1972_v31  ;;  %v2009_v50 = vrot.slane %v5148_v30, 1 }
 0x64c   :  { %vm1962_vm2 = vmand %vm1930_vm10, %vm1946_vm14  ;;  %v1989_v62 = vmax.f32 %v1987_v54, %v1974_v17  ;;  %v1975_v23 = vsel %vm6659_vm9, 1.0, %v4314_v0  ;;  %v1977_v41 = vsel %vm1961_vm3, 1.0, %v4314_v0  ;;  %v2010_v37 = vrot.slane %v5148_v30, 2 }
 0x64d   :  { %v2011_v51 = vrot.slane %v5148_v30, 3  ;;  %v1908_v9 = vmin.f32 %v1906_v20, %v1907_v29  ;;  %v1983_v11 = vmax.f32 %v1981_v63, %v1975_v23  ;;  %v1984_v38 = vmax.f32 %v1982_v27, %v1977_v41 }
 0x64e   :  { %v2012_v53 = vrot.slane %v5148_v30, 4  ;;  %v1976_v7 = vsel %vm6688_vm15, 1.0, %v4314_v0  ;;  %v1978_v48 = vsel %vm1962_vm2, 1.0, %v4314_v0  ;;  %v2013_v8 = vrot.slane %v5148_v30, 5 }
 0x64f   :  { %v2014_v14 = vrot.slane %v5148_v30, 6  ;;  %v1911_v21 = vsub.f32 %v1893_v55, %v4953_v47  ;;  %v1990_v6 = vmax.f32 %v1988_v1, %v1976_v7  ;;  %v1991_v44 = vmax.f32 %v1989_v62, %v1978_v48 }
 0x650   :  { %v6716_v60 = vperm.slane %v2009_v50, 0  ;;  %vm1909_vm4 = vcmp.lt.f32.partialorder %v1893_v55, inf  ;;  %v2015_v18 = vrot.slane %v5148_v30, 7  ;;  %v2016_v57 = vrot.slane %v5252_v12, 1 }
 0x651   :  { %v6720_v59 = vperm.slane %v2010_v37, 0  ;;  %v1912_v42 = vsub.f32 %v1908_v9, %v5007_v3  ;;  %v1985_v52 = vmax.f32 %v1983_v11, %v1984_v38  ;;  %v2017_v28 = vrot.slane %v5252_v12, 2 }
 0x652   :  { %v6724_v22 = vperm.slane %v2011_v51, 0  ;;  %vm1910_vm14 = vcmp.lt.f32.partialorder %v1908_v9, inf  ;;  %v2018_v47 = vrot.slane %v5252_v12, 3  ;;  %v2019_v45 = vrot.slane %v5252_v12, 4 }
 0x653   :  { %v6728_v56 = vperm.slane %v2012_v53, 0  ;;  %v1913_v15 = vsel %vm1909_vm4, %v1911_v21, 0.0  ;;  %v1992_v26 = vmax.f32 %v1990_v6, %v1991_v44  ;;  %v6730_v2 = vperm.slane %v2013_v8, 0 }
 0x654   :  { %vm2089_vm1 = vcmp.eq.f32.partialorder %v6716_v60, %v5148_v30  ;;  %v2020_v3 = vrot.slane %v5252_v12, 5  ;;  %v2021_v35 = vrot.slane %v5252_v12, 6  ;;  %v6736_v54 = vperm.slane %v2014_v14, 0 }
 0x655   :  { %vm2091_vm5 = vcmp.eq.f32.partialorder %v6720_v59, %v5148_v30  ;;  %v1914_v61 = vsel %vm1910_vm14, %v1912_v42, 0.0  ;;  %vm1993_vm0 = vcmp.gt.f32.partialorder %v1985_v52, 0.0  ;;  %v6740_v5 = vperm.slane %v2015_v18, 0 }
 0x656   :  { %vm2093_vm11 = vcmp.eq.f32.partialorder %v6724_v22, %v5148_v30  ;;  %v1995_v13 = vsel %vm1993_vm0, %v1913_v15, 0.0  ;;  %v2022_v19 = vrot.slane %v5252_v12, 7  ;;  %v6745_v39 = vperm.slane %v2016_v57, 0 }
 0x657   :  { %vm2095_vm6 = vcmp.eq.f32.partialorder %v6728_v56, %v5148_v30  ;;  %vm12243_vm8 = vcmp.lt.s32.totalorder %v4888_v33, 1  ;;  %vm1994_vm9 = vcmp.gt.f32.partialorder %v1992_v26, 0.0  ;;  %v6756_v29 = vperm.slane %v5148_v30, 0 }
 0x658   :  { %vm6751_vm13 = vmand %vm2089_vm1, %vm12243_vm8  ;;  %v6759_v63 = vperm.slane %v5252_v12, 0  ;;  %vm2097_vm12 = vcmp.eq.f32.partialorder %v6730_v2, %v5148_v30  ;;  %vm12246_vm3 = vcmp.lt.s32.totalorder %v4888_v33, 2  ;;  %v1996_v10 = vsel %vm1994_vm9, %v1914_v61, 0.0 }
 0x659   :  { %vm6765_vm10 = vmand %vm2091_vm5, %vm12246_vm3  ;;  %v6769_v31 = vperm.slane %v2017_v28, 0  ;;  %v6771_v17 = vperm.slane %v2018_v47, 0  ;;  %vm2099_vm7 = vcmp.eq.f32.partialorder %v6736_v54, %v5148_v30  ;;  %vm12249_vm15 = vcmp.lt.s32.totalorder %v4888_v33, 3 }
 0x65a   :  { %vm6780_vm2 = vmand %vm2093_vm11, %vm12249_vm15  ;;  %v1997_v1 = vadd.f32 %v1996_v10, %v1995_v13  ;;  %v6784_v62 = vperm.slane %v2019_v45, 0  ;;  %v6786_v50 = vperm.slane %v2020_v3, 0  ;;  %vm2101_vm4 = vcmp.eq.f32.partialorder %v6740_v5, %v5148_v30 }
 0x65b   :  { %vm12252_vm14 = vcmp.lt.s32.totalorder %v4888_v33, 4  ;;  %v6799_v41 = vperm.slane %v2021_v35, 0  ;;  %v6801_v37 = vperm.slane %v2022_v19, 0  ;;  %vm2057_vm5 = vcmp.gt.f32.partialorder %v6716_v60, %v5148_v30 }
 0x65c   :  { %vm6795_vm1 = vmand %vm2095_vm6, %vm12252_vm14  ;;  %vm2106_vm0 = vcmp.eq.f32.partialorder %v6745_v39, %v5252_v12  ;;  %vm12255_vm11 = vcmp.lt.s32.totalorder %v4888_v33, 5  ;;  %vm12258_vm14 = vcmp.lt.s32.totalorder %v4888_v33, 6  ;;  %vm12261_vm15 = vcmp.lt.s32.totalorder %v4888_v33, 7 }
 0x65d   :  { %vm6812_vm8 = vmand %vm2097_vm12, %vm12255_vm11  ;;  %v1998_v38 = vrot.slane %v1997_v1, 4  ;;  %vm2108_vm3 = vcmp.eq.f32.partialorder %v6769_v31, %v5252_v12  ;;  %vm12264_vm9 = vcmp.lt.s32.totalorder %v4921_v58, 9  ;;  %v12265_v53 = vmov 0 }
 0x65e   :  { %vm6829_vm12 = vmand %vm2099_vm7, %vm12258_vm14  ;;  %vm12272_vm14 = vcmp.gt.f32.partialorder %v6724_v22, %v5148_v30  ;;  %v12300_v13 = vmov 0  ;;  %v12340_v44 = vmov 0 }
 0x65f   :  { %vm6846_vm7 = vmand %vm2101_vm4, %vm12261_vm15  ;;  %vm2112_vm15 = vcmp.eq.f32.partialorder %v6784_v62, %v5252_v12  ;;  %v1999_v6 = vadd.f32 %v1998_v38, %v1997_v1  ;;  %v12307_v1 = vmov 0 }
 0x660   :  { %vm6861_vm6 = vmand %vm2106_vm0, %vm12264_vm9  ;;  %vm12280_vm0 = vcmp.eq.f32.partialorder %v6771_v17, %v5252_v12 }
 0x661   :  { %v12266_v53 = vsel %vm6861_vm6, 4294967295, %v12265_v53  ;;  %vm6870_vm4 = vmor %vm2057_vm5, %vm6751_vm13  ;;  %vm12269_vm13 = vcmp.gt.f32.partialorder %v6720_v59, %v5148_v30  ;;  %v2000_v55 = vrot.slane %v1999_v6, 2 }
 0x662   :  { %vm6889_vm5 = vmor %vm12269_vm13, %vm6765_vm10  ;;  %vm12275_vm10 = vcmp.gt.f32.partialorder %v6720_v59, %v5252_v12  ;;  %v2185_v42 = vsel %vm6870_vm4, %v6716_v60, inf  ;;  %vm12290_vm4 = vcmp.gt.f32.partialorder %v6730_v2, %v5148_v30 }
 0x663   :  { %vm6904_vm11 = vmor %vm12272_vm14, %vm6780_vm2  ;;  %v2188_v14 = vsel %vm12275_vm10, %v6720_v59, inf  ;;  %vm12276_vm10 = vcmp.lt.s32.totalorder %v4921_v58, 10  ;;  %vm2114_vm2 = vcmp.eq.f32.partialorder %v6786_v50, %v5252_v12  ;;  %vm12279_vm14 = vcmp.lt.s32.totalorder %v4921_v58, 11 }
 0x664   :  { %vm6929_vm13 = vmand %vm2108_vm3, %vm12276_vm10  ;;  %vm12283_vm3 = vcmp.gt.f32.partialorder %v6756_v29, %v5252_v12  ;;  %vm12284_vm10 = vcmp.gt.f32.partialorder %v6728_v56, %v5148_v30  ;;  %v2187_v52 = vsel %vm6889_vm5, %v6720_v59, inf  ;;  %v2189_v28 = vsel %vm6904_vm11, %v6724_v22, inf }
 0x665   :  { %vm6942_vm6 = vmand %vm12280_vm0, %vm12279_vm14  ;;  %v2184_v18 = vsel %vm12283_vm3, %v6756_v29, inf  ;;  %vm12287_vm14 = vcmp.lt.s32.totalorder %v4921_v58, 12  ;;  %vm12293_vm11 = vcmp.gt.f32.partialorder %v6716_v60, %v5252_v12  ;;  %vm12299_vm0 = vcmp.lt.s32.totalorder %v4921_v58, 13 }
 0x666   :  { %vm6955_vm9 = vmor %vm12284_vm10, %vm6795_vm1  ;;  %v2230_v47 = vmin.f32 %v2184_v18, %v2188_v14  ;;  %vm2103_vm1 = vcmp.eq.f32.partialorder %v6759_v63, %v5148_v30  ;;  %v2186_v26 = vsel %vm12293_vm11, %v6716_v60, inf  ;;  %v2216_v10 = vmin.f32 %v2185_v42, %v2189_v28 }
 0x667   :  { %vm6974_vm3 = vmand %vm2112_vm15, %vm12287_vm14  ;;  %vm12294_vm15 = vcmp.gt.f32.partialorder %v6724_v22, %v5252_v12  ;;  %vm12305_vm14 = vcmp.gt.f32.partialorder %v6728_v56, %v5252_v12  ;;  %vm12312_vm10 = vcmp.lt.s32.totalorder %v4921_v58, 14  ;;  %v2191_v7 = vsel %vm6955_vm9, %v6728_v56, inf }
 0x668   :  { %vm6983_vm5 = vmor %vm12290_vm4, %vm6812_vm8  ;;  %v2190_v3 = vsel %vm12294_vm15, %v6724_v22, inf  ;;  %vm2105_vm8 = vcmp.eq.f32.partialorder %v6745_v39, %v5148_v30  ;;  %vm12295_vm4 = vcmp.gt.f32.partialorder %v6736_v54, %v5148_v30  ;;  %vm12298_vm15 = vcmp.gt.f32.partialorder %v6756_v29, %v5148_v30 }
 0x669   :  { %vm7006_vm11 = vmor %vm12295_vm4, %vm6829_vm12  ;;  %v2183_v61 = vsel %vm12298_vm15, %v6756_v29, inf  ;;  %vm12302_vm4 = vcmp.gt.f32.partialorder %v6740_v5, %v5148_v30  ;;  %v2192_v20 = vsel %vm12305_vm14, %v6728_v56, inf  ;;  %v2231_v23 = vmin.f32 %v2186_v26, %v2190_v3 }
 0x66a   :  { %vm7023_vm12 = vmand %vm2114_vm2, %vm12299_vm0  ;;  %v2215_v27 = vmin.f32 %v2183_v61, %v2187_v52  ;;  %v2232_v51 = vmin.f32 %v2230_v47, %v2192_v20  ;;  %v2193_v48 = vsel %vm6983_vm5, %v6730_v2, inf  ;;  %vm12325_vm9 = vcmp.gt.f32.partialorder %v6736_v54, %v5252_v12 }
 0x66b   :  { %v12301_v13 = vsel %vm7023_vm12, 4294967295, %v12300_v13  ;;  %vm7032_vm15 = vmor %vm12302_vm4, %vm6846_vm7  ;;  %vm12306_vm7 = vcmp.gt.f32.partialorder %v6759_v63, %v5148_v30  ;;  %v2196_v14 = vsel %vm12325_vm9, %v6736_v54, inf  ;;  %v2218_v57 = vmin.f32 %v2216_v10, %v2193_v48 }
 0x66c   :  { %vm7050_vm4 = vmor %vm12306_vm7, %vm2103_vm1  ;;  %vm12309_vm1 = vcmp.gt.f32.partialorder %v6745_v39, %v5148_v30  ;;  %v2217_v18 = vmin.f32 %v2215_v27, %v2191_v7  ;;  %v7120_v42 = vadd.f32 %v2000_v55, %v1999_v6  ;;  %v2234_v47 = vmin.f32 %v2232_v51, %v2196_v14 }
 0x66d   :  { %v12308_v1 = vsel %vm7050_vm4, 4294967295, %v12307_v1  ;;  %vm7068_vm7 = vmor %vm12309_vm1, %vm2105_vm8  ;;  %vm12313_vm4 = vcmp.eq.f32.partialorder %v6799_v41, %v5252_v12  ;;  %vm12316_vm8 = vnez %v12266_v53  ;;  %vm12317_vm1 = vcmp.gt.f32.partialorder %v6745_v39, %v5252_v12 }
 0x66e   :  { %vm7083_vm12 = vmand %vm12313_vm4, %vm12312_vm10  ;;  %vm12320_vm10 = vcmp.eq.f32.partialorder %v6769_v31, %v5148_v30  ;;  %vm12321_vm4 = vcmp.gt.f32.partialorder %v6769_v31, %v5148_v30  ;;  %vm12333_vm2 = vcmp.gt.f32.partialorder %v6740_v5, %v5252_v12  ;;  %v2195_v3 = vsel %vm7006_vm11, %v6736_v54, inf }
 0x66f   :  { %vm7092_vm14 = vmor %vm12317_vm1, %vm12316_vm8  ;;  %vm12324_vm8 = vcmp.gt.f32.partialorder %v6730_v2, %v5252_v12  ;;  %vm12326_vm1 = vcmp.gt.f32.partialorder %v6769_v31, %v5252_v12  ;;  %v2198_v21 = vsel %vm12333_vm2, %v6740_v5, inf  ;;  %v2197_v61 = vsel %vm7032_vm15, %v6740_v5, inf }
 0x670   :  { %vm7108_vm0 = vmor %vm12321_vm4, %vm12320_vm10  ;;  %v2194_v8 = vsel %vm12324_vm8, %v6730_v2, inf  ;;  %vm12329_vm4 = vcmp.eq.f32.partialorder %v6771_v17, %v5148_v30  ;;  %vm12330_vm8 = vcmp.gt.f32.partialorder %v6771_v17, %v5148_v30  ;;  %vm12339_vm5 = vcmp.eq.f32.partialorder %v6801_v37, %v5252_v12 }
 0x671   :  { %vm7129_vm10 = vmor %vm12326_vm1, %vm6929_vm13  ;;  %v2233_v28 = vmin.f32 %v2231_v23, %v2194_v8  ;;  %vm12334_vm13 = vcmp.gt.f32.partialorder %v6759_v63, %v5252_v12  ;;  %vm12342_vm11 = vcmp.eq.f32.partialorder %v6784_v62, %v5148_v30  ;;  %vm12343_vm15 = vcmp.gt.f32.partialorder %v6784_v62, %v5148_v30 }
 0x672   :  { %vm7139_vm9 = vmor %vm12330_vm8, %vm12329_vm4  ;;  %v2200_v15 = vsel %vm12334_vm13, %v6759_v63, inf  ;;  %vm12335_vm4 = vcmp.gt.f32.partialorder %v6771_v17, %v5252_v12  ;;  %v2219_v19 = vmin.f32 %v2217_v18, %v2195_v3  ;;  %v2220_v20 = vmin.f32 %v2218_v57, %v2197_v61 }
 0x673   :  { %vm7160_vm8 = vmor %vm12335_vm4, %vm6942_vm6  ;;  %vm12338_vm4 = vcmp.lt.s32.totalorder %v4921_v58, 15  ;;  %v2002_v27 = vrot.slane %v7120_v42, 1  ;;  %v12347_v10 = vmov 0  ;;  %v2235_v55 = vmin.f32 %v2233_v28, %v2198_v21 }
 0x674   :  { %vm7181_vm1 = vmand %vm12339_vm5, %vm12338_vm4  ;;  %vm12346_vm4 = vcmp.gt.f32.partialorder %v6784_v62, %v5252_v12  ;;  %v2236_v23 = vmin.f32 %v2234_v47, %v2200_v15  ;;  %vm12349_vm6 = vcmp.eq.f32.partialorder %v6786_v50, %v5148_v30  ;;  %vm12350_vm5 = vcmp.gt.f32.partialorder %v6786_v50, %v5148_v30 }
 0x675   :  { %v12341_v44 = vsel %vm7181_vm1, 4294967295, %v12340_v44  ;;  %vm7191_vm2 = vmor %vm12343_vm15, %vm12342_vm11  ;;  %v2201_v48 = vsel %vm7068_vm7, %v6745_v39, inf  ;;  %vm12362_vm7 = vcmp.eq.f32.partialorder %v6801_v37, %v5148_v30  ;;  %vm12363_vm15 = vcmp.gt.f32.partialorder %v6801_v37, %v5148_v30 }
 0x676   :  { %vm7205_vm13 = vmor %vm12346_vm4, %vm6974_vm3  ;;  %vm12357_vm3 = vnez %v12308_v1  ;;  %vm12359_vm4 = vcmp.gt.f32.partialorder %v6799_v41, %v5148_v30  ;;  %v12364_v1 = vmov 0  ;;  %v2222_v8 = vmin.f32 %v2220_v20, %v2201_v48 }
 0x677   :  { %v12348_v10 = vsel %vm7205_vm13, 4294967295, %v12347_v10  ;;  %vm7219_vm1 = vmor %vm12350_vm5, %vm12349_vm6  ;;  %vm12353_vm13 = vnez %v12301_v13  ;;  %vm12354_vm6 = vcmp.gt.f32.partialorder %v6786_v50, %v5252_v12  ;;  %v2199_v7 = vsel %vm12357_vm3, %v6759_v63, inf }
 0x678   :  { %vm7236_vm5 = vmor %vm12354_vm6, %vm12353_vm13  ;;  %vm12358_vm6 = vcmp.eq.f32.partialorder %v6799_v41, %v5148_v30  ;;  %v12360_v13 = vmov 0  ;;  %v2221_v9 = vmin.f32 %v2219_v19, %v2199_v7  ;;  %v12368_v14 = vmov 0 }
 0x679   :  { %vm7258_vm3 = vmor %vm12359_vm4, %vm12358_vm6  ;;  %v2202_v18 = vsel %vm7092_vm14, %v6745_v39, inf  ;;  %vm2261_vm13 = vcmp.le.f32.partialorder %v6730_v2, %v5148_v30  ;;  %vm2277_vm4 = vcmp.lt.f32.partialorder %v5148_v30, %v6786_v50  ;;  %vm12374_vm14 = vcmp.gt.f32.partialorder %v6799_v41, %v5252_v12 }
 0x67a   :  { %v12361_v13 = vsel %vm7258_vm3, 4294967295, %v12360_v13  ;;  %vm7268_vm11 = vmor %vm12363_vm15, %vm12362_vm7  ;;  %vm12366_vm3 = vcmp.lt.f32.partialorder %v5148_v30, %v6759_v63  ;;  %vm12367_vm15 = vcmp.le.f32.partialorder %v6756_v29, %v5148_v30  ;;  %v2203_v28 = vsel %vm7108_vm0, %v6769_v31, inf }
 0x67b   :  { %v12365_v1 = vsel %vm7268_vm11, 4294967295, %v12364_v1  ;;  %vm7284_vm7 = vmand %vm12367_vm15, %vm12366_vm3  ;;  %vm12370_vm3 = vcmp.lt.f32.partialorder %v5148_v30, %v6745_v39  ;;  %vm12371_vm15 = vcmp.le.f32.partialorder %v6716_v60, %v5148_v30  ;;  %v2237_v47 = vmin.f32 %v2235_v55, %v2202_v18 }
 0x67c   :  { %v12369_v14 = vsel %vm7284_vm7, 4294967295, %v12368_v14  ;;  %vm7305_vm7 = vmand %vm12371_vm15, %vm12370_vm3  ;;  %vm12377_vm11 = vcmp.lt.f32.partialorder %v5252_v12, %v6745_v39  ;;  %v2345_v53 = vrot.slane %v5256_v36, 1  ;;  %v2204_v21 = vsel %vm7129_vm10, %v6769_v31, inf }
 0x67d   :  { %vm7314_vm6 = vmor %vm12374_vm14, %vm7083_vm12  ;;  %vm12378_vm12 = vcmp.le.f32.partialorder %v6716_v60, %v5252_v12  ;;  %v2205_v15 = vsel %vm7139_vm9, %v6771_v17, inf  ;;  %v2346_v39 = vrot.slane %v5256_v36, 2  ;;  %v2347_v52 = vrot.slane %v5256_v36, 3 }
 0x67e   :  { %vm7331_vm14 = vmand %vm12378_vm12, %vm12377_vm11  ;;  %vm12381_vm11 = vcmp.lt.f32.partialorder %v5148_v30, %v6769_v31  ;;  %vm12382_vm12 = vcmp.le.f32.partialorder %v6720_v59, %v5148_v30  ;;  %v2223_v6 = vmin.f32 %v2221_v9, %v2203_v28  ;;  %v2224_v3 = vmin.f32 %v2222_v8, %v2205_v15 }
 0x67f   :  { %vm7352_vm3 = vmand %vm12382_vm12, %vm12381_vm11  ;;  %vm12385_vm15 = vcmp.lt.f32.partialorder %v5148_v30, %v6771_v17  ;;  %vm12386_vm11 = vcmp.le.f32.partialorder %v6724_v22, %v5148_v30  ;;  %v2348_v19 = vrot.slane %v5256_v36, 4  ;;  %v2349_v20 = vrot.slane %v5256_v36, 5 }
 0x680   :  { %vm7368_vm12 = vmand %vm12386_vm11, %vm12385_vm15  ;;  %v2206_v55 = vsel %vm7160_vm8, %v6771_v17, inf  ;;  %v2238_v7 = vmin.f32 %v2236_v23, %v2204_v21  ;;  %vm12389_vm15 = vcmp.lt.f32.partialorder %v5252_v12, %v6769_v31  ;;  %vm12390_vm11 = vcmp.le.f32.partialorder %v6720_v59, %v5252_v12 }
 0x681   :  { %vm7387_vm0 = vmand %vm12390_vm11, %vm12389_vm15  ;;  %v2350_v26 = vrot.slane %v5256_v36, 6  ;;  %v2351_v23 = vrot.slane %v5256_v36, 7  ;;  %v2207_v9 = vsel %vm7191_vm2, %v6784_v62, inf  ;;  %v2239_v8 = vmin.f32 %v2237_v47, %v2206_v55 }
 0x682   :  { %vm12393_vm10 = vcmp.lt.f32.partialorder %v5252_v12, %v6771_v17  ;;  %vm12394_vm15 = vcmp.le.f32.partialorder %v6724_v22, %v5252_v12  ;;  %v2352_v31 = vrot.slane %v5342_v32, 1  ;;  %v2353_v18 = vrot.slane %v5342_v32, 2 }
 0x683   :  { %vm7404_vm11 = vmand %vm12394_vm15, %vm12393_vm10  ;;  %vm12397_vm2 = vnez %v12341_v44  ;;  %vm12398_vm9 = vcmp.gt.f32.partialorder %v6801_v37, %v5252_v12  ;;  %v2209_v22 = vsel %vm7219_vm1, %v6786_v50, inf  ;;  %vm2266_vm10 = vcmp.le.f32.partialorder %v6740_v5, %v5252_v12 }
 0x684   :  { %vm7415_vm8 = vmor %vm12398_vm9, %vm12397_vm2  ;;  %v2301_v17 = vsel %vm7305_vm7, 1.0, %v4314_v0  ;;  %v2303_v44 = vsel %vm7352_vm3, 1.0, %v4314_v0  ;;  %v2305_v28 = vsel %vm7368_vm12, 1.0, %v4314_v0  ;;  %vm12401_vm9 = vnez %v12348_v10 }
 0x685   :  { %v2208_v45 = vsel %vm12401_vm9, %v6784_v62, inf  ;;  %v2210_v47 = vsel %vm7236_vm5, %v6786_v50, inf  ;;  %v2225_v21 = vmin.f32 %v2223_v6, %v2207_v9  ;;  %v2226_v15 = vmin.f32 %v2224_v3, %v2209_v22  ;;  %vm7473_vm9 = vmand %vm2261_vm13, %vm2277_vm4 }
 0x686   :  { %vm12402_vm1 = vcmp.lt.f32.partialorder %v5252_v12, %v6759_v63  ;;  %vm12403_vm7 = vcmp.le.f32.partialorder %v6756_v29, %v5252_v12  ;;  %vm12404_vm12 = vcmp.lt.f32.partialorder %v5148_v30, %v6784_v62  ;;  %vm12405_vm15 = vcmp.le.f32.partialorder %v6728_v56, %v5148_v30 }
 0x687   :  { %vm2284_vm3 = vmand %vm12403_vm7, %vm12402_vm1  ;;  %vm12408_vm5 = vnez %v12369_v14  ;;  %v2302_v63 = vsel %vm7331_vm14, 1.0, %v4314_v0  ;;  %v2304_v29 = vsel %vm7387_vm0, 1.0, %v4314_v0  ;;  %v2306_v38 = vsel %vm7404_vm11, 1.0, %v4314_v0 }
 0x688   :  { %vm7451_vm2 = vmand %vm12405_vm15, %vm12404_vm12  ;;  %v2299_v51 = vsel %vm12408_vm5, 1.0, %v4314_v0  ;;  %v2240_v60 = vmin.f32 %v2238_v7, %v2208_v45  ;;  %v2241_v6 = vmin.f32 %v2239_v8, %v2210_v47  ;;  %v2316_v3 = vmax.f32 %v2301_v17, %v2305_v28 }
 0x689   :  { %v2315_v11 = vmax.f32 %v2299_v51, %v2303_v44  ;;  %vm12411_vm14 = vnez %v12361_v13  ;;  %vm12412_vm0 = vnez %v12365_v1  ;;  %vm12413_vm11 = vcmp.lt.f32.partialorder %v5252_v12, %v6784_v62 }
 0x68a   :  { %v2211_v61 = vsel %vm12411_vm14, %v6799_v41, inf  ;;  %v2213_v55 = vsel %vm12412_vm0, %v6801_v37, inf  ;;  %vm12414_vm1 = vcmp.le.f32.partialorder %v6728_v56, %v5252_v12  ;;  %v2300_v48 = vsel %vm2284_vm3, 1.0, %v4314_v0 }
 0x68b   :  { %vm7489_vm13 = vmand %vm12414_vm1, %vm12413_vm11  ;;  %v2354_v9 = vrot.slane %v5342_v32, 3  ;;  %v2227_v13 = vmin.f32 %v2225_v21, %v2211_v61  ;;  %v2228_v8 = vmin.f32 %v2226_v15, %v2213_v55  ;;  %vm12417_vm4 = vcmp.lt.f32.partialorder %v5252_v12, %v6786_v50 }
 0x68c   :  { %vm12418_vm7 = vcmp.le.f32.partialorder %v6730_v2, %v5252_v12  ;;  %v2322_v62 = vmax.f32 %v2300_v48, %v2304_v29  ;;  %v2323_v1 = vmax.f32 %v2302_v63, %v2306_v38  ;;  %v2212_v56 = vsel %vm7314_vm6, %v6799_v41, inf }
 0x68d   :  { %vm2294_vm12 = vmand %vm12418_vm7, %vm12417_vm4  ;;  %v2214_v59 = vsel %vm7415_vm8, %v6801_v37, inf  ;;  %vm12419_vm3 = vcmp.lt.f32.partialorder %v5148_v30, %v6799_v41  ;;  %vm12420_vm15 = vcmp.le.f32.partialorder %v6736_v54, %v5148_v30  ;;  %v2307_v2 = vsel %vm7451_vm2, 1.0, %v4314_v0 }
 0x68e   :  { %vm7513_vm5 = vmand %vm12420_vm15, %vm12419_vm3  ;;  %v2309_v57 = vsel %vm7473_vm9, 1.0, %v4314_v0  ;;  %v2242_v35 = vmin.f32 %v2240_v60, %v2212_v56  ;;  %v2243_v22 = vmin.f32 %v2241_v6, %v2214_v59  ;;  %vm12423_vm6 = vcmp.lt.f32.partialorder %v5148_v30, %v6801_v37 }
 0x68f   :  { %vm12424_vm8 = vcmp.le.f32.partialorder %v6740_v5, %v5148_v30  ;;  %v2317_v17 = vmax.f32 %v2315_v11, %v2307_v2  ;;  %v2318_v44 = vmax.f32 %v2316_v3, %v2309_v57  ;;  %vm12425_vm0 = vcmp.lt.f32.partialorder %v5252_v12, %v6799_v41 }
 0x690   :  { %vm2297_vm14 = vmand %vm12424_vm8, %vm12423_vm6  ;;  %vm12426_vm2 = vcmp.le.f32.partialorder %v6736_v54, %v5252_v12  ;;  %v2308_v45 = vsel %vm7489_vm13, 1.0, %v4314_v0  ;;  %v2310_v47 = vsel %vm2294_vm12, 1.0, %v4314_v0  ;;  %v2355_v21 = vrot.slane %v5342_v32, 4 }
 0x691   :  { %vm7535_vm11 = vmand %vm12426_vm2, %vm12425_vm0  ;;  %v2356_v15 = vrot.slane %v5342_v32, 5  ;;  %v2229_v10 = vmin.f32 %v2227_v13, %v2228_v8  ;;  %vm12429_vm9 = vcmp.lt.f32.partialorder %v5252_v12, %v6801_v37  ;;  %v2324_v54 = vmax.f32 %v2322_v62, %v2308_v45 }
 0x692   :  { %vm2298_vm1 = vmand %vm2266_vm10, %vm12429_vm9  ;;  %v2325_v41 = vmax.f32 %v2323_v1, %v2310_v47  ;;  %v2357_v51 = vrot.slane %v5342_v32, 6  ;;  %v2311_v63 = vsel %vm7513_vm5, 1.0, %v4314_v0  ;;  %v2313_v29 = vsel %vm2297_vm14, 1.0, %v4314_v0 }
 0x693   :  { %v2358_v38 = vrot.slane %v5342_v32, 7  ;;  %v7559_v60 = vperm.slane %v2345_v53, 0  ;;  %v2244_v37 = vmin.f32 %v2242_v35, %v2243_v22  ;;  %v2319_v6 = vmax.f32 %v2317_v17, %v2311_v63 }
 0x694   :  { %v2320_v5 = vmax.f32 %v2318_v44, %v2313_v29  ;;  %v7563_v14 = vperm.slane %v2346_v39, 0  ;;  %v2312_v11 = vsel %vm7535_vm11, 1.0, %v4314_v0  ;;  %v2314_v3 = vsel %vm2298_vm1, 1.0, %v4314_v0 }
 0x695   :  { %v7570_v61 = vperm.slane %v5256_v36, 0  ;;  %v7574_v53 = vperm.slane %v2347_v52, 0  ;;  %v2247_v55 = vsub.f32 %v2229_v10, %v5148_v30  ;;  %v2326_v7 = vmax.f32 %v2324_v54, %v2312_v11 }
 0x696   :  { %v2327_v48 = vmax.f32 %v2325_v41, %v2314_v3  ;;  %v7579_v39 = vperm.slane %v2348_v19, 0  ;;  %vm2245_vm10 = vcmp.lt.f32.partialorder %v2229_v10, inf  ;;  %v7583_v13 = vperm.slane %v2349_v20, 0 }
 0x697   :  { %v7587_v8 = vperm.slane %v2350_v26, 0  ;;  %vm2425_vm13 = vcmp.eq.f32.partialorder %v7559_v60, %v5256_v36  ;;  %v2248_v30 = vsub.f32 %v2244_v37, %v5252_v12  ;;  %v2321_v52 = vmax.f32 %v2319_v6, %v2320_v5 }
 0x698   :  { %v7594_v62 = vperm.slane %v2351_v23, 0  ;;  %vm2427_vm4 = vcmp.eq.f32.partialorder %v7563_v14, %v5256_v36  ;;  %vm2246_vm7 = vcmp.lt.f32.partialorder %v2244_v37, inf  ;;  %v7599_v19 = vperm.slane %v5342_v32, 0 }
 0x699   :  { %v7603_v20 = vperm.slane %v2352_v31, 0  ;;  %vm2429_vm12 = vcmp.eq.f32.partialorder %v7574_v53, %v5256_v36  ;;  %v2249_v12 = vsel %vm2245_vm10, %v2247_v55, 0.0  ;;  %v2328_v26 = vmax.f32 %v2326_v7, %v2327_v48 }
 0x69a   :  { %v7609_v23 = vperm.slane %v2353_v18, 0  ;;  %vm2431_vm3 = vcmp.eq.f32.partialorder %v7579_v39, %v5256_v36  ;;  %vm12430_vm15 = vcmp.lt.s32.totalorder %v4888_v33, 1  ;;  %v7619_v31 = vperm.slane %v2354_v9, 0 }
 0x69b   :  { %vm7615_vm5 = vmand %vm2425_vm13, %vm12430_vm15  ;;  %v7621_v56 = vperm.slane %v2355_v21, 0  ;;  %v7623_v59 = vperm.slane %v2356_v15, 0  ;;  %vm2433_vm6 = vcmp.eq.f32.partialorder %v7583_v13, %v5256_v36  ;;  %vm12433_vm8 = vcmp.lt.s32.totalorder %v4888_v33, 2 }
 0x69c   :  { %vm7629_vm14 = vmand %vm2427_vm4, %vm12433_vm8  ;;  %v2250_v50 = vsel %vm2246_vm7, %v2248_v30, 0.0  ;;  %vm2329_vm0 = vcmp.gt.f32.partialorder %v2321_v52, 0.0  ;;  %v7633_v2 = vperm.slane %v2357_v51, 0  ;;  %vm2435_vm2 = vcmp.eq.f32.partialorder %v7587_v8, %v5256_v36 }
 0x69d   :  { %vm12436_vm11 = vcmp.lt.s32.totalorder %v4888_v33, 3  ;;  %v2331_v57 = vsel %vm2329_vm0, %v2249_v12, 0.0  ;;  %v7646_v35 = vperm.slane %v2358_v38, 0  ;;  %vm2437_vm10 = vcmp.eq.f32.partialorder %v7594_v62, %v5256_v36 }
 0x69e   :  { %vm7642_vm9 = vmand %vm2429_vm12, %vm12436_vm11  ;;  %vm12439_vm13 = vcmp.lt.s32.totalorder %v4888_v33, 4  ;;  %vm2330_vm7 = vcmp.gt.f32.partialorder %v2328_v26, 0.0  ;;  %vm2442_vm8 = vcmp.eq.f32.partialorder %v7603_v20, %v5342_v32  ;;  %vm12442_vm0 = vcmp.lt.s32.totalorder %v4888_v33, 5 }
 0x69f   :  { %vm7657_vm4 = vmand %vm2431_vm3, %vm12439_vm13  ;;  %v2332_v44 = vsel %vm2330_vm7, %v2250_v50, 0.0  ;;  %vm2393_vm3 = vcmp.gt.f32.partialorder %v7559_v60, %v5256_v36  ;;  %vm12445_vm12 = vcmp.lt.s32.totalorder %v4888_v33, 6  ;;  %vm12448_vm13 = vcmp.lt.s32.totalorder %v4888_v33, 7 }
 0x6a0   :  { %vm7672_vm11 = vmand %vm2433_vm6, %vm12442_vm0  ;;  %v2333_v45 = vadd.f32 %v2332_v44, %v2331_v57  ;;  %vm12451_vm6 = vcmp.lt.s32.totalorder %v4921_v58, 9  ;;  %vm2446_vm0 = vcmp.eq.f32.partialorder %v7619_v31, %v5342_v32  ;;  %v12488_v18 = vmov 0 }
 0x6a1   :  { %vm7687_vm15 = vmand %vm2435_vm2, %vm12445_vm12  ;;  %vm2450_vm12 = vcmp.eq.f32.partialorder %v7623_v59, %v5342_v32  ;;  %v12535_v7 = vmov 0  ;;  %v2683_v6 = vrot.slane %v5373_v25, 3  ;;  %v2685_v63 = vrot.slane %v5373_v25, 5 }
 0x6a2   :  { %vm7702_vm1 = vmand %vm2437_vm10, %vm12448_vm13  ;;  %vm12454_vm13 = vcmp.gt.f32.partialorder %v7563_v14, %v5256_v36  ;;  %v2334_v51 = vrot.slane %v2333_v45, 4  ;;  %v2690_v38 = vrot.slane %v5447_v34, 3  ;;  %v2691_v50 = vrot.slane %v5447_v34, 4 }
 0x6a3   :  { %vm7719_vm10 = vmand %vm2442_vm8, %vm12451_vm6  ;;  %vm12459_vm6 = vcmp.gt.f32.partialorder %v7574_v53, %v5256_v36  ;;  %v2693_v22 = vrot.slane %v5447_v34, 6 }
 0x6a4   :  { %vm7728_vm2 = vmor %vm12454_vm13, %vm7629_vm14  ;;  %v2335_v26 = vadd.f32 %v2334_v51, %v2333_v45  ;;  %v2681_v45 = vrot.slane %v5373_v25, 1 }
 0x6a5   :  { %vm7747_vm14 = vmor %vm2393_vm3, %vm7615_vm5  ;;  %vm12462_vm5 = vcmp.gt.f32.partialorder %v7563_v14, %v5342_v32  ;;  %v2523_v29 = vsel %vm7728_vm2, %v7563_v14, inf  ;;  %vm12470_vm2 = vcmp.gt.f32.partialorder %v7570_v61, %v5342_v32 }
 0x6a6   :  { %vm7762_vm8 = vmor %vm12459_vm6, %vm7642_vm9  ;;  %v2524_v41 = vsel %vm12462_vm5, %v7563_v14, inf  ;;  %vm12463_vm9 = vcmp.lt.s32.totalorder %v4921_v58, 10  ;;  %vm12464_vm6 = vcmp.eq.f32.partialorder %v7609_v23, %v5342_v32  ;;  %v2520_v37 = vsel %vm12470_vm2, %v7570_v61, inf }
 0x6a7   :  { %vm7781_vm13 = vmand %vm12464_vm6, %vm12463_vm9  ;;  %vm12467_vm9 = vcmp.lt.s32.totalorder %v4921_v58, 11  ;;  %vm12471_vm5 = vcmp.gt.f32.partialorder %v7579_v39, %v5256_v36  ;;  %v2521_v11 = vsel %vm7747_vm14, %v7559_v60, inf  ;;  %v2525_v3 = vsel %vm7762_vm8, %v7574_v53, inf }
 0x6a8   :  { %vm7801_vm6 = vmand %vm2446_vm0, %vm12467_vm9  ;;  %vm12474_vm0 = vcmp.gt.f32.partialorder %v7570_v61, %v5256_v36  ;;  %v2566_v55 = vmin.f32 %v2520_v37, %v2524_v41  ;;  %vm12476_vm9 = vcmp.eq.f32.partialorder %v7621_v56, %v5342_v32  ;;  %vm12479_vm14 = vcmp.gt.f32.partialorder %v7583_v13, %v5256_v36 }
 0x6a9   :  { %vm7814_vm7 = vmor %vm12471_vm5, %vm7657_vm4  ;;  %v2519_v5 = vsel %vm12474_vm0, %v7570_v61, inf  ;;  %vm2439_vm4 = vcmp.eq.f32.partialorder %v7599_v19, %v5256_v36  ;;  %vm12475_vm5 = vcmp.lt.s32.totalorder %v4921_v58, 12  ;;  %vm12482_vm8 = vcmp.gt.f32.partialorder %v7559_v60, %v5342_v32 }
 0x6aa   :  { %vm7835_vm2 = vmand %vm12476_vm9, %vm12475_vm5  ;;  %v2522_v30 = vsel %vm12482_vm8, %v7559_v60, inf  ;;  %vm12483_vm5 = vcmp.gt.f32.partialorder %v7574_v53, %v5342_v32  ;;  %v2551_v12 = vmin.f32 %v2519_v5, %v2523_v29  ;;  %vm12484_vm8 = vcmp.gt.f32.partialorder %v7587_v8, %v5256_v36 }
 0x6ab   :  { %vm7844_vm0 = vmor %vm12479_vm14, %vm7672_vm11  ;;  %v2526_v52 = vsel %vm12483_vm5, %v7574_v53, inf  ;;  %vm12487_vm11 = vcmp.lt.s32.totalorder %v4921_v58, 13  ;;  %vm12493_vm9 = vcmp.gt.f32.partialorder %v7579_v39, %v5342_v32  ;;  %v2552_v57 = vmin.f32 %v2521_v11, %v2525_v3 }
 0x6ac   :  { %vm7867_vm3 = vmor %vm12484_vm8, %vm7687_vm15  ;;  %vm12490_vm15 = vcmp.gt.f32.partialorder %v7594_v62, %v5256_v36  ;;  %v2528_v9 = vsel %vm12493_vm9, %v7579_v39, inf  ;;  %v2527_v17 = vsel %vm7814_vm7, %v7579_v39, inf  ;;  %v2567_v44 = vmin.f32 %v2522_v30, %v2526_v52 }
 0x6ad   :  { %vm7880_vm14 = vmand %vm2450_vm12, %vm12487_vm11  ;;  %vm12494_vm11 = vcmp.gt.f32.partialorder %v7599_v19, %v5256_v36  ;;  %v2568_v28 = vmin.f32 %v2566_v55, %v2528_v9  ;;  %vm12501_vm7 = vcmp.eq.f32.partialorder %v7603_v20, %v5256_v36  ;;  %v2553_v15 = vmin.f32 %v2551_v12, %v2527_v17 }
 0x6ae   :  { %v12489_v18 = vsel %vm7880_vm14, 4294967295, %v12488_v18  ;;  %vm7889_vm8 = vmor %vm12490_vm15, %vm7702_vm1  ;;  %vm12502_vm1 = vcmp.gt.f32.partialorder %v7603_v20, %v5256_v36  ;;  %v2336_v10 = vrot.slane %v2335_v26, 2  ;;  %vm12505_vm9 = vcmp.gt.f32.partialorder %v7603_v20, %v5342_v32 }
 0x6af   :  { %vm7905_vm5 = vmor %vm12494_vm11, %vm2439_vm4  ;;  %vm12497_vm4 = vcmp.lt.s32.totalorder %v4921_v58, 14  ;;  %vm12498_vm11 = vcmp.eq.f32.partialorder %v7633_v2, %v5342_v32  ;;  %v2529_v41 = vsel %vm7844_vm0, %v7583_v13, inf  ;;  %vm12508_vm15 = vcmp.eq.f32.partialorder %v7609_v23, %v5256_v36 }
 0x6b0   :  { %vm7923_vm12 = vmand %vm12498_vm11, %vm12497_vm4  ;;  %vm12509_vm11 = vcmp.gt.f32.partialorder %v7609_v23, %v5256_v36  ;;  %vm12513_vm0 = vcmp.gt.f32.partialorder %v7587_v8, %v5342_v32  ;;  %v2554_v37 = vmin.f32 %v2552_v57, %v2529_v41  ;;  %v2531_v5 = vsel %vm7867_vm3, %v7587_v8, inf }
 0x6b1   :  { %vm7933_vm14 = vmor %vm12502_vm1, %vm12501_vm7  ;;  %v2532_v29 = vsel %vm12513_vm0, %v7587_v8, inf  ;;  %vm12521_vm3 = vcmp.gt.f32.partialorder %v7594_v62, %v5342_v32  ;;  %v2555_v48 = vmin.f32 %v2553_v15, %v2531_v5  ;;  %v8007_v30 = vadd.f32 %v2336_v10, %v2335_v26 }
 0x6b2   :  { %vm7948_vm1 = vmor %vm12505_vm9, %vm7719_vm10  ;;  %vm12512_vm10 = vcmp.gt.f32.partialorder %v7583_v13, %v5342_v32  ;;  %v2570_v3 = vmin.f32 %v2568_v28, %v2532_v29  ;;  %vm12517_vm9 = vcmp.eq.f32.partialorder %v7619_v31, %v5256_v36  ;;  %v2534_v55 = vsel %vm12521_vm3, %v7594_v62, inf }
 0x6b3   :  { %vm7963_vm4 = vmor %vm12509_vm11, %vm12508_vm15  ;;  %v2530_v51 = vsel %vm12512_vm10, %v7583_v13, inf  ;;  %vm12514_vm15 = vcmp.gt.f32.partialorder %v7609_v23, %v5342_v32  ;;  %vm12522_vm10 = vcmp.gt.f32.partialorder %v7619_v31, %v5342_v32  ;;  %v12523_v52 = vmov 0 }
 0x6b4   :  { %vm7982_vm11 = vmor %vm12514_vm15, %vm7781_vm13  ;;  %v2569_v11 = vmin.f32 %v2567_v44, %v2530_v51  ;;  %vm12518_vm13 = vcmp.gt.f32.partialorder %v7619_v31, %v5256_v36  ;;  %v2533_v12 = vsel %vm7889_vm8, %v7594_v62, inf  ;;  %vm12526_vm3 = vcmp.eq.f32.partialorder %v7621_v56, %v5256_v36 }
 0x6b5   :  { %vm7999_vm15 = vmor %vm12518_vm13, %vm12517_vm9  ;;  %vm12525_vm9 = vcmp.gt.f32.partialorder %v7599_v19, %v5342_v32  ;;  %v2556_v26 = vmin.f32 %v2554_v37, %v2533_v12  ;;  %vm12530_vm0 = vcmp.gt.f32.partialorder %v7621_v56, %v5342_v32  ;;  %v2535_v9 = vsel %vm7905_vm5, %v7599_v19, inf }
 0x6b6   :  { %vm8014_vm7 = vmor %vm12522_vm10, %vm7801_vm6  ;;  %v2536_v1 = vsel %vm12525_vm9, %v7599_v19, inf  ;;  %vm12527_vm6 = vcmp.gt.f32.partialorder %v7621_v56, %v5256_v36  ;;  %v2571_v57 = vmin.f32 %v2569_v11, %v2534_v55  ;;  %vm12533_vm13 = vcmp.lt.s32.totalorder %v4921_v58, 15 }
 0x6b7   :  { %v12524_v52 = vsel %vm8014_vm7, 4294967295, %v12523_v52  ;;  %vm8033_vm10 = vmor %vm12527_vm6, %vm12526_vm3  ;;  %v2572_v17 = vmin.f32 %v2570_v3, %v2536_v1  ;;  %vm12537_vm5 = vcmp.eq.f32.partialorder %v7623_v59, %v5256_v36  ;;  %vm12538_vm9 = vcmp.gt.f32.partialorder %v7623_v59, %v5256_v36 }
 0x6b8   :  { %vm8048_vm7 = vmor %vm12530_vm0, %vm7835_vm2  ;;  %vm12534_vm2 = vcmp.eq.f32.partialorder %v7646_v35, %v5342_v32  ;;  %v2557_v44 = vmin.f32 %v2555_v48, %v2535_v9  ;;  %v12543_v28 = vmov 0  ;;  %v2537_v15 = vsel %vm7933_vm14, %v7603_v20, inf }
 0x6b9   :  { %vm8064_vm0 = vmand %vm12534_vm2, %vm12533_vm13  ;;  %vm2607_vm3 = vcmp.lt.f32.partialorder %v5256_v36, %v7609_v23  ;;  %vm12546_vm14 = vcmp.gt.f32.partialorder %v7633_v2, %v5256_v36  ;;  %v2538_v47 = vsel %vm7948_vm1, %v7603_v20, inf  ;;  %v2558_v10 = vmin.f32 %v2556_v26, %v2537_v15 }
 0x6ba   :  { %v12536_v7 = vsel %vm8064_vm0, 4294967295, %v12535_v7  ;;  %vm8074_vm8 = vmor %vm12538_vm9, %vm12537_vm5  ;;  %vm12541_vm0 = vnez %v12489_v18  ;;  %vm12542_vm9 = vcmp.gt.f32.partialorder %v7623_v59, %v5342_v32  ;;  %vm12549_vm13 = vcmp.gt.f32.partialorder %v7633_v2, %v5342_v32 }
 0x6bb   :  { %vm8091_vm5 = vmor %vm12542_vm9, %vm12541_vm0  ;;  %vm2609_vm0 = vcmp.lt.f32.partialorder %v5256_v36, %v7619_v31  ;;  %vm12545_vm9 = vcmp.eq.f32.partialorder %v7633_v2, %v5256_v36  ;;  %v2539_v54 = vsel %vm7963_vm4, %v7609_v23, inf  ;;  %v2573_v51 = vmin.f32 %v2571_v57, %v2538_v47 }
 0x6bc   :  { %v12544_v28 = vsel %vm8091_vm5, 4294967295, %v12543_v28  ;;  %vm8114_vm5 = vmor %vm12546_vm14, %vm12545_vm9  ;;  %v2682_v29 = vrot.slane %v5373_v25, 2  ;;  %v2540_v37 = vsel %vm7982_vm11, %v7609_v23, inf  ;;  %v2559_v5 = vmin.f32 %v2557_v44, %v2539_v54 }
 0x6bd   :  { %vm8130_vm9 = vmor %vm12549_vm13, %vm7923_vm12  ;;  %vm12552_vm12 = vcmp.eq.f32.partialorder %v7646_v35, %v5256_v36  ;;  %vm12553_vm13 = vcmp.gt.f32.partialorder %v7646_v35, %v5256_v36  ;;  %vm12556_vm1 = vcmp.lt.f32.partialorder %v5256_v36, %v7599_v19  ;;  %v2684_v3 = vrot.slane %v5373_v25, 4 }
 0x6be   :  { %vm8149_vm6 = vmor %vm12553_vm13, %vm12552_vm12  ;;  %vm12557_vm12 = vcmp.le.f32.partialorder %v7570_v61, %v5256_v36  ;;  %v2541_v55 = vsel %vm7999_vm15, %v7619_v31, inf  ;;  %v2574_v48 = vmin.f32 %v2572_v17, %v2540_v37  ;;  %v2686_v1 = vrot.slane %v5373_v25, 6 }
 0x6bf   :  { %vm8166_vm13 = vmand %vm12557_vm12, %vm12556_vm1  ;;  %vm12560_vm1 = vcmp.lt.f32.partialorder %v5256_v36, %v7603_v20  ;;  %vm12561_vm12 = vcmp.le.f32.partialorder %v7559_v60, %v5256_v36  ;;  %vm12564_vm15 = vnez %v12524_v52  ;;  %v2560_v9 = vmin.f32 %v2558_v10, %v2541_v55 }
 0x6c0   :  { %vm8185_vm4 = vmand %vm12561_vm12, %vm12560_vm1  ;;  %v2542_v26 = vsel %vm12564_vm15, %v7619_v31, inf  ;;  %vm2596_vm14 = vcmp.le.f32.partialorder %v7579_v39, %v5342_v32  ;;  %vm12565_vm1 = vcmp.lt.f32.partialorder %v5342_v32, %v7603_v20  ;;  %vm12566_vm12 = vcmp.le.f32.partialorder %v7559_v60, %v5342_v32 }
 0x6c1   :  { %vm8204_vm2 = vmand %vm12566_vm12, %vm12565_vm1  ;;  %v2687_v52 = vrot.slane %v5373_v25, 7  ;;  %v2688_v17 = vrot.slane %v5447_v34, 1  ;;  %v2543_v44 = vsel %vm8033_vm10, %v7621_v56, inf  ;;  %v2575_v15 = vmin.f32 %v2573_v51, %v2542_v26 }
 0x6c2   :  { %vm12569_vm1 = vcmp.le.f32.partialorder %v7563_v14, %v5256_v36  ;;  %v2689_v20 = vrot.slane %v5447_v34, 2  ;;  %v2544_v47 = vsel %vm8048_vm7, %v7621_v56, inf  ;;  %v2561_v10 = vmin.f32 %v2559_v5, %v2543_v44 }
 0x6c3   :  { %vm8223_vm12 = vmand %vm12569_vm1, %vm2607_vm3  ;;  %vm12572_vm3 = vcmp.le.f32.partialorder %v7574_v53, %v5256_v36  ;;  %v2692_v51 = vrot.slane %v5447_v34, 5  ;;  %v2545_v37 = vsel %vm8074_vm8, %v7623_v59, inf  ;;  %v2576_v5 = vmin.f32 %v2574_v48, %v2544_v47 }
 0x6c4   :  { %vm8242_vm1 = vmand %vm12572_vm3, %vm2609_vm0  ;;  %vm12575_vm0 = vcmp.lt.f32.partialorder %v5342_v32, %v7609_v23  ;;  %vm12576_vm3 = vcmp.le.f32.partialorder %v7563_v14, %v5342_v32  ;;  %v2694_v48 = vrot.slane %v5447_v34, 7  ;;  %vm12579_vm8 = vnez %v12544_v28 }
 0x6c5   :  { %vm8261_vm10 = vmand %vm12576_vm3, %vm12575_vm0  ;;  %v2546_v26 = vsel %vm12579_vm8, %v7623_v59, inf  ;;  %v2562_v44 = vmin.f32 %v2560_v9, %v2545_v37  ;;  %vm12580_vm7 = vcmp.lt.f32.partialorder %v5342_v32, %v7619_v31  ;;  %vm12581_vm0 = vcmp.le.f32.partialorder %v7574_v53, %v5342_v32 }
 0x6c6   :  { %vm8278_vm3 = vmand %vm12581_vm0, %vm12580_vm7  ;;  %v8283_v23 = vperm.slane %v5373_v25, 0  ;;  %v8285_v47 = vperm.slane %v2681_v45, 0  ;;  %vm12584_vm8 = vnez %v12536_v7  ;;  %vm12585_vm11 = vcmp.gt.f32.partialorder %v7646_v35, %v5342_v32 }
 0x6c7   :  { %vm8292_vm15 = vmor %vm12585_vm11, %vm12584_vm8  ;;  %vm2602_vm7 = vcmp.le.f32.partialorder %v7594_v62, %v5342_v32  ;;  %v2637_v53 = vsel %vm8185_vm4, 1.0, %v4314_v0  ;;  %v2639_v31 = vsel %vm8223_vm12, 1.0, %v4314_v0  ;;  %v2641_v7 = vsel %vm8242_vm1, 1.0, %v4314_v0 }
 0x6c8   :  { %v8307_v45 = vperm.slane %v2682_v29, 0  ;;  %v2547_v9 = vsel %vm8114_vm5, %v7633_v2, inf  ;;  %v2577_v37 = vmin.f32 %v2575_v15, %v2546_v26  ;;  %vm12588_vm11 = vcmp.lt.f32.partialorder %v5342_v32, %v7599_v19 }
 0x6c9   :  { %vm12589_vm4 = vcmp.le.f32.partialorder %v7570_v61, %v5342_v32  ;;  %v8322_v60 = vperm.slane %v2683_v6, 0  ;;  %v8324_v54 = vperm.slane %v2684_v3, 0  ;;  %vm12592_vm12 = vcmp.lt.f32.partialorder %v5256_v36, %v7621_v56 }
 0x6ca   :  { %vm8318_vm0 = vmand %vm12589_vm4, %vm12588_vm11  ;;  %vm12593_vm5 = vcmp.le.f32.partialorder %v7579_v39, %v5256_v36  ;;  %v2635_v61 = vsel %vm8166_vm13, 1.0, %v4314_v0  ;;  %v2638_v19 = vsel %vm8204_vm2, 1.0, %v4314_v0  ;;  %v2640_v29 = vsel %vm8261_vm10, 1.0, %v4314_v0 }
 0x6cb   :  { %vm8332_vm1 = vmand %vm12593_vm5, %vm12592_vm12  ;;  %v2642_v6 = vsel %vm8278_vm3, 1.0, %v4314_v0  ;;  %v2548_v3 = vsel %vm8130_vm9, %v7633_v2, inf  ;;  %vm12596_vm8 = vcmp.lt.f32.partialorder %v5256_v36, %v7623_v59  ;;  %vm12597_vm13 = vcmp.le.f32.partialorder %v7583_v13, %v5256_v36 }
 0x6cc   :  { %vm8357_vm11 = vmand %vm12597_vm13, %vm12596_vm8  ;;  %v2651_v57 = vmax.f32 %v2635_v61, %v2639_v31  ;;  %v2652_v15 = vmax.f32 %v2637_v53, %v2641_v7  ;;  %v8361_v55 = vperm.slane %v2685_v63, 0  ;;  %v2549_v26 = vsel %vm8149_vm6, %v7646_v35, inf }
 0x6cd   :  { %v2563_v41 = vmin.f32 %v2561_v10, %v2547_v9  ;;  %vm12600_vm2 = vcmp.lt.f32.partialorder %v5342_v32, %v7621_v56  ;;  %v2636_v63 = vsel %vm8318_vm0, 1.0, %v4314_v0  ;;  %v8379_v53 = vperm.slane %v2686_v1, 0 }
 0x6ce   :  { %vm8372_vm9 = vmand %vm2596_vm14, %vm12600_vm2  ;;  %v2550_v21 = vsel %vm8292_vm15, %v7646_v35, inf  ;;  %v2564_v10 = vmin.f32 %v2562_v44, %v2549_v26  ;;  %vm12603_vm6 = vcmp.lt.f32.partialorder %v5342_v32, %v7623_v59  ;;  %vm12604_vm14 = vcmp.le.f32.partialorder %v7583_v13, %v5342_v32 }
 0x6cf   :  { %vm2630_vm10 = vmand %vm12604_vm14, %vm12603_vm6  ;;  %v2658_v39 = vmax.f32 %v2636_v63, %v2640_v29  ;;  %v2659_v56 = vmax.f32 %v2638_v19, %v2642_v6  ;;  %v2578_v31 = vmin.f32 %v2576_v5, %v2548_v3  ;;  %v2579_v7 = vmin.f32 %v2577_v37, %v2550_v21 }
 0x6d0   :  { %vm12605_vm3 = vcmp.lt.f32.partialorder %v5256_v36, %v7633_v2  ;;  %vm12606_vm4 = vcmp.le.f32.partialorder %v7587_v8, %v5256_v36  ;;  %v2643_v59 = vsel %vm8332_vm1, 1.0, %v4314_v0  ;;  %v2645_v13 = vsel %vm8357_vm11, 1.0, %v4314_v0 }
 0x6d1   :  { %vm8396_vm0 = vmand %vm12606_vm4, %vm12605_vm3  ;;  %vm12609_vm15 = vcmp.lt.f32.partialorder %v5256_v36, %v7646_v35  ;;  %vm12610_vm12 = vcmp.le.f32.partialorder %v7594_v62, %v5256_v36  ;;  %v2653_v44 = vmax.f32 %v2651_v57, %v2643_v59  ;;  %v2654_v28 = vmax.f32 %v2652_v15, %v2645_v13 }
 0x6d2   :  { %vm8412_vm5 = vmand %vm12610_vm12, %vm12609_vm15  ;;  %v8418_v9 = vperm.slane %v2687_v52, 0  ;;  %v8421_v37 = vperm.slane %v5447_v34, 0  ;;  %vm12613_vm1 = vcmp.lt.f32.partialorder %v5342_v32, %v7633_v2  ;;  %vm12614_vm8 = vcmp.le.f32.partialorder %v7587_v8, %v5342_v32 }
 0x6d3   :  { %vm8429_vm13 = vmand %vm12614_vm8, %vm12613_vm1  ;;  %v2644_v18 = vsel %vm8372_vm9, 1.0, %v4314_v0  ;;  %v2646_v52 = vsel %vm2630_vm10, 1.0, %v4314_v0  ;;  %v8439_v61 = vperm.slane %v2688_v17, 0  ;;  %v8443_v2 = vperm.slane %v2689_v20, 0 }
 0x6d4   :  { %v2565_v19 = vmin.f32 %v2563_v41, %v2564_v10  ;;  %vm12617_vm11 = vcmp.lt.f32.partialorder %v5342_v32, %v7646_v35  ;;  %v2660_v8 = vmax.f32 %v2658_v39, %v2644_v18  ;;  %v2661_v29 = vmax.f32 %v2659_v56, %v2646_v52 }
 0x6d5   :  { %vm2634_vm2 = vmand %vm2602_vm7, %vm12617_vm11  ;;  %vm2761_vm9 = vcmp.eq.f32.partialorder %v8285_v47, %v5373_v25  ;;  %v2580_v6 = vmin.f32 %v2578_v31, %v2579_v7  ;;  %v2647_v17 = vsel %vm8396_vm0, 1.0, %v4314_v0  ;;  %v2649_v20 = vsel %vm8412_vm5, 1.0, %v4314_v0 }
 0x6d6   :  { %vm2763_vm6 = vcmp.eq.f32.partialorder %v8307_v45, %v5373_v25  ;;  %v2655_v35 = vmax.f32 %v2653_v44, %v2647_v17  ;;  %v2656_v62 = vmax.f32 %v2654_v28, %v2649_v20  ;;  %v8463_v3 = vperm.slane %v2690_v38, 0 }
 0x6d7   :  { %vm2765_vm7 = vcmp.eq.f32.partialorder %v8322_v60, %v5373_v25  ;;  %v2648_v11 = vsel %vm8429_vm13, 1.0, %v4314_v0  ;;  %v2650_v57 = vsel %vm2634_vm2, 1.0, %v4314_v0  ;;  %v8473_v15 = vperm.slane %v2691_v50, 0 }
 0x6d8   :  { %vm2767_vm14 = vcmp.eq.f32.partialorder %v8324_v54, %v5373_v25  ;;  %vm12618_vm10 = vcmp.lt.s32.totalorder %v4888_v33, 1  ;;  %v2583_v26 = vsub.f32 %v2565_v19, %v5256_v36  ;;  %v2662_v41 = vmax.f32 %v2660_v8, %v2648_v11 }
 0x6d9   :  { %vm8479_vm3 = vmand %vm2761_vm9, %vm12618_vm10  ;;  %v2663_v14 = vmax.f32 %v2661_v29, %v2650_v57  ;;  %vm2769_vm4 = vcmp.eq.f32.partialorder %v8361_v55, %v5373_v25  ;;  %vm12621_vm0 = vcmp.lt.s32.totalorder %v4888_v33, 2  ;;  %vm2581_vm12 = vcmp.lt.f32.partialorder %v2565_v19, inf }
 0x6da   :  { %vm8488_vm15 = vmand %vm2763_vm6, %vm12621_vm0  ;;  %v2584_v63 = vsub.f32 %v2580_v6, %v5342_v32  ;;  %v8495_v21 = vperm.slane %v2692_v51, 0  ;;  %vm2771_vm5 = vcmp.eq.f32.partialorder %v8379_v53, %v5373_v25  ;;  %vm12624_vm1 = vcmp.lt.s32.totalorder %v4888_v33, 3 }
 0x6db   :  { %vm8504_vm8 = vmand %vm2765_vm7, %vm12624_vm1  ;;  %vm2582_vm13 = vcmp.lt.f32.partialorder %v2580_v6, inf  ;;  %v2657_v10 = vmax.f32 %v2655_v35, %v2656_v62  ;;  %v8510_v32 = vperm.slane %v2693_v22, 0  ;;  %vm2773_vm11 = vcmp.eq.f32.partialorder %v8418_v9, %v5373_v25 }
 0x6dc   :  { %vm12627_vm2 = vcmp.lt.s32.totalorder %v4888_v33, 4  ;;  %v8525_v39 = vperm.slane %v2694_v48, 0  ;;  %vm2729_vm10 = vcmp.gt.f32.partialorder %v8285_v47, %v5373_v25  ;;  %vm12630_vm0 = vcmp.lt.s32.totalorder %v4888_v33, 5 }
 0x6dd   :  { %vm8519_vm9 = vmand %vm2767_vm14, %vm12627_vm2  ;;  %v2585_v48 = vsel %vm2581_vm12, %v2583_v26, 0.0  ;;  %v2664_v56 = vmax.f32 %v2662_v41, %v2663_v14  ;;  %vm2731_vm2 = vcmp.gt.f32.partialorder %v8307_v45, %v5373_v25  ;;  %vm12633_vm7 = vcmp.lt.s32.totalorder %v4888_v33, 6 }
 0x6de   :  { %vm8538_vm14 = vmand %vm2769_vm4, %vm12630_vm0  ;;  %v2586_v7 = vsel %vm2582_vm13, %v2584_v63, 0.0  ;;  %vm12636_vm1 = vcmp.lt.s32.totalorder %v4888_v33, 7  ;;  %vm2778_vm12 = vcmp.eq.f32.partialorder %v8439_v61, %v5447_v34  ;;  %vm12646_vm4 = vcmp.lt.s32.totalorder %v4921_v58, 9 }
 0x6df   :  { %vm8552_vm6 = vmand %vm2771_vm5, %vm12633_vm7  ;;  %vm2665_vm7 = vcmp.gt.f32.partialorder %v2657_v10, 0.0  ;;  %v12675_v10 = vmov 0  ;;  %v3018_v52 = vrot.slane %v5425_v4, 2  ;;  %v3025_v63 = vrot.slane %v5513_v24, 2 }
 0x6e0   :  { %vm8568_vm5 = vmand %vm2773_vm11, %vm12636_vm1  ;;  %v2667_v13 = vsel %vm2665_vm7, %v2585_v48, 0.0  ;;  %v3029_v1 = vrot.slane %v5513_v24, 6 }
 0x6e1   :  { %vm8583_vm0 = vmor %vm2729_vm10, %vm8479_vm3  ;;  %vm2666_vm3 = vcmp.gt.f32.partialorder %v2664_v56, 0.0  ;;  %vm12650_vm10 = vcmp.eq.f32.partialorder %v8443_v2, %v5447_v34 }
 0x6e2   :  { %vm8598_vm13 = vmor %vm2731_vm2, %vm8488_vm15  ;;  %vm12643_vm15 = vcmp.gt.f32.partialorder %v8322_v60, %v5373_v25  ;;  %v2668_v28 = vsel %vm2666_vm3, %v2586_v7, 0.0  ;;  %vm2784_vm3 = vcmp.eq.f32.partialorder %v8473_v15, %v5447_v34  ;;  %v2857_v6 = vsel %vm8583_vm0, %v8285_v47, inf }
 0x6e3   :  { %vm8615_vm2 = vmor %vm12643_vm15, %vm8504_vm8  ;;  %v2669_v18 = vadd.f32 %v2668_v28, %v2667_v13  ;;  %vm12649_vm15 = vcmp.lt.s32.totalorder %v4921_v58, 10  ;;  %v2859_v19 = vsel %vm8598_vm13, %v8307_v45, inf  ;;  %vm12658_vm0 = vcmp.gt.f32.partialorder %v8324_v54, %v5373_v25 }
 0x6e4   :  { %vm8632_vm8 = vmand %vm2778_vm12, %vm12646_vm4  ;;  %vm12653_vm4 = vcmp.gt.f32.partialorder %v8307_v45, %v5447_v34  ;;  %v2861_v17 = vsel %vm8615_vm2, %v8322_v60, inf  ;;  %vm12661_vm2 = vcmp.gt.f32.partialorder %v8283_v23, %v5373_v25  ;;  %vm12663_vm13 = vcmp.lt.s32.totalorder %v4921_v58, 12 }
 0x6e5   :  { %vm8643_vm1 = vmand %vm12650_vm10, %vm12649_vm15  ;;  %v2860_v8 = vsel %vm12653_vm4, %v8307_v45, inf  ;;  %vm12654_vm10 = vcmp.lt.s32.totalorder %v4921_v58, 11  ;;  %vm12655_vm15 = vcmp.eq.f32.partialorder %v8463_v3, %v5447_v34  ;;  %v2855_v35 = vsel %vm12661_vm2, %v8283_v23, inf }
 0x6e6   :  { %vm8663_vm7 = vmand %vm12655_vm15, %vm12654_vm10  ;;  %vm2786_vm15 = vcmp.eq.f32.partialorder %v8495_v21, %v5447_v34  ;;  %vm12662_vm4 = vcmp.gt.f32.partialorder %v8283_v23, %v5447_v34  ;;  %v2887_v41 = vmin.f32 %v2855_v35, %v2859_v19  ;;  %v2670_v50 = vrot.slane %v2669_v18, 4 }
 0x6e7   :  { %vm8686_vm11 = vmor %vm12658_vm0, %vm8519_vm9  ;;  %v2856_v62 = vsel %vm12662_vm4, %v8283_v23, inf  ;;  %vm12666_vm9 = vcmp.gt.f32.partialorder %v8361_v55, %v5373_v25  ;;  %vm12669_vm4 = vcmp.gt.f32.partialorder %v8285_v47, %v5447_v34  ;;  %vm12671_vm2 = vcmp.gt.f32.partialorder %v8379_v53, %v5373_v25 }
 0x6e8   :  { %vm8703_vm12 = vmand %vm2784_vm3, %vm12663_vm13  ;;  %v2858_v38 = vsel %vm12669_vm4, %v8285_v47, inf  ;;  %vm12670_vm3 = vcmp.gt.f32.partialorder %v8322_v60, %v5447_v34  ;;  %v2902_v14 = vmin.f32 %v2856_v62, %v2860_v8  ;;  %v2888_v36 = vmin.f32 %v2857_v6, %v2861_v17 }
 0x6e9   :  { %vm8712_vm0 = vmor %vm12666_vm9, %vm8538_vm14  ;;  %v2862_v26 = vsel %vm12670_vm3, %v8322_v60, inf  ;;  %vm12674_vm10 = vcmp.lt.s32.totalorder %v4921_v58, 13  ;;  %vm12680_vm13 = vcmp.eq.f32.partialorder %v8421_v37, %v5373_v25  ;;  %v2863_v48 = vsel %vm8686_vm11, %v8324_v54, inf }
 0x6ea   :  { %vm8733_vm9 = vmor %vm12671_vm2, %vm8552_vm6  ;;  %vm12677_vm2 = vcmp.gt.f32.partialorder %v8418_v9, %v5373_v25  ;;  %v2903_v31 = vmin.f32 %v2858_v38, %v2862_v26  ;;  %vm12685_vm4 = vcmp.lt.s32.totalorder %v4921_v58, 14  ;;  %v12687_v7 = vmov 0 }
 0x6eb   :  { %vm8750_vm6 = vmand %vm2786_vm15, %vm12674_vm10  ;;  %vm12681_vm10 = vcmp.gt.f32.partialorder %v8421_v37, %v5373_v25  ;;  %vm12689_vm11 = vcmp.eq.f32.partialorder %v8439_v61, %v5373_v25  ;;  %vm12690_vm14 = vcmp.gt.f32.partialorder %v8439_v61, %v5373_v25  ;;  %v2865_v59 = vsel %vm8712_vm0, %v8361_v55, inf }
 0x6ec   :  { %v12676_v10 = vsel %vm8750_vm6, 4294967295, %v12675_v10  ;;  %vm8759_vm3 = vmor %vm12677_vm2, %vm8568_vm5  ;;  %vm12684_vm5 = vcmp.gt.f32.partialorder %v8324_v54, %v5447_v34  ;;  %v2889_v13 = vmin.f32 %v2887_v41, %v2863_v48  ;;  %v8806_v44 = vadd.f32 %v2670_v50, %v2669_v18 }
 0x6ed   :  { %vm8771_vm15 = vmor %vm12681_vm10, %vm12680_vm13  ;;  %v2864_v56 = vsel %vm12684_vm5, %v8324_v54, inf  ;;  %vm12686_vm13 = vcmp.eq.f32.partialorder %v8510_v32, %v5447_v34  ;;  %v2890_v19 = vmin.f32 %v2888_v36, %v2865_v59  ;;  %vm12697_vm6 = vcmp.gt.f32.partialorder %v8443_v2, %v5373_v25 }
 0x6ee   :  { %vm8789_vm10 = vmand %vm12686_vm13, %vm12685_vm4  ;;  %v2904_v5 = vmin.f32 %v2902_v14, %v2864_v56  ;;  %vm2781_vm13 = vcmp.eq.f32.partialorder %v8463_v3, %v5373_v25  ;;  %vm2785_vm2 = vcmp.eq.f32.partialorder %v8495_v21, %v5373_v25  ;;  %vm12701_vm0 = vcmp.gt.f32.partialorder %v8443_v2, %v5447_v34 }
 0x6ef   :  { %v12688_v7 = vsel %vm8789_vm10, 4294967295, %v12687_v7  ;;  %vm8799_vm5 = vmor %vm12690_vm14, %vm12689_vm11  ;;  %vm12693_vm14 = vcmp.gt.f32.partialorder %v8439_v61, %v5447_v34  ;;  %vm12696_vm10 = vcmp.eq.f32.partialorder %v8443_v2, %v5373_v25  ;;  %v2867_v6 = vsel %vm8733_vm9, %v8379_v53, inf }
 0x6f0   :  { %vm8817_vm11 = vmor %vm12693_vm14, %vm8632_vm8  ;;  %vm12700_vm14 = vcmp.gt.f32.partialorder %v8361_v55, %v5447_v34  ;;  %v2869_v35 = vsel %vm8759_vm3, %v8418_v9, inf  ;;  %v2891_v62 = vmin.f32 %v2889_v13, %v2867_v6  ;;  %v2672_v38 = vrot.slane %v8806_v44, 2 }
 0x6f1   :  { %vm8833_vm8 = vmor %vm12697_vm6, %vm12696_vm10  ;;  %v2866_v18 = vsel %vm12700_vm14, %v8361_v55, inf  ;;  %vm12704_vm6 = vcmp.gt.f32.partialorder %v8379_v53, %v5447_v34  ;;  %vm12705_vm14 = vcmp.gt.f32.partialorder %v8463_v3, %v5373_v25  ;;  %v2892_v41 = vmin.f32 %v2890_v19, %v2869_v35 }
 0x6f2   :  { %vm8848_vm4 = vmor %vm12701_vm0, %vm8643_vm1  ;;  %v2868_v17 = vsel %vm12704_vm6, %v8379_v53, inf  ;;  %v2905_v20 = vmin.f32 %v2903_v31, %v2866_v18  ;;  %vm12711_vm3 = vcmp.eq.f32.partialorder %v8473_v15, %v5373_v25  ;;  %vm12715_vm10 = vcmp.gt.f32.partialorder %v8418_v9, %v5447_v34 }
 0x6f3   :  { %vm8864_vm1 = vmor %vm12705_vm14, %vm2781_vm13  ;;  %v2906_v57 = vmin.f32 %v2904_v5, %v2868_v17  ;;  %vm12708_vm13 = vcmp.gt.f32.partialorder %v8463_v3, %v5447_v34  ;;  %vm12712_vm14 = vcmp.gt.f32.partialorder %v8473_v15, %v5373_v25  ;;  %v2870_v29 = vsel %vm12715_vm10, %v8418_v9, inf }
 0x6f4   :  { %vm8881_vm6 = vmor %vm12708_vm13, %vm8663_vm7  ;;  %vm12716_vm7 = vcmp.gt.f32.partialorder %v8421_v37, %v5447_v34  ;;  %v2871_v36 = vsel %vm8771_vm15, %v8421_v37, inf  ;;  %v2907_v51 = vmin.f32 %v2905_v20, %v2870_v29  ;;  %v2873_v22 = vsel %vm8799_vm5, %v8439_v61, inf }
 0x6f5   :  { %vm8891_vm9 = vmor %vm12712_vm14, %vm12711_vm3  ;;  %v2872_v50 = vsel %vm12716_vm7, %v8421_v37, inf  ;;  %vm12717_vm3 = vcmp.gt.f32.partialorder %v8473_v15, %v5447_v34  ;;  %v2893_v48 = vmin.f32 %v2891_v62, %v2871_v36  ;;  %vm12723_vm10 = vcmp.lt.s32.totalorder %v4921_v58, 15 }
 0x6f6   :  { %vm8912_vm14 = vmor %vm12717_vm3, %vm8703_vm12  ;;  %vm12720_vm12 = vcmp.gt.f32.partialorder %v8495_v21, %v5373_v25  ;;  %v2908_v56 = vmin.f32 %v2906_v57, %v2872_v50  ;;  %v12725_v31 = vmov 0  ;;  %vm12727_vm0 = vnez %v12676_v10 }
 0x6f7   :  { %vm8929_vm3 = vmor %vm12720_vm12, %vm2785_vm2  ;;  %vm12724_vm2 = vcmp.eq.f32.partialorder %v8525_v39, %v5447_v34  ;;  %vm12728_vm5 = vcmp.gt.f32.partialorder %v8495_v21, %v5447_v34  ;;  %v2894_v59 = vmin.f32 %v2892_v41, %v2873_v22  ;;  %v12733_v10 = vmov 0 }
 0x6f8   :  { %vm8945_vm12 = vmand %vm12724_vm2, %vm12723_vm10  ;;  %v2874_v13 = vsel %vm8817_vm11, %v8439_v61, inf  ;;  %vm2943_vm10 = vcmp.lt.f32.partialorder %v5373_v25, %v8443_v2  ;;  %vm12736_vm11 = vcmp.gt.f32.partialorder %v8510_v32, %v5447_v34  ;;  %v2875_v28 = vsel %vm8833_vm8, %v8443_v2, inf }
 0x6f9   :  { %v12726_v31 = vsel %vm8945_vm12, 4294967295, %v12725_v31  ;;  %vm8954_vm13 = vmor %vm12728_vm5, %vm12727_vm0  ;;  %vm12731_vm12 = vcmp.eq.f32.partialorder %v8510_v32, %v5373_v25  ;;  %vm12732_vm0 = vcmp.gt.f32.partialorder %v8510_v32, %v5373_v25  ;;  %v2909_v19 = vmin.f32 %v2907_v51, %v2874_v13 }
 0x6fa   :  { %vm8972_vm5 = vmor %vm12732_vm0, %vm12731_vm12  ;;  %vm2945_vm12 = vcmp.lt.f32.partialorder %v5373_v25, %v8463_v3  ;;  %vm12735_vm0 = vnez %v12688_v7  ;;  %vm2946_vm2 = vcmp.lt.f32.partialorder %v5447_v34, %v8463_v3  ;;  %vm12739_vm15 = vcmp.eq.f32.partialorder %v8525_v39, %v5373_v25 }
 0x6fb   :  { %v12734_v10 = vsel %vm8972_vm5, 4294967295, %v12733_v10  ;;  %vm8994_vm5 = vmor %vm12736_vm11, %vm12735_vm0  ;;  %vm12740_vm0 = vcmp.gt.f32.partialorder %v8525_v39, %v5373_v25  ;;  %v2876_v12 = vsel %vm8848_vm4, %v8443_v2, inf  ;;  %v2877_v18 = vsel %vm8864_vm1, %v8463_v3, inf }
 0x6fc   :  { %vm9011_vm11 = vmor %vm12740_vm0, %vm12739_vm15  ;;  %v2895_v6 = vmin.f32 %v2893_v48, %v2875_v28  ;;  %v3017_v17 = vrot.slane %v5425_v4, 1  ;;  %v2896_v20 = vmin.f32 %v2894_v59, %v2877_v18  ;;  %v2910_v35 = vmin.f32 %v2908_v56, %v2876_v12 }
 0x6fd   :  { %vm12743_vm1 = vcmp.lt.f32.partialorder %v5373_v25, %v8421_v37  ;;  %vm12744_vm0 = vcmp.le.f32.partialorder %v8283_v23, %v5373_v25  ;;  %v3019_v62 = vrot.slane %v5425_v4, 3  ;;  %v2878_v57 = vsel %vm8881_vm6, %v8463_v3, inf }
 0x6fe   :  { %vm9036_vm8 = vmand %vm12744_vm0, %vm12743_vm1  ;;  %vm12747_vm1 = vcmp.lt.f32.partialorder %v5373_v25, %v8439_v61  ;;  %vm12748_vm0 = vcmp.le.f32.partialorder %v8285_v47, %v5373_v25  ;;  %v3020_v29 = vrot.slane %v5425_v4, 4  ;;  %v3021_v26 = vrot.slane %v5425_v4, 5 }
 0x6ff   :  { %vm9055_vm15 = vmand %vm12748_vm0, %vm12747_vm1  ;;  %v3022_v50 = vrot.slane %v5425_v4, 6  ;;  %v2879_v36 = vsel %vm8891_vm9, %v8473_v15, inf  ;;  %v2911_v51 = vmin.f32 %v2909_v19, %v2878_v57  ;;  %vm2932_vm6 = vcmp.le.f32.partialorder %v8324_v54, %v5447_v34 }
 0x700   :  { %vm12751_vm0 = vcmp.lt.f32.partialorder %v5447_v34, %v8439_v61  ;;  %vm12752_vm7 = vcmp.le.f32.partialorder %v8285_v47, %v5447_v34  ;;  %v3023_v14 = vrot.slane %v5425_v4, 7  ;;  %v3024_v48 = vrot.slane %v5513_v24, 1 }
 0x701   :  { %vm9075_vm4 = vmand %vm12752_vm7, %vm12751_vm0  ;;  %v2880_v56 = vsel %vm8912_vm14, %v8473_v15, inf  ;;  %v2881_v59 = vsel %vm8929_vm3, %v8495_v21, inf  ;;  %v2897_v61 = vmin.f32 %v2895_v6, %v2879_v36  ;;  %vm2934_vm9 = vcmp.le.f32.partialorder %v8361_v55, %v5447_v34 }
 0x702   :  { %vm12755_vm0 = vcmp.le.f32.partialorder %v8307_v45, %v5373_v25  ;;  %v2898_v11 = vmin.f32 %v2896_v20, %v2881_v59  ;;  %v2912_v13 = vmin.f32 %v2910_v35, %v2880_v56  ;;  %vm12758_vm7 = vcmp.le.f32.partialorder %v8322_v60, %v5373_v25 }
 0x703   :  { %vm9097_vm1 = vmand %vm12755_vm0, %vm2943_vm10  ;;  %v3026_v19 = vrot.slane %v5513_v24, 3  ;;  %v3027_v12 = vrot.slane %v5513_v24, 4  ;;  %v2882_v18 = vsel %vm8954_vm13, %v8495_v21, inf  ;;  %v3028_v20 = vrot.slane %v5513_v24, 5 }
 0x704   :  { %vm9112_vm10 = vmand %vm12758_vm7, %vm2945_vm12  ;;  %vm12761_vm12 = vcmp.lt.f32.partialorder %v5447_v34, %v8443_v2  ;;  %vm12762_vm7 = vcmp.le.f32.partialorder %v8307_v45, %v5447_v34  ;;  %v3030_v35 = vrot.slane %v5513_v24, 7  ;;  %vm12765_vm13 = vnez %v12734_v10 }
 0x705   :  { %vm9131_vm14 = vmand %vm12762_vm7, %vm12761_vm12  ;;  %v2883_v57 = vsel %vm12765_vm13, %v8510_v32, inf  ;;  %v2913_v36 = vmin.f32 %v2911_v51, %v2882_v18  ;;  %vm12766_vm12 = vcmp.le.f32.partialorder %v8322_v60, %v5447_v34  ;;  %v9154_v2 = vperm.slane %v5425_v4, 0 }
 0x706   :  { %vm9149_vm7 = vmand %vm12766_vm12, %vm2946_vm2  ;;  %v9156_v56 = vperm.slane %v3017_v17, 0  ;;  %vm12769_vm13 = vnez %v12726_v31  ;;  %vm12770_vm3 = vcmp.gt.f32.partialorder %v8525_v39, %v5447_v34  ;;  %v2885_v60 = vsel %vm9011_vm11, %v8525_v39, inf }
 0x707   :  { %vm9163_vm0 = vmor %vm12770_vm3, %vm12769_vm13  ;;  %vm2938_vm2 = vcmp.le.f32.partialorder %v8418_v9, %v5447_v34  ;;  %v2973_v3 = vsel %vm9055_vm15, 1.0, %v4314_v0  ;;  %v2975_v31 = vsel %vm9097_vm1, 1.0, %v4314_v0  ;;  %v2977_v17 = vsel %vm9112_vm10, 1.0, %v4314_v0 }
 0x708   :  { %v2884_v7 = vsel %vm8994_vm5, %v8510_v32, inf  ;;  %v2899_v51 = vmin.f32 %v2897_v61, %v2883_v57  ;;  %v2900_v59 = vmin.f32 %v2898_v11, %v2885_v60  ;;  %vm12773_vm11 = vcmp.lt.f32.partialorder %v5447_v34, %v8421_v37 }
 0x709   :  { %vm12774_vm15 = vcmp.le.f32.partialorder %v8283_v23, %v5447_v34  ;;  %v9194_v47 = vperm.slane %v3018_v52, 0  ;;  %vm12777_vm1 = vcmp.lt.f32.partialorder %v5373_v25, %v8473_v15  ;;  %vm12778_vm5 = vcmp.le.f32.partialorder %v8324_v54, %v5373_v25 }
 0x70a   :  { %vm9190_vm3 = vmand %vm12774_vm15, %vm12773_vm11  ;;  %v2971_v23 = vsel %vm9036_vm8, 1.0, %v4314_v0  ;;  %v2974_v37 = vsel %vm9075_vm4, 1.0, %v4314_v0  ;;  %v2976_v52 = vsel %vm9131_vm14, 1.0, %v4314_v0  ;;  %v2978_v61 = vsel %vm9149_vm7, 1.0, %v4314_v0 }
 0x70b   :  { %vm9202_vm10 = vmand %vm12778_vm5, %vm12777_vm1  ;;  %v2886_v11 = vsel %vm9163_vm0, %v8525_v39, inf  ;;  %vm12781_vm12 = vcmp.lt.f32.partialorder %v5373_v25, %v8495_v21  ;;  %vm12782_vm8 = vcmp.le.f32.partialorder %v8361_v55, %v5373_v25  ;;  %v2987_v22 = vmax.f32 %v2971_v23, %v2975_v31 }
 0x70c   :  { %vm9227_vm13 = vmand %vm12782_vm8, %vm12781_vm12  ;;  %v2988_v28 = vmax.f32 %v2973_v3, %v2977_v17  ;;  %v9231_v18 = vperm.slane %v3019_v62, 0  ;;  %v2914_v6 = vmin.f32 %v2912_v13, %v2884_v7  ;;  %v2915_v57 = vmin.f32 %v2913_v36, %v2886_v11 }
 0x70d   :  { %vm12785_vm4 = vcmp.lt.f32.partialorder %v5447_v34, %v8473_v15  ;;  %v2972_v10 = vsel %vm9190_vm3, 1.0, %v4314_v0  ;;  %v9246_v60 = vperm.slane %v3020_v29, 0  ;;  %vm12788_vm0 = vcmp.lt.f32.partialorder %v5447_v34, %v8495_v21 }
 0x70e   :  { %vm9239_vm14 = vmand %vm2932_vm6, %vm12785_vm4  ;;  %v2994_v54 = vmax.f32 %v2972_v10, %v2976_v52  ;;  %v2995_v62 = vmax.f32 %v2974_v37, %v2978_v61  ;;  %v9260_v13 = vperm.slane %v3021_v26, 0  ;;  %v9264_v29 = vperm.slane %v3022_v50, 0 }
 0x70f   :  { %vm9254_vm7 = vmand %vm2934_vm9, %vm12788_vm0  ;;  %v2901_v36 = vmin.f32 %v2899_v51, %v2900_v59  ;;  %vm12791_vm6 = vcmp.lt.f32.partialorder %v5373_v25, %v8510_v32  ;;  %vm12792_vm9 = vcmp.le.f32.partialorder %v8379_v53, %v5373_v25  ;;  %v2979_v21 = vsel %vm9202_vm10, 1.0, %v4314_v0 }
 0x710   :  { %vm9272_vm11 = vmand %vm12792_vm9, %vm12791_vm6  ;;  %v2981_v26 = vsel %vm9227_vm13, 1.0, %v4314_v0  ;;  %v9284_v50 = vperm.slane %v3023_v14, 0  ;;  %vm12795_vm15 = vcmp.lt.f32.partialorder %v5373_v25, %v8525_v39  ;;  %vm12796_vm3 = vcmp.le.f32.partialorder %v8418_v9, %v5373_v25 }
 0x711   :  { %vm9292_vm1 = vmand %vm12796_vm3, %vm12795_vm15  ;;  %v2989_v31 = vmax.f32 %v2987_v22, %v2979_v21  ;;  %v2990_v17 = vmax.f32 %v2988_v28, %v2981_v26  ;;  %v9297_v7 = vperm.slane %v5513_v24, 0  ;;  %v9301_v51 = vperm.slane %v3024_v48, 0 }
 0x712   :  { %v2916_v14 = vmin.f32 %v2914_v6, %v2915_v57  ;;  %vm12799_vm5 = vcmp.lt.f32.partialorder %v5447_v34, %v8510_v32  ;;  %vm12800_vm10 = vcmp.le.f32.partialorder %v8379_v53, %v5447_v34  ;;  %v2980_v41 = vsel %vm9239_vm14, 1.0, %v4314_v0 }
 0x713   :  { %vm9309_vm12 = vmand %vm12800_vm10, %vm12799_vm5  ;;  %v2982_v48 = vsel %vm9254_vm7, 1.0, %v4314_v0  ;;  %v9321_v5 = vperm.slane %v3025_v63, 0  ;;  %vm12803_vm8 = vcmp.lt.f32.partialorder %v5447_v34, %v8525_v39  ;;  %v2996_v53 = vmax.f32 %v2994_v54, %v2980_v41 }
 0x714   :  { %vm2970_vm13 = vmand %vm2938_vm2, %vm12803_vm8  ;;  %v2997_v32 = vmax.f32 %v2995_v62, %v2982_v48  ;;  %v9331_v23 = vperm.slane %v3026_v19, 0  ;;  %vm3097_vm4 = vcmp.eq.f32.partialorder %v9156_v56, %v5425_v4  ;;  %vm2917_vm14 = vcmp.lt.f32.partialorder %v2901_v36, inf }
 0x715   :  { %v2983_v63 = vsel %vm9272_vm11, 1.0, %v4314_v0  ;;  %v2985_v39 = vsel %vm9292_vm1, 1.0, %v4314_v0  ;;  %vm3099_vm2 = vcmp.eq.f32.partialorder %v9194_v47, %v5425_v4  ;;  %v2919_v9 = vsub.f32 %v2901_v36, %v5373_v25 }
 0x716   :  { %v2991_v37 = vmax.f32 %v2989_v31, %v2983_v63  ;;  %v2992_v19 = vmax.f32 %v2990_v17, %v2985_v39  ;;  %vm3101_vm0 = vcmp.eq.f32.partialorder %v9231_v18, %v5425_v4  ;;  %v2920_v52 = vsub.f32 %v2916_v14, %v5447_v34 }
 0x717   :  { %v2984_v61 = vsel %vm9309_vm12, 1.0, %v4314_v0  ;;  %v2986_v11 = vsel %vm2970_vm13, 1.0, %v4314_v0  ;;  %vm3103_vm7 = vcmp.eq.f32.partialorder %v9246_v60, %v5425_v4  ;;  %vm12804_vm6 = vcmp.lt.s32.totalorder %v4888_v33, 1 }
 0x718   :  { %vm9355_vm9 = vmand %vm3097_vm4, %vm12804_vm6  ;;  %vm2918_vm11 = vcmp.lt.f32.partialorder %v2916_v14, inf  ;;  %v2998_v8 = vmax.f32 %v2996_v53, %v2984_v61  ;;  %v2999_v22 = vmax.f32 %v2997_v32, %v2986_v11  ;;  %vm3105_vm15 = vcmp.eq.f32.partialorder %v9260_v13, %v5425_v4 }
 0x719   :  { %vm12807_vm3 = vcmp.lt.s32.totalorder %v4888_v33, 2  ;;  %v9369_v28 = vperm.slane %v3027_v12, 0  ;;  %v9373_v6 = vperm.slane %v3028_v20, 0  ;;  %v9377_v57 = vperm.slane %v3029_v1, 0 }
 0x71a   :  { %vm9363_vm1 = vmand %vm3099_vm2, %vm12807_vm3  ;;  %vm3107_vm5 = vcmp.eq.f32.partialorder %v9264_v29, %v5425_v4  ;;  %vm12810_vm10 = vcmp.lt.s32.totalorder %v4888_v33, 3  ;;  %v2993_v12 = vmax.f32 %v2991_v37, %v2992_v19  ;;  %v9392_v20 = vperm.slane %v3030_v35, 0 }
 0x71b   :  { %vm9386_vm12 = vmand %vm3101_vm0, %vm12810_vm10  ;;  %vm3109_vm13 = vcmp.eq.f32.partialorder %v9284_v50, %v5425_v4  ;;  %vm12813_vm4 = vcmp.lt.s32.totalorder %v4888_v33, 4  ;;  %v2921_v10 = vsel %vm2917_vm14, %v2919_v9, 0.0  ;;  %v2922_v35 = vsel %vm2918_vm11, %v2920_v52, 0.0 }
 0x71c   :  { %vm9403_vm2 = vmand %vm3103_vm7, %vm12813_vm4  ;;  %vm3067_vm6 = vcmp.gt.f32.partialorder %v9194_v47, %v5425_v4  ;;  %vm12816_vm3 = vcmp.lt.s32.totalorder %v4888_v33, 5  ;;  %v3000_v54 = vmax.f32 %v2998_v8, %v2999_v22  ;;  %vm3065_vm14 = vcmp.gt.f32.partialorder %v9156_v56, %v5425_v4 }
 0x71d   :  { %vm9418_vm10 = vmand %vm3105_vm15, %vm12816_vm3  ;;  %vm12819_vm4 = vcmp.lt.s32.totalorder %v4888_v33, 6  ;;  %vm12822_vm11 = vcmp.lt.s32.totalorder %v4888_v33, 7  ;;  %vm3114_vm7 = vcmp.eq.f32.partialorder %v9301_v51, %v5513_v24  ;;  %vm3116_vm15 = vcmp.eq.f32.partialorder %v9321_v5, %v5513_v24 }
 0x71e   :  { %vm9433_vm0 = vmand %vm3107_vm5, %vm12819_vm4  ;;  %vm3001_vm4 = vcmp.gt.f32.partialorder %v2993_v12, 0.0  ;;  %v12860_v12 = vmov 0  ;;  %v12882_v17 = vmov 0  ;;  %v12909_v25 = vmov 0 }
 0x71f   :  { %vm9450_vm5 = vmand %vm3109_vm13, %vm12822_vm11  ;;  %v3003_v21 = vsel %vm3001_vm4, %v2921_v10, 0.0  ;;  %vm3118_vm11 = vcmp.eq.f32.partialorder %v9331_v23, %v5513_v24  ;;  %vm12832_vm13 = vcmp.lt.s32.totalorder %v4921_v58, 9  ;;  %v3354_v55 = vrot.slane %v5639_v46, 2 }
 0x720   :  { %vm9465_vm8 = vmor %vm3067_vm6, %vm9363_vm1  ;;  %vm3002_vm6 = vcmp.gt.f32.partialorder %v3000_v54, 0.0  ;;  %v3360_v34 = vrot.slane %v5723_v43, 1 }
 0x721   :  { %vm9482_vm1 = vmor %vm3065_vm14, %vm9355_vm9  ;;  %vm12829_vm9 = vcmp.gt.f32.partialorder %v9231_v18, %v5425_v4  ;;  %v3004_v31 = vsel %vm3002_vm6, %v2922_v35, 0.0  ;;  %v3195_v14 = vsel %vm9465_vm8, %v9194_v47, inf  ;;  %vm12839_vm6 = vcmp.lt.s32.totalorder %v4921_v58, 11 }
 0x722   :  { %vm9499_vm14 = vmor %vm12829_vm9, %vm9386_vm12  ;;  %vm12835_vm12 = vcmp.gt.f32.partialorder %v9194_v47, %v5513_v24  ;;  %v3005_v41 = vadd.f32 %v3004_v31, %v3003_v21  ;;  %vm3120_vm9 = vcmp.eq.f32.partialorder %v9369_v28, %v5513_v24  ;;  %v3193_v39 = vsel %vm9482_vm1, %v9156_v56, inf }
 0x723   :  { %vm9510_vm3 = vmand %vm3114_vm7, %vm12832_vm13  ;;  %v3196_v59 = vsel %vm12835_vm12, %v9194_v47, inf  ;;  %vm12836_vm13 = vcmp.lt.s32.totalorder %v4921_v58, 10  ;;  %vm12842_vm7 = vcmp.gt.f32.partialorder %v9154_v2, %v5425_v4  ;;  %v3197_v9 = vsel %vm9499_vm14, %v9231_v18, inf }
 0x724   :  { %vm9532_vm8 = vmand %vm3116_vm15, %vm12836_vm13  ;;  %v3191_v32 = vsel %vm12842_vm7, %v9154_v2, inf  ;;  %vm12843_vm15 = vcmp.gt.f32.partialorder %v9154_v2, %v5513_v24  ;;  %vm12847_vm1 = vcmp.gt.f32.partialorder %v9156_v56, %v5513_v24  ;;  %vm12848_vm14 = vcmp.gt.f32.partialorder %v9231_v18, %v5513_v24 }
 0x725   :  { %vm9540_vm4 = vmand %vm3118_vm11, %vm12839_vm6  ;;  %v3192_v63 = vsel %vm12843_vm15, %v9154_v2, inf  ;;  %vm12844_vm6 = vcmp.gt.f32.partialorder %v9246_v60, %v5425_v4  ;;  %v3194_v19 = vsel %vm12847_vm1, %v9156_v56, inf  ;;  %v3198_v52 = vsel %vm12848_vm14, %v9231_v18, inf }
 0x726   :  { %vm9565_vm7 = vmor %vm12844_vm6, %vm9403_vm2  ;;  %v3223_v61 = vmin.f32 %v3191_v32, %v3195_v14  ;;  %v3238_v11 = vmin.f32 %v3192_v63, %v3196_v59  ;;  %vm3111_vm6 = vcmp.eq.f32.partialorder %v9297_v7, %v5425_v4  ;;  %vm12849_vm1 = vcmp.lt.s32.totalorder %v4921_v58, 12 }
 0x727   :  { %vm9590_vm14 = vmand %vm3120_vm9, %vm12849_vm1  ;;  %vm12852_vm11 = vcmp.gt.f32.partialorder %v9260_v13, %v5425_v4  ;;  %v3006_v22 = vrot.slane %v3005_v41, 4  ;;  %vm3124_vm2 = vcmp.eq.f32.partialorder %v9377_v57, %v5513_v24  ;;  %vm12855_vm9 = vcmp.gt.f32.partialorder %v9264_v29, %v5425_v4 }
 0x728   :  { %vm9599_vm12 = vmor %vm12852_vm11, %vm9418_vm10  ;;  %v3224_v45 = vmin.f32 %v3193_v39, %v3197_v9  ;;  %vm12858_vm11 = vcmp.lt.s32.totalorder %v4921_v58, 13  ;;  %vm12859_vm13 = vcmp.eq.f32.partialorder %v9373_v6, %v5513_v24  ;;  %v3199_v10 = vsel %vm9565_vm7, %v9246_v60, inf }
 0x729   :  { %vm9612_vm1 = vmor %vm12855_vm9, %vm9433_vm0  ;;  %vm12862_vm0 = vcmp.gt.f32.partialorder %v9284_v50, %v5425_v4  ;;  %v3239_v15 = vmin.f32 %v3194_v19, %v3198_v52  ;;  %v3225_v62 = vmin.f32 %v3223_v61, %v3199_v10  ;;  %vm12869_vm10 = vcmp.lt.s32.totalorder %v4921_v58, 14 }
 0x72a   :  { %vm9623_vm15 = vmand %vm12859_vm13, %vm12858_vm11  ;;  %vm12865_vm13 = vcmp.gt.f32.partialorder %v9246_v60, %v5513_v24  ;;  %vm12873_vm7 = vcmp.gt.f32.partialorder %v9301_v51, %v5425_v4  ;;  %v3201_v26 = vsel %vm9599_vm12, %v9260_v13, inf  ;;  %v9685_v3 = vadd.f32 %v3006_v22, %v3005_v41 }
 0x72b   :  { %v12861_v12 = vsel %vm9623_vm15, 4294967295, %v12860_v12  ;;  %vm9632_vm9 = vmor %vm12862_vm0, %vm9450_vm5  ;;  %v3200_v35 = vsel %vm12865_vm13, %v9246_v60, inf  ;;  %vm12866_vm5 = vcmp.gt.f32.partialorder %v9297_v7, %v5425_v4  ;;  %v3226_v59 = vmin.f32 %v3224_v45, %v3201_v26 }
 0x72c   :  { %vm9653_vm0 = vmor %vm12866_vm5, %vm3111_vm6  ;;  %v3240_v36 = vmin.f32 %v3238_v11, %v3200_v35  ;;  %vm12872_vm5 = vcmp.eq.f32.partialorder %v9301_v51, %v5425_v4  ;;  %vm12881_vm13 = vcmp.eq.f32.partialorder %v9392_v20, %v5513_v24  ;;  %v3203_v32 = vsel %vm9612_vm1, %v9264_v29, inf }
 0x72d   :  { %vm9668_vm6 = vmand %vm3124_vm2, %vm12869_vm10  ;;  %vm12876_vm10 = vcmp.gt.f32.partialorder %v9301_v51, %v5513_v24  ;;  %vm3119_vm12 = vcmp.eq.f32.partialorder %v9369_v28, %v5425_v4  ;;  %v3227_v37 = vmin.f32 %v3225_v62, %v3203_v32  ;;  %v3205_v52 = vsel %vm9632_vm9, %v9284_v50, inf }
 0x72e   :  { %vm9678_vm15 = vmor %vm12873_vm7, %vm12872_vm5  ;;  %vm12879_vm7 = vcmp.gt.f32.partialorder %v9260_v13, %v5513_v24  ;;  %vm12880_vm5 = vcmp.lt.s32.totalorder %v4921_v58, 15  ;;  %v3008_v61 = vrot.slane %v9685_v3, 2  ;;  %v3228_v22 = vmin.f32 %v3226_v59, %v3205_v52 }
 0x72f   :  { %vm9694_vm11 = vmor %vm12876_vm10, %vm9510_vm3  ;;  %v3202_v14 = vsel %vm12879_vm7, %v9260_v13, inf  ;;  %vm12884_vm3 = vcmp.eq.f32.partialorder %v9321_v5, %v5425_v4  ;;  %vm12885_vm10 = vcmp.gt.f32.partialorder %v9321_v5, %v5425_v4  ;;  %vm12900_vm9 = vcmp.gt.f32.partialorder %v9369_v28, %v5425_v4 }
 0x730   :  { %vm9709_vm2 = vmand %vm12881_vm13, %vm12880_vm5  ;;  %vm12888_vm13 = vcmp.gt.f32.partialorder %v9264_v29, %v5513_v24  ;;  %v3241_v39 = vmin.f32 %v3239_v15, %v3202_v14  ;;  %vm12896_vm5 = vcmp.gt.f32.partialorder %v9331_v23, %v5513_v24  ;;  %v3207_v53 = vsel %vm9653_vm0, %v9297_v7, inf }
 0x731   :  { %v12883_v17 = vsel %vm9709_vm2, 4294967295, %v12882_v17  ;;  %vm9719_vm7 = vmor %vm12885_vm10, %vm12884_vm3  ;;  %v3204_v63 = vsel %vm12888_vm13, %v9264_v29, inf  ;;  %vm12889_vm3 = vcmp.gt.f32.partialorder %v9321_v5, %v5513_v24  ;;  %vm12892_vm2 = vcmp.eq.f32.partialorder %v9331_v23, %v5425_v4 }
 0x732   :  { %vm9739_vm10 = vmor %vm12889_vm3, %vm9532_vm8  ;;  %v3242_v19 = vmin.f32 %v3240_v36, %v3204_v63  ;;  %vm12893_vm8 = vcmp.gt.f32.partialorder %v9331_v23, %v5425_v4  ;;  %v3229_v35 = vmin.f32 %v3227_v37, %v3207_v53  ;;  %v3209_v54 = vsel %vm9678_vm15, %v9301_v51, inf }
 0x733   :  { %vm9755_vm3 = vmor %vm12893_vm8, %vm12892_vm2  ;;  %vm12899_vm2 = vcmp.gt.f32.partialorder %v9284_v50, %v5513_v24  ;;  %v3210_v36 = vsel %vm9694_vm11, %v9301_v51, inf  ;;  %v3230_v21 = vmin.f32 %v3228_v22, %v3209_v54  ;;  %vm3280_vm0 = vcmp.lt.f32.partialorder %v5513_v24, %v9321_v5 }
 0x734   :  { %vm9770_vm13 = vmor %vm12896_vm5, %vm9540_vm4  ;;  %v3206_v8 = vsel %vm12899_vm2, %v9284_v50, inf  ;;  %vm12903_vm4 = vcmp.gt.f32.partialorder %v9297_v7, %v5513_v24  ;;  %vm12908_vm5 = vcmp.gt.f32.partialorder %v9373_v6, %v5425_v4  ;;  %v3211_v26 = vsel %vm9719_vm7, %v9321_v5, inf }
 0x735   :  { %vm9781_vm8 = vmor %vm12900_vm9, %vm3119_vm12  ;;  %v3208_v45 = vsel %vm12903_vm4, %v9297_v7, inf  ;;  %v3243_v1 = vmin.f32 %v3241_v39, %v3206_v8  ;;  %vm12904_vm12 = vcmp.gt.f32.partialorder %v9369_v28, %v5513_v24  ;;  %vm12907_vm4 = vcmp.eq.f32.partialorder %v9373_v6, %v5425_v4 }
 0x736   :  { %vm9799_vm2 = vmor %vm12904_vm12, %vm9590_vm14  ;;  %v3244_v15 = vmin.f32 %v3242_v19, %v3208_v45  ;;  %vm3277_vm12 = vcmp.lt.f32.partialorder %v5425_v4, %v9301_v51  ;;  %vm12916_vm9 = vcmp.gt.f32.partialorder %v9377_v57, %v5425_v4  ;;  %v3353_v14 = vrot.slane %v5639_v46, 1 }
 0x737   :  { %vm9813_vm1 = vmor %vm12908_vm5, %vm12907_vm4  ;;  %vm12911_vm5 = vnez %v12861_v12  ;;  %vm12912_vm4 = vcmp.gt.f32.partialorder %v9373_v6, %v5513_v24  ;;  %v3245_v31 = vmin.f32 %v3243_v1, %v3210_v36  ;;  %v3212_v41 = vsel %vm9739_vm10, %v9321_v5, inf }
 0x738   :  { %v12910_v25 = vsel %vm9813_vm1, 4294967295, %v12909_v25  ;;  %vm9833_vm1 = vmor %vm12912_vm4, %vm12911_vm5  ;;  %vm12915_vm4 = vcmp.eq.f32.partialorder %v9377_v57, %v5425_v4  ;;  %vm3282_vm5 = vcmp.lt.f32.partialorder %v5513_v24, %v9331_v23  ;;  %v3231_v32 = vmin.f32 %v3229_v35, %v3211_v26 }
 0x739   :  { %vm9854_vm11 = vmor %vm12916_vm9, %vm12915_vm4  ;;  %vm12919_vm9 = vcmp.gt.f32.partialorder %v9377_v57, %v5513_v24  ;;  %v3355_v63 = vrot.slane %v5639_v46, 3  ;;  %v3213_v9 = vsel %vm9755_vm3, %v9331_v23, inf  ;;  %v3246_v37 = vmin.f32 %v3244_v15, %v3212_v41 }
 0x73a   :  { %vm9873_vm4 = vmor %vm12919_vm9, %vm9668_vm6  ;;  %vm12922_vm6 = vcmp.eq.f32.partialorder %v9392_v20, %v5425_v4  ;;  %vm12923_vm9 = vcmp.gt.f32.partialorder %v9392_v20, %v5425_v4  ;;  %vm3260_vm10 = vcmp.le.f32.partialorder %v9154_v2, %v5513_v24  ;;  %v3356_v19 = vrot.slane %v5639_v46, 4 }
 0x73b   :  { %vm9892_vm14 = vmor %vm12923_vm9, %vm12922_vm6  ;;  %v3357_v52 = vrot.slane %v5639_v46, 5  ;;  %vm12926_vm6 = vnez %v12883_v17  ;;  %vm12927_vm9 = vcmp.gt.f32.partialorder %v9392_v20, %v5513_v24  ;;  %v3214_v48 = vsel %vm9770_vm13, %v9331_v23, inf }
 0x73c   :  { %vm9910_vm7 = vmor %vm12927_vm9, %vm12926_vm6  ;;  %v3232_v22 = vmin.f32 %v3230_v21, %v3213_v9  ;;  %v3358_v17 = vrot.slane %v5639_v46, 6  ;;  %v3359_v53 = vrot.slane %v5639_v46, 7  ;;  %v3215_v45 = vsel %vm9781_vm8, %v9369_v28, inf }
 0x73d   :  { %v3247_v1 = vmin.f32 %v3245_v31, %v3214_v48  ;;  %vm12930_vm9 = vcmp.le.f32.partialorder %v9156_v56, %v5425_v4  ;;  %v3361_v35 = vrot.slane %v5723_v43, 2  ;;  %v3216_v15 = vsel %vm9799_vm2, %v9369_v28, inf }
 0x73e   :  { %vm9936_vm15 = vmand %vm12930_vm9, %vm3277_vm12  ;;  %v3233_v54 = vmin.f32 %v3231_v32, %v3215_v45  ;;  %vm12933_vm12 = vcmp.lt.f32.partialorder %v5513_v24, %v9301_v51  ;;  %vm12934_vm9 = vcmp.le.f32.partialorder %v9156_v56, %v5513_v24  ;;  %v3362_v10 = vrot.slane %v5723_v43, 3 }
 0x73f   :  { %vm9955_vm6 = vmand %vm12934_vm9, %vm12933_vm12  ;;  %v3363_v21 = vrot.slane %v5723_v43, 4  ;;  %vm12937_vm2 = vnez %v12910_v25  ;;  %v3248_v31 = vmin.f32 %v3246_v37, %v3216_v15  ;;  %vm3270_vm13 = vcmp.le.f32.partialorder %v9260_v13, %v5513_v24 }
 0x740   :  { %v3217_v26 = vsel %vm12937_vm2, %v9373_v6, inf  ;;  %vm12938_vm12 = vcmp.lt.f32.partialorder %v5425_v4, %v9321_v5  ;;  %vm12939_vm9 = vcmp.le.f32.partialorder %v9194_v47, %v5425_v4  ;;  %v3364_v51 = vrot.slane %v5723_v43, 5 }
 0x741   :  { %vm9974_vm3 = vmand %vm12939_vm9, %vm12938_vm12  ;;  %v3365_v25 = vrot.slane %v5723_v43, 6  ;;  %v3218_v41 = vsel %vm9833_vm1, %v9373_v6, inf  ;;  %v3234_v32 = vmin.f32 %v3232_v22, %v3217_v26  ;;  %vm12942_vm12 = vcmp.le.f32.partialorder %v9194_v47, %v5513_v24 }
 0x742   :  { %vm9993_vm9 = vmand %vm12942_vm12, %vm3280_vm0  ;;  %v3366_v62 = vrot.slane %v5723_v43, 7  ;;  %v9999_v37 = vperm.slane %v5639_v46, 0  ;;  %v3219_v48 = vsel %vm9854_vm11, %v9377_v57, inf  ;;  %v3249_v22 = vmin.f32 %v3247_v1, %v3218_v41 }
 0x743   :  { %vm3272_vm1 = vcmp.le.f32.partialorder %v9264_v29, %v5513_v24  ;;  %vm12945_vm0 = vcmp.lt.f32.partialorder %v5425_v4, %v9331_v23  ;;  %vm12946_vm12 = vcmp.le.f32.partialorder %v9231_v18, %v5425_v4  ;;  %v10018_v5 = vperm.slane %v3353_v14, 0 }
 0x744   :  { %vm10014_vm2 = vmand %vm12946_vm12, %vm12945_vm0  ;;  %v10020_v12 = vperm.slane %v3354_v55, 0  ;;  %v3220_v45 = vsel %vm9873_vm4, %v9377_v57, inf  ;;  %v3235_v1 = vmin.f32 %v3233_v54, %v3219_v48  ;;  %vm3273_vm11 = vcmp.le.f32.partialorder %v9284_v50, %v5425_v4 }
 0x745   :  { %vm12949_vm0 = vcmp.le.f32.partialorder %v9231_v18, %v5513_v24  ;;  %v10037_v14 = vperm.slane %v3355_v63, 0  ;;  %v10039_v55 = vperm.slane %v3356_v19, 0  ;;  %v3221_v59 = vsel %vm9892_vm14, %v9392_v20, inf }
 0x746   :  { %vm10033_vm12 = vmand %vm12949_vm0, %vm3282_vm5  ;;  %v3222_v54 = vsel %vm9910_vm7, %v9392_v20, inf  ;;  %v3250_v23 = vmin.f32 %v3248_v31, %v3220_v45  ;;  %vm3274_vm4 = vcmp.le.f32.partialorder %v9284_v50, %v5513_v24  ;;  %vm12952_vm5 = vcmp.lt.f32.partialorder %v5425_v4, %v9297_v7 }
 0x747   :  { %vm12953_vm0 = vcmp.le.f32.partialorder %v9154_v2, %v5425_v4  ;;  %v10055_v18 = vperm.slane %v3357_v52, 0  ;;  %v3236_v63 = vmin.f32 %v3234_v32, %v3221_v59  ;;  %vm12954_vm14 = vcmp.lt.f32.partialorder %v5513_v24, %v9297_v7 }
 0x748   :  { %vm3291_vm8 = vmand %vm12953_vm0, %vm12952_vm5  ;;  %v3309_v19 = vsel %vm9936_vm15, 1.0, %v4314_v0  ;;  %v3311_v52 = vsel %vm9974_vm3, 1.0, %v4314_v0  ;;  %v3313_v8 = vsel %vm10014_vm2, 1.0, %v4314_v0  ;;  %v3251_v7 = vmin.f32 %v3249_v22, %v3222_v54 }
 0x749   :  { %vm10063_vm7 = vmand %vm3260_vm10, %vm12954_vm14  ;;  %vm12957_vm5 = vcmp.lt.f32.partialorder %v5425_v4, %v9369_v28  ;;  %vm12958_vm10 = vcmp.le.f32.partialorder %v9246_v60, %v5425_v4  ;;  %v3310_v11 = vsel %vm9955_vm6, 1.0, %v4314_v0  ;;  %v3312_v26 = vsel %vm9993_vm9, 1.0, %v4314_v0 }
 0x74a   :  { %vm10082_vm0 = vmand %vm12958_vm10, %vm12957_vm5  ;;  %v3314_v31 = vsel %vm10033_vm12, 1.0, %v4314_v0  ;;  %vm12961_vm15 = vcmp.lt.f32.partialorder %v5513_v24, %v9369_v28  ;;  %vm12962_vm3 = vcmp.le.f32.partialorder %v9246_v60, %v5513_v24  ;;  %v3307_v36 = vsel %vm3291_vm8, 1.0, %v4314_v0 }
 0x74b   :  { %vm10101_vm2 = vmand %vm12962_vm3, %vm12961_vm15  ;;  %v10106_v41 = vperm.slane %v3358_v17, 0  ;;  %v10108_v32 = vperm.slane %v3359_v53, 0  ;;  %v10111_v9 = vperm.slane %v5723_v43, 0  ;;  %vm12965_vm6 = vcmp.lt.f32.partialorder %v5425_v4, %v9373_v6 }
 0x74c   :  { %vm12966_vm9 = vcmp.le.f32.partialorder %v9260_v13, %v5425_v4  ;;  %v3308_v28 = vsel %vm10063_vm7, 1.0, %v4314_v0  ;;  %v3323_v17 = vmax.f32 %v3307_v36, %v3311_v52  ;;  %v3324_v53 = vmax.f32 %v3309_v19, %v3313_v8 }
 0x74d   :  { %vm10119_vm12 = vmand %vm12966_vm9, %vm12965_vm6  ;;  %v10126_v48 = vperm.slane %v3360_v34, 0  ;;  %v3237_v22 = vmin.f32 %v3235_v1, %v3236_v63  ;;  %vm12969_vm8 = vcmp.lt.f32.partialorder %v5513_v24, %v9373_v6  ;;  %v3330_v45 = vmax.f32 %v3308_v28, %v3312_v26 }
 0x74e   :  { %vm10134_vm14 = vmand %vm3270_vm13, %vm12969_vm8  ;;  %v3331_v15 = vmax.f32 %v3310_v11, %v3314_v31  ;;  %v10140_v59 = vperm.slane %v3361_v35, 0  ;;  %v3252_v54 = vmin.f32 %v3250_v23, %v3251_v7  ;;  %vm12972_vm7 = vcmp.lt.f32.partialorder %v5425_v4, %v9377_v57 }
 0x74f   :  { %vm12973_vm5 = vcmp.le.f32.partialorder %v9264_v29, %v5425_v4  ;;  %v10152_v13 = vperm.slane %v3362_v10, 0  ;;  %v10154_v34 = vperm.slane %v3363_v21, 0  ;;  %v10156_v1 = vperm.slane %v3364_v51, 0 }
 0x750   :  { %vm10148_vm10 = vmand %vm12973_vm5, %vm12972_vm7  ;;  %vm12976_vm13 = vcmp.lt.f32.partialorder %v5513_v24, %v9377_v57  ;;  %v3315_v23 = vsel %vm10082_vm0, 1.0, %v4314_v0  ;;  %v3316_v10 = vsel %vm10101_vm2, 1.0, %v4314_v0  ;;  %v3317_v21 = vsel %vm10119_vm12, 1.0, %v4314_v0 }
 0x751   :  { %vm10164_vm15 = vmand %vm3272_vm1, %vm12976_vm13  ;;  %vm3433_vm3 = vcmp.eq.f32.partialorder %v10018_v5, %v5639_v46  ;;  %vm12979_vm1 = vcmp.lt.f32.partialorder %v5425_v4, %v9392_v20  ;;  %v3318_v57 = vsel %vm10134_vm14, 1.0, %v4314_v0  ;;  %v3325_v51 = vmax.f32 %v3323_v17, %v3315_v23 }
 0x752   :  { %vm10185_vm6 = vmand %vm3273_vm11, %vm12979_vm1  ;;  %v3326_v63 = vmax.f32 %v3324_v53, %v3317_v21  ;;  %vm3435_vm0 = vcmp.eq.f32.partialorder %v10020_v12, %v5639_v46  ;;  %vm3253_vm2 = vcmp.lt.f32.partialorder %v3237_v22, inf  ;;  %vm12982_vm9 = vcmp.lt.f32.partialorder %v5513_v24, %v9392_v20 }
 0x753   :  { %vm3306_vm11 = vmand %vm3274_vm4, %vm12982_vm9  ;;  %v3332_v39 = vmax.f32 %v3330_v45, %v3316_v10  ;;  %v3333_v19 = vmax.f32 %v3331_v15, %v3318_v57  ;;  %vm3437_vm12 = vcmp.eq.f32.partialorder %v10037_v14, %v5639_v46  ;;  %vm3254_vm8 = vcmp.lt.f32.partialorder %v3252_v54, inf }
 0x754   :  { %v3255_v52 = vsub.f32 %v3237_v22, %v5425_v4  ;;  %v3256_v8 = vsub.f32 %v3252_v54, %v5513_v24  ;;  %vm3439_vm14 = vcmp.eq.f32.partialorder %v10039_v55, %v5639_v46  ;;  %vm12983_vm7 = vcmp.lt.s32.totalorder %v4888_v33, 1 }
 0x755   :  { %vm10211_vm5 = vmand %vm3433_vm3, %vm12983_vm7  ;;  %v3319_v20 = vsel %vm10148_vm10, 1.0, %v4314_v0  ;;  %v3320_v4 = vsel %vm10164_vm15, 1.0, %v4314_v0  ;;  %v3321_v24 = vsel %vm10185_vm6, 1.0, %v4314_v0  ;;  %vm3441_vm4 = vcmp.eq.f32.partialorder %v10055_v18, %v5639_v46 }
 0x756   :  { %vm12986_vm13 = vcmp.lt.s32.totalorder %v4888_v33, 2  ;;  %v3322_v2 = vsel %vm3306_vm11, 1.0, %v4314_v0  ;;  %v3327_v11 = vmax.f32 %v3325_v51, %v3319_v20  ;;  %v3328_v26 = vmax.f32 %v3326_v63, %v3321_v24 }
 0x757   :  { %vm10231_vm3 = vmand %vm3435_vm0, %vm12986_vm13  ;;  %vm3443_vm10 = vcmp.eq.f32.partialorder %v10106_v41, %v5639_v46  ;;  %vm12989_vm15 = vcmp.lt.s32.totalorder %v4888_v33, 3  ;;  %v3334_v56 = vmax.f32 %v3332_v39, %v3320_v4  ;;  %v3335_v36 = vmax.f32 %v3333_v19, %v3322_v2 }
 0x758   :  { %vm10243_vm1 = vmand %vm3437_vm12, %vm12989_vm15  ;;  %v10249_v60 = vperm.slane %v3365_v25, 0  ;;  %vm3445_vm6 = vcmp.eq.f32.partialorder %v10108_v32, %v5639_v46  ;;  %vm12992_vm0 = vcmp.lt.s32.totalorder %v4888_v33, 4  ;;  %v10264_v17 = vperm.slane %v3366_v62, 0 }
 0x759   :  { %vm10258_vm9 = vmand %vm3439_vm14, %vm12992_vm0  ;;  %vm3401_vm7 = vcmp.gt.f32.partialorder %v10018_v5, %v5639_v46  ;;  %vm12995_vm13 = vcmp.lt.s32.totalorder %v4888_v33, 5  ;;  %v3257_v62 = vsel %vm3253_vm2, %v3255_v52, 0.0  ;;  %v3258_v53 = vsel %vm3254_vm8, %v3256_v8, 0.0 }
 0x75a   :  { %vm10277_vm14 = vmand %vm3441_vm4, %vm12995_vm13  ;;  %vm3403_vm0 = vcmp.gt.f32.partialorder %v10020_v12, %v5639_v46  ;;  %vm12998_vm12 = vcmp.lt.s32.totalorder %v4888_v33, 6  ;;  %v3329_v45 = vmax.f32 %v3327_v11, %v3328_v26  ;;  %vm3405_vm8 = vcmp.gt.f32.partialorder %v10037_v14, %v5639_v46 }
 0x75b   :  { %vm10292_vm11 = vmand %vm3443_vm10, %vm12998_vm12  ;;  %vm13001_vm13 = vcmp.lt.s32.totalorder %v4888_v33, 7  ;;  %v13002_v22 = vmov 0  ;;  %v3336_v15 = vmax.f32 %v3334_v56, %v3335_v36  ;;  %vm3450_vm2 = vcmp.eq.f32.partialorder %v10126_v48, %v5723_v43 }
 0x75c   :  { %vm10307_vm15 = vmand %vm3445_vm6, %vm13001_vm13  ;;  %vm13010_vm10 = vcmp.lt.s32.totalorder %v4921_v58, 9  ;;  %vm3456_vm12 = vcmp.eq.f32.partialorder %v10154_v34, %v5723_v43  ;;  %vm13013_vm6 = vcmp.lt.s32.totalorder %v4921_v58, 10  ;;  %v13040_v28 = vmov 0 }
 0x75d   :  { %v13003_v22 = vsel %vm10307_vm15, 4294967295, %v13002_v22  ;;  %vm10322_vm4 = vmor %vm3401_vm7, %vm10211_vm5  ;;  %vm13019_vm7 = vcmp.eq.f32.partialorder %v10152_v13, %v5723_v43  ;;  %v13084_v57 = vmov 0 }
 0x75e   :  { %vm10339_vm5 = vmor %vm3403_vm0, %vm10231_vm3  ;;  %vm13014_vm0 = vcmp.eq.f32.partialorder %v10140_v59, %v5723_v43  ;;  %v3529_v51 = vsel %vm10322_vm4, %v10018_v5, inf  ;;  %vm3458_vm4 = vcmp.eq.f32.partialorder %v10156_v1, %v5723_v43 }
 0x75f   :  { %vm10356_vm3 = vmor %vm3405_vm8, %vm10243_vm1  ;;  %vm3338_vm8 = vcmp.gt.f32.partialorder %v3336_v15, 0.0  ;;  %v3531_v21 = vsel %vm10339_vm5, %v10020_v12, inf  ;;  %vm13023_vm5 = vcmp.gt.f32.partialorder %v10037_v14, %v5723_v43 }
 0x760   :  { %vm10373_vm1 = vmand %vm3450_vm2, %vm13010_vm10  ;;  %vm13017_vm2 = vcmp.gt.f32.partialorder %v10020_v12, %v5723_v43  ;;  %vm13018_vm10 = vcmp.lt.s32.totalorder %v4921_v58, 11  ;;  %v3533_v39 = vsel %vm10356_vm3, %v10037_v14, inf  ;;  %v3534_v19 = vsel %vm13023_vm5, %v10037_v14, inf }
 0x761   :  { %vm10388_vm15 = vmand %vm13014_vm0, %vm13013_vm6  ;;  %v3532_v29 = vsel %vm13017_vm2, %v10020_v12, inf  ;;  %vm13022_vm6 = vcmp.gt.f32.partialorder %v10018_v5, %v5723_v43  ;;  %vm13025_vm2 = vcmp.gt.f32.partialorder %v10039_v55, %v5639_v46  ;;  %vm13028_vm3 = vcmp.gt.f32.partialorder %v9999_v37, %v5639_v46 }
 0x762   :  { %vm10404_vm13 = vmand %vm13019_vm7, %vm13018_vm10  ;;  %v3530_v63 = vsel %vm13022_vm6, %v10018_v5, inf  ;;  %vm13024_vm7 = vcmp.gt.f32.partialorder %v3329_v45, 0.0  ;;  %v3527_v50 = vsel %vm13028_vm3, %v9999_v37, inf  ;;  %vm13029_vm6 = vcmp.gt.f32.partialorder %v9999_v37, %v5723_v43 }
 0x763   :  { %v3339_v52 = vsel %vm13024_vm7, %v3257_v62, 0.0  ;;  %vm10432_vm10 = vmor %vm13025_vm2, %vm10258_vm9  ;;  %v3528_v20 = vsel %vm13029_vm6, %v9999_v37, inf  ;;  %v3340_v4 = vsel %vm3338_vm8, %v3258_v53, 0.0  ;;  %vm3447_vm5 = vcmp.eq.f32.partialorder %v10111_v9, %v5639_v46 }
 0x764   :  { %vm13030_vm9 = vcmp.lt.s32.totalorder %v4921_v58, 12  ;;  %vm13033_vm2 = vcmp.gt.f32.partialorder %v10055_v18, %v5639_v46  ;;  %v3559_v2 = vmin.f32 %v3527_v50, %v3531_v21  ;;  %v3574_v11 = vmin.f32 %v3528_v20, %v3532_v29 }
 0x765   :  { %vm10452_vm7 = vmand %vm3456_vm12, %vm13030_vm9  ;;  %vm13036_vm6 = vcmp.gt.f32.partialorder %v10106_v41, %v5639_v46  ;;  %v3560_v31 = vmin.f32 %v3529_v51, %v3533_v39  ;;  %v3575_v56 = vmin.f32 %v3530_v63, %v3534_v19  ;;  %v3341_v36 = vadd.f32 %v3340_v4, %v3339_v52 }
 0x766   :  { %vm10461_vm3 = vmor %vm13033_vm2, %vm10277_vm14  ;;  %vm13039_vm8 = vcmp.lt.s32.totalorder %v4921_v58, 13  ;;  %vm13043_vm14 = vcmp.gt.f32.partialorder %v10108_v32, %v5639_v46  ;;  %v3535_v53 = vsel %vm10432_vm10, %v10039_v55, inf  ;;  %vm13051_vm0 = vcmp.eq.f32.partialorder %v10249_v60, %v5723_v43 }
 0x767   :  { %vm10474_vm9 = vmor %vm13036_vm6, %vm10292_vm11  ;;  %vm13042_vm6 = vnez %v13003_v22  ;;  %v13052_v45 = vmov 0  ;;  %vm13055_vm10 = vcmp.gt.f32.partialorder %v10126_v48, %v5639_v46  ;;  %v3537_v15 = vsel %vm10461_vm3, %v10055_v18, inf }
 0x768   :  { %vm10489_vm11 = vmand %vm3458_vm4, %vm13039_vm8  ;;  %vm13046_vm4 = vcmp.gt.f32.partialorder %v10111_v9, %v5639_v46  ;;  %v3561_v6 = vmin.f32 %v3559_v2, %v3535_v53  ;;  %v3562_v29 = vmin.f32 %v3560_v31, %v3537_v15  ;;  %v3342_v63 = vrot.slane %v3341_v36, 4 }
 0x769   :  { %v13041_v28 = vsel %vm10489_vm11, 4294967295, %v13040_v28  ;;  %vm10498_vm12 = vmor %vm13043_vm14, %vm13042_vm6  ;;  %vm13049_vm14 = vcmp.gt.f32.partialorder %v10039_v55, %v5723_v43  ;;  %vm13050_vm6 = vcmp.lt.s32.totalorder %v4921_v58, 14  ;;  %vm13067_vm3 = vcmp.gt.f32.partialorder %v10140_v59, %v5639_v46 }
 0x76a   :  { %vm10512_vm8 = vmor %vm13046_vm4, %vm3447_vm5  ;;  %v3536_v47 = vsel %vm13049_vm14, %v10039_v55, inf  ;;  %vm13054_vm5 = vcmp.eq.f32.partialorder %v10126_v48, %v5639_v46  ;;  %v3539_v52 = vsel %vm10474_vm9, %v10106_v41, inf  ;;  %vm13075_vm14 = vcmp.gt.f32.partialorder %v10152_v13, %v5639_v46 }
 0x76b   :  { %vm10528_vm2 = vmand %vm13051_vm0, %vm13050_vm6  ;;  %vm13058_vm0 = vcmp.gt.f32.partialorder %v10055_v18, %v5723_v43  ;;  %v3576_v35 = vmin.f32 %v3574_v11, %v3536_v47  ;;  %vm13062_vm6 = vcmp.lt.s32.totalorder %v4921_v58, 15  ;;  %v3541_v50 = vsel %vm10498_vm12, %v10108_v32, inf }
 0x76c   :  { %v13053_v45 = vsel %vm10528_vm2, 4294967295, %v13052_v45  ;;  %vm10538_vm4 = vmor %vm13055_vm10, %vm13054_vm5  ;;  %v3538_v54 = vsel %vm13058_vm0, %v10055_v18, inf  ;;  %vm13059_vm5 = vcmp.gt.f32.partialorder %v10126_v48, %v5723_v43  ;;  %vm13066_vm2 = vcmp.eq.f32.partialorder %v10140_v59, %v5639_v46 }
 0x76d   :  { %vm10558_vm10 = vmor %vm13059_vm5, %vm10373_vm1  ;;  %v3577_v51 = vmin.f32 %v3575_v56, %v3538_v54  ;;  %vm13063_vm1 = vcmp.eq.f32.partialorder %v10264_v17, %v5723_v43  ;;  %v3563_v4 = vmin.f32 %v3561_v6, %v3539_v52  ;;  %v3564_v11 = vmin.f32 %v3562_v29, %v3541_v50 }
 0x76e   :  { %vm10573_vm5 = vmand %vm13063_vm1, %vm13062_vm6  ;;  %vm13070_vm6 = vcmp.gt.f32.partialorder %v10140_v59, %v5723_v43  ;;  %v10637_v31 = vadd.f32 %v3342_v63, %v3341_v36  ;;  %vm13083_vm9 = vcmp.gt.f32.partialorder %v10154_v34, %v5639_v46  ;;  %v3543_v25 = vsel %vm10512_vm8, %v10111_v9, inf }
 0x76f   :  { %vm10583_vm11 = vmor %vm13067_vm3, %vm13066_vm2  ;;  %vm13073_vm2 = vcmp.gt.f32.partialorder %v10106_v41, %v5723_v43  ;;  %vm13074_vm3 = vcmp.eq.f32.partialorder %v10152_v13, %v5639_v46  ;;  %v3545_v62 = vsel %vm10538_vm4, %v10126_v48, inf  ;;  %v3546_v53 = vsel %vm10558_vm10, %v10126_v48, inf }
 0x770   :  { %vm10596_vm1 = vmor %vm13070_vm6, %vm10388_vm15  ;;  %v3540_v8 = vsel %vm13073_vm2, %v10106_v41, inf  ;;  %vm13078_vm15 = vcmp.gt.f32.partialorder %v10108_v32, %v5723_v43  ;;  %vm13079_vm6 = vcmp.gt.f32.partialorder %v10152_v13, %v5723_v43  ;;  %v3565_v47 = vmin.f32 %v3563_v4, %v3543_v25 }
 0x771   :  { %vm10613_vm0 = vmor %vm13075_vm14, %vm13074_vm3  ;;  %v3542_v20 = vsel %vm13078_vm15, %v10108_v32, inf  ;;  %v3578_v7 = vmin.f32 %v3576_v35, %v3540_v8  ;;  %vm3457_vm14 = vcmp.eq.f32.partialorder %v10156_v1, %v5639_v46  ;;  %vm13082_vm15 = vcmp.eq.f32.partialorder %v10154_v34, %v5639_v46 }
 0x772   :  { %vm10633_vm2 = vmor %vm13079_vm6, %vm10404_vm13  ;;  %v3579_v26 = vmin.f32 %v3577_v51, %v3542_v20  ;;  %vm13086_vm6 = vcmp.gt.f32.partialorder %v10111_v9, %v5723_v43  ;;  %vm13087_vm3 = vcmp.gt.f32.partialorder %v10154_v34, %v5723_v43  ;;  %v3566_v22 = vmin.f32 %v3564_v11, %v3545_v62 }
 0x773   :  { %vm10649_vm13 = vmor %vm13083_vm9, %vm13082_vm15  ;;  %v3544_v56 = vsel %vm13086_vm6, %v10111_v9, inf  ;;  %vm3615_vm9 = vcmp.lt.f32.partialorder %v5639_v46, %v10140_v59  ;;  %vm3616_vm6 = vcmp.lt.f32.partialorder %v5723_v43, %v10140_v59  ;;  %vm13102_vm4 = vcmp.gt.f32.partialorder %v10249_v60, %v5723_v43 }
 0x774   :  { %v13085_v57 = vsel %vm10649_vm13, 4294967295, %v13084_v57  ;;  %vm10662_vm12 = vmor %vm13087_vm3, %vm10452_vm7  ;;  %vm13090_vm13 = vcmp.gt.f32.partialorder %v10156_v1, %v5639_v46  ;;  %v3580_v15 = vmin.f32 %v3578_v7, %v3544_v56  ;;  %vm13093_vm3 = vnez %v13041_v28 }
 0x775   :  { %vm10678_vm7 = vmor %vm13090_vm13, %vm3457_vm14  ;;  %vm13094_vm14 = vcmp.gt.f32.partialorder %v10156_v1, %v5723_v43  ;;  %v3581_v6 = vmin.f32 %v3579_v26, %v3546_v53  ;;  %v13099_v28 = vmov 0  ;;  %v3547_v21 = vsel %vm10583_vm11, %v10140_v59, inf }
 0x776   :  { %vm10695_vm13 = vmor %vm13094_vm14, %vm13093_vm3  ;;  %vm13097_vm3 = vcmp.eq.f32.partialorder %v10249_v60, %v5639_v46  ;;  %vm13098_vm14 = vcmp.gt.f32.partialorder %v10249_v60, %v5639_v46  ;;  %v3548_v29 = vsel %vm10596_vm1, %v10140_v59, inf  ;;  %vm3595_vm10 = vcmp.le.f32.partialorder %v9999_v37, %v5639_v46 }
 0x777   :  { %vm10713_vm15 = vmor %vm13098_vm14, %vm13097_vm3  ;;  %vm13101_vm14 = vnez %v13053_v45  ;;  %v3689_v45 = vrot.slane %v5884_v49, 1  ;;  %v3549_v63 = vsel %vm10613_vm0, %v10152_v13, inf  ;;  %v3550_v39 = vsel %vm10633_vm2, %v10152_v13, inf }
 0x778   :  { %v13100_v28 = vsel %vm10713_vm15, 4294967295, %v13099_v28  ;;  %vm10734_vm15 = vmor %vm13102_vm4, %vm13101_vm14  ;;  %vm13105_vm4 = vcmp.eq.f32.partialorder %v10264_v17, %v5639_v46  ;;  %vm13106_vm14 = vcmp.gt.f32.partialorder %v10264_v17, %v5639_v46  ;;  %v3567_v19 = vmin.f32 %v3565_v47, %v3547_v21 }
 0x779   :  { %vm10755_vm8 = vmor %vm13106_vm14, %vm13105_vm4  ;;  %v3582_v52 = vmin.f32 %v3580_v15, %v3548_v29  ;;  %vm13109_vm4 = vcmp.gt.f32.partialorder %v10264_v17, %v5723_v43  ;;  %v3568_v10 = vmin.f32 %v3566_v22, %v3549_v63  ;;  %v3583_v50 = vmin.f32 %v3581_v6, %v3550_v39 }
 0x77a   :  { %vm10774_vm14 = vmor %vm13109_vm4, %vm10573_vm5  ;;  %v3690_v20 = vrot.slane %v5884_v49, 2  ;;  %v3691_v4 = vrot.slane %v5884_v49, 3  ;;  %vm13112_vm4 = vcmp.lt.f32.partialorder %v5639_v46, %v10126_v48  ;;  %vm13113_vm3 = vcmp.le.f32.partialorder %v10018_v5, %v5639_v46 }
 0x77b   :  { %vm10794_vm0 = vmand %vm13113_vm3, %vm13112_vm4  ;;  %v3692_v7 = vrot.slane %v5884_v49, 4  ;;  %v3693_v2 = vrot.slane %v5884_v49, 5  ;;  %v3694_v11 = vrot.slane %v5884_v49, 6  ;;  %v3695_v26 = vrot.slane %v5884_v49, 7 }
 0x77c   :  { %vm13116_vm5 = vnez %v13085_v57  ;;  %v3552_v25 = vsel %vm10662_vm12, %v10154_v34, inf  ;;  %vm3605_vm3 = vcmp.le.f32.partialorder %v10055_v18, %v5639_v46  ;;  %vm13117_vm2 = vcmp.lt.f32.partialorder %v5723_v43, %v10126_v48 }
 0x77d   :  { %v3551_v56 = vsel %vm13116_vm5, %v10154_v34, inf  ;;  %vm13118_vm1 = vcmp.le.f32.partialorder %v10018_v5, %v5723_v43  ;;  %v3696_v57 = vrot.slane %v5947_v40, 1  ;;  %v3697_v36 = vrot.slane %v5947_v40, 2 }
 0x77e   :  { %vm10818_vm11 = vmand %vm13118_vm1, %vm13117_vm2  ;;  %v3553_v53 = vsel %vm10678_vm7, %v10156_v1, inf  ;;  %v3554_v47 = vsel %vm10695_vm13, %v10156_v1, inf  ;;  %v3569_v48 = vmin.f32 %v3567_v19, %v3551_v56  ;;  %v3584_v15 = vmin.f32 %v3582_v52, %v3552_v25 }
 0x77f   :  { %vm3606_vm12 = vcmp.le.f32.partialorder %v10055_v18, %v5723_v43  ;;  %vm13121_vm2 = vcmp.le.f32.partialorder %v10020_v12, %v5639_v46  ;;  %v3570_v24 = vmin.f32 %v3568_v10, %v3553_v53  ;;  %v3585_v54 = vmin.f32 %v3583_v50, %v3554_v47 }
 0x780   :  { %vm10840_vm5 = vmand %vm13121_vm2, %vm3615_vm9  ;;  %vm13124_vm1 = vcmp.le.f32.partialorder %v10020_v12, %v5723_v43  ;;  %v3698_v6 = vrot.slane %v5947_v40, 3  ;;  %v3699_v21 = vrot.slane %v5947_v40, 4  ;;  %vm13127_vm13 = vcmp.lt.f32.partialorder %v5639_v46, %v10152_v13 }
 0x781   :  { %vm10854_vm4 = vmand %vm13124_vm1, %vm3616_vm6  ;;  %vm13128_vm7 = vcmp.le.f32.partialorder %v10037_v14, %v5639_v46  ;;  %v3700_v59 = vrot.slane %v5947_v40, 5  ;;  %v3701_v29 = vrot.slane %v5947_v40, 6  ;;  %v3702_v63 = vrot.slane %v5947_v40, 7 }
 0x782   :  { %vm10870_vm6 = vmand %vm13128_vm7, %vm13127_vm13  ;;  %v10878_v39 = vperm.slane %v5884_v49, 0  ;;  %vm13131_vm1 = vnez %v13100_v28  ;;  %v3556_v52 = vsel %vm10734_vm15, %v10249_v60, inf  ;;  %vm3609_vm7 = vcmp.le.f32.partialorder %v10108_v32, %v5639_v46 }
 0x783   :  { %v3555_v19 = vsel %vm13131_vm1, %v10249_v60, inf  ;;  %vm13132_vm13 = vcmp.lt.f32.partialorder %v5723_v43, %v10152_v13  ;;  %vm13133_vm2 = vcmp.le.f32.partialorder %v10037_v14, %v5723_v43  ;;  %v10898_v50 = vperm.slane %v3689_v45, 0 }
 0x784   :  { %vm10894_vm9 = vmand %vm13133_vm2, %vm13132_vm13  ;;  %v10900_v28 = vperm.slane %v3690_v20, 0  ;;  %v3557_v35 = vsel %vm10755_vm8, %v10264_v17, inf  ;;  %v3558_v56 = vsel %vm10774_vm14, %v10264_v17, inf  ;;  %v3571_v13 = vmin.f32 %v3569_v48, %v3555_v19 }
 0x785   :  { %v3586_v25 = vmin.f32 %v3584_v15, %v3556_v52  ;;  %vm13136_vm2 = vcmp.lt.f32.partialorder %v5639_v46, %v10111_v9  ;;  %v3572_v14 = vmin.f32 %v3570_v24, %v3557_v35  ;;  %v3587_v45 = vmin.f32 %v3585_v54, %v3558_v56 }
 0x786   :  { %vm3627_vm1 = vmand %vm3595_vm10, %vm13136_vm2  ;;  %vm13137_vm8 = vcmp.lt.f32.partialorder %v5723_v43, %v10111_v9  ;;  %vm13138_vm14 = vcmp.le.f32.partialorder %v9999_v37, %v5723_v43  ;;  %v3645_v51 = vsel %vm10794_vm0, 1.0, %v4314_v0  ;;  %v3647_v8 = vsel %vm10840_vm5, 1.0, %v4314_v0 }
 0x787   :  { %vm3628_vm13 = vmand %vm13138_vm14, %vm13137_vm8  ;;  %vm13139_vm10 = vcmp.lt.f32.partialorder %v5639_v46, %v10154_v34  ;;  %vm13140_vm2 = vcmp.le.f32.partialorder %v10039_v55, %v5639_v46  ;;  %v3646_v37 = vsel %vm10818_vm11, 1.0, %v4314_v0  ;;  %v3648_v20 = vsel %vm10854_vm4, 1.0, %v4314_v0 }
 0x788   :  { %vm10934_vm15 = vmand %vm13140_vm2, %vm13139_vm10  ;;  %v3649_v23 = vsel %vm10870_vm6, 1.0, %v4314_v0  ;;  %v3650_v53 = vsel %vm10894_vm9, 1.0, %v4314_v0  ;;  %vm13143_vm0 = vcmp.lt.f32.partialorder %v5723_v43, %v10154_v34  ;;  %vm13144_vm5 = vcmp.le.f32.partialorder %v10039_v55, %v5723_v43 }
 0x789   :  { %vm10956_vm8 = vmand %vm13144_vm5, %vm13143_vm0  ;;  %v3643_v47 = vsel %vm3627_vm1, 1.0, %v4314_v0  ;;  %v10961_v48 = vperm.slane %v3691_v4, 0  ;;  %v10963_v15 = vperm.slane %v3692_v7, 0  ;;  %v10965_v5 = vperm.slane %v3693_v2, 0 }
 0x78a   :  { %vm13147_vm11 = vcmp.lt.f32.partialorder %v5639_v46, %v10156_v1  ;;  %v3644_v34 = vsel %vm3628_vm13, 1.0, %v4314_v0  ;;  %v3659_v24 = vmax.f32 %v3643_v47, %v3647_v8  ;;  %v10978_v54 = vperm.slane %v3694_v11, 0 }
 0x78b   :  { %vm10973_vm4 = vmand %vm3605_vm3, %vm13147_vm11  ;;  %v10980_v4 = vperm.slane %v3695_v26, 0  ;;  %vm13150_vm9 = vcmp.lt.f32.partialorder %v5723_v43, %v10156_v1  ;;  %v3660_v2 = vmax.f32 %v3645_v51, %v3649_v23  ;;  %v3666_v22 = vmax.f32 %v3644_v34, %v3648_v20 }
 0x78c   :  { %vm10988_vm6 = vmand %vm3606_vm12, %vm13150_vm9  ;;  %v3667_v12 = vmax.f32 %v3646_v37, %v3650_v53  ;;  %v10993_v19 = vperm.slane %v5947_v40, 0  ;;  %v3573_v11 = vmin.f32 %v3571_v13, %v3572_v14  ;;  %v3588_v52 = vmin.f32 %v3586_v25, %v3587_v45 }
 0x78d   :  { %vm13153_vm3 = vcmp.lt.f32.partialorder %v5639_v46, %v10249_v60  ;;  %vm13154_vm1 = vcmp.le.f32.partialorder %v10106_v41, %v5639_v46  ;;  %v11005_v1 = vperm.slane %v3696_v57, 0  ;;  %v11007_v26 = vperm.slane %v3697_v36, 0 }
 0x78e   :  { %vm11001_vm14 = vmand %vm13154_vm1, %vm13153_vm3  ;;  %vm13157_vm12 = vcmp.lt.f32.partialorder %v5723_v43, %v10249_v60  ;;  %vm13158_vm13 = vcmp.le.f32.partialorder %v10106_v41, %v5723_v43  ;;  %v3651_v35 = vsel %vm10934_vm15, 1.0, %v4314_v0  ;;  %v11022_v56 = vperm.slane %v3698_v6, 0 }
 0x78f   :  { %vm11015_vm10 = vmand %vm13158_vm13, %vm13157_vm12  ;;  %v11024_v57 = vperm.slane %v3699_v21, 0  ;;  %v11026_v36 = vperm.slane %v3700_v59, 0  ;;  %vm13161_vm2 = vcmp.lt.f32.partialorder %v5639_v46, %v10264_v17  ;;  %v3652_v60 = vsel %vm10956_vm8, 1.0, %v4314_v0 }
 0x790   :  { %vm11034_vm0 = vmand %vm3609_vm7, %vm13161_vm2  ;;  %v3653_v6 = vsel %vm10973_vm4, 1.0, %v4314_v0  ;;  %v3654_v21 = vsel %vm10988_vm6, 1.0, %v4314_v0  ;;  %v3661_v59 = vmax.f32 %v3659_v24, %v3651_v35  ;;  %vm13164_vm15 = vcmp.lt.f32.partialorder %v5723_v43, %v10264_v17 }
 0x791   :  { %vm13165_vm7 = vcmp.le.f32.partialorder %v10108_v32, %v5723_v43  ;;  %v3662_v13 = vmax.f32 %v3660_v2, %v3653_v6  ;;  %v3668_v25 = vmax.f32 %v3666_v22, %v3652_v60  ;;  %v3669_v14 = vmax.f32 %v3667_v12, %v3654_v21 }
 0x792   :  { %vm3642_vm5 = vmand %vm13165_vm7, %vm13164_vm15  ;;  %v11053_v45 = vperm.slane %v3701_v29, 0  ;;  %vm3589_vm8 = vcmp.lt.f32.partialorder %v3573_v11, inf  ;;  %vm3590_vm11 = vcmp.lt.f32.partialorder %v3588_v52, inf  ;;  %v3591_v51 = vsub.f32 %v3573_v11, %v5639_v46 }
 0x793   :  { %vm3769_vm4 = vcmp.eq.f32.partialorder %v10898_v50, %v5884_v49  ;;  %v3592_v8 = vsub.f32 %v3588_v52, %v5723_v43  ;;  %v3655_v17 = vsel %vm11001_vm14, 1.0, %v4314_v0  ;;  %v3656_v32 = vsel %vm11015_vm10, 1.0, %v4314_v0 }
 0x794   :  { %vm3771_vm9 = vcmp.eq.f32.partialorder %v10900_v28, %v5884_v49  ;;  %v3657_v46 = vsel %vm11034_vm0, 1.0, %v4314_v0  ;;  %v3658_v29 = vsel %vm3642_vm5, 1.0, %v4314_v0  ;;  %v3663_v9 = vmax.f32 %v3661_v59, %v3655_v17 }
 0x795   :  { %vm3773_vm6 = vcmp.eq.f32.partialorder %v10961_v48, %v5884_v49  ;;  %v3664_v43 = vmax.f32 %v3662_v13, %v3657_v46  ;;  %v3670_v37 = vmax.f32 %v3668_v25, %v3656_v32  ;;  %v3671_v20 = vmax.f32 %v3669_v14, %v3658_v29 }
 0x796   :  { %vm3775_vm3 = vcmp.eq.f32.partialorder %v10963_v15, %v5884_v49  ;;  %vm13166_vm1 = vcmp.lt.s32.totalorder %v4888_v33, 1  ;;  %v11083_v53 = vperm.slane %v3702_v63, 0  ;;  %vm3777_vm10 = vcmp.eq.f32.partialorder %v10965_v5, %v5884_v49 }
 0x797   :  { %vm11077_vm14 = vmand %vm3769_vm4, %vm13166_vm1  ;;  %vm13169_vm2 = vcmp.lt.s32.totalorder %v4888_v33, 2  ;;  %v3593_v47 = vsel %vm3589_vm8, %v3591_v51, 0.0  ;;  %vm3779_vm5 = vcmp.eq.f32.partialorder %v10978_v54, %v5884_v49  ;;  %vm13172_vm4 = vcmp.lt.s32.totalorder %v4888_v33, 3 }
 0x798   :  { %vm11093_vm0 = vmand %vm3771_vm9, %vm13169_vm2  ;;  %v11114_v55 = vsel %vm3590_vm11, %v3592_v8, 0.0  ;;  %vm3781_vm2 = vcmp.eq.f32.partialorder %v10980_v4, %v5884_v49  ;;  %vm13175_vm13 = vcmp.lt.s32.totalorder %v4888_v33, 4  ;;  %v3665_v24 = vmax.f32 %v3663_v9, %v3664_v43 }
 0x799   :  { %vm11109_vm9 = vmand %vm3773_vm6, %vm13172_vm4  ;;  %v3672_v7 = vmax.f32 %v3670_v37, %v3671_v20  ;;  %vm3786_vm4 = vcmp.eq.f32.partialorder %v11005_v1, %v5947_v40  ;;  %vm13178_vm7 = vcmp.lt.s32.totalorder %v4888_v33, 5  ;;  %vm13181_vm8 = vcmp.lt.s32.totalorder %v4888_v33, 6 }
 0x79a   :  { %vm11127_vm6 = vmand %vm3775_vm3, %vm13175_vm13  ;;  %vm13184_vm15 = vcmp.lt.s32.totalorder %v4888_v33, 7  ;;  %v13185_v12 = vmov 0  ;;  %vm13190_vm1 = vcmp.lt.s32.totalorder %v4921_v58, 10  ;;  %vm13200_vm3 = vcmp.eq.f32.partialorder %v11022_v56, %v5947_v40 }
 0x79b   :  { %vm11140_vm12 = vmand %vm3777_vm10, %vm13178_vm7  ;;  %vm13187_vm7 = vcmp.lt.s32.totalorder %v4921_v58, 9  ;;  %v13244_v33 = vmov 0  ;;  %v4023_v41 = vstv %s11843_s20  ;;  %s4315_s20 = smov [#allocation3]  }
 0x79c   :  { %vm11157_vm10 = vmand %vm3779_vm5, %vm13181_vm8  ;;  %s4054_s13 = sshll.u32 %s4315_s20, 4  ;;  %s4055_s13 = int_to_ptr.vmem [resolvable:$true] %s4054_s13 }
 0x79d   :  { %vm11174_vm5 = vmand %vm3781_vm2, %vm13184_vm15  ;;  %vm3673_vm2 = vcmp.gt.f32.partialorder %v3665_v24, 0.0 }
 0x79e   :  { %v13186_v12 = vsel %vm11174_vm5, 4294967295, %v13185_v12  ;;  %vm11191_vm15 = vmand %vm3786_vm4, %vm13187_vm7  ;;  %vm13191_vm5 = vcmp.eq.f32.partialorder %v11007_v26, %v5947_v40  ;;  %vm13194_vm7 = vcmp.gt.f32.partialorder %v10898_v50, %v5884_v49  ;;  %v3675_v18 = vsel %vm3673_vm2, %v3593_v47, 0.0 }
 0x79f   :  { %vm11206_vm4 = vmand %vm13191_vm5, %vm13190_vm1  ;;  %vm3792_vm1 = vcmp.eq.f32.partialorder %v11024_v57, %v5947_v40  ;;  %vm13197_vm5 = vcmp.gt.f32.partialorder %v10900_v28, %v5884_v49  ;;  %vm13217_vm2 = vcmp.gt.f32.partialorder %v10978_v54, %v5884_v49 }
 0x7a0   :  { %vm11215_vm13 = vmor %vm13194_vm7, %vm11077_vm14  ;;  %vm13198_vm14 = vcmp.gt.f32.partialorder %v10900_v28, %v5947_v40  ;;  %vm13199_vm7 = vcmp.lt.s32.totalorder %v4921_v58, 11 }
 0x7a1   :  { %vm3835_vm8 = vmor %vm13197_vm5, %vm11093_vm0  ;;  %v3865_v10 = vsel %vm11215_vm13, %v10898_v50, inf  ;;  %v3868_v35 = vsel %vm13198_vm14, %v10900_v28, inf  ;;  %vm13203_vm0 = vcmp.gt.f32.partialorder %v10961_v48, %v5884_v49  ;;  %vm13206_vm5 = vcmp.gt.f32.partialorder %v10878_v39, %v5884_v49 }
 0x7a2   :  { %vm11244_vm11 = vmand %vm13200_vm3, %vm13199_vm7  ;;  %v3863_v6 = vsel %vm13206_vm5, %v10878_v39, inf  ;;  %vm13207_vm3 = vcmp.gt.f32.partialorder %v10898_v50, %v5947_v40  ;;  %v3867_v59 = vsel %vm3835_vm8, %v10900_v28, inf  ;;  %vm13208_vm14 = vcmp.gt.f32.partialorder %v10961_v48, %v5947_v40 }
 0x7a3   :  { %vm11253_vm13 = vmor %vm13203_vm0, %vm11109_vm9  ;;  %v3866_v21 = vsel %vm13207_vm3, %v10898_v50, inf  ;;  %v3870_v13 = vsel %vm13208_vm14, %v10961_v48, inf  ;;  %vm3794_vm7 = vcmp.eq.f32.partialorder %v11026_v36, %v5947_v40  ;;  %vm13209_vm0 = vcmp.gt.f32.partialorder %v10963_v15, %v5884_v49 }
 0x7a4   :  { %vm11279_vm5 = vmor %vm13209_vm0, %vm11127_vm6  ;;  %vm13212_vm8 = vcmp.gt.f32.partialorder %v10878_v39, %v5947_v40  ;;  %v3869_v51 = vsel %vm11253_vm13, %v10961_v48, inf  ;;  %v3895_v8 = vmin.f32 %v3863_v6, %v3867_v59  ;;  %vm3783_vm14 = vcmp.eq.f32.partialorder %v10993_v19, %v5884_v49 }
 0x7a5   :  { %v3864_v14 = vsel %vm13212_vm8, %v10878_v39, inf  ;;  %vm3785_vm6 = vcmp.eq.f32.partialorder %v11005_v1, %v5884_v49  ;;  %vm13213_vm0 = vcmp.lt.s32.totalorder %v4921_v58, 12  ;;  %vm13216_vm13 = vcmp.gt.f32.partialorder %v10965_v5, %v5884_v49 }
 0x7a6   :  { %vm11301_vm8 = vmand %vm3792_vm1, %vm13213_vm0  ;;  %v3896_v32 = vmin.f32 %v3865_v10, %v3869_v51  ;;  %v3910_v46 = vmin.f32 %v3864_v14, %v3868_v35  ;;  %vm3796_vm9 = vcmp.eq.f32.partialorder %v11053_v45, %v5947_v40  ;;  %v3871_v9 = vsel %vm11279_vm5, %v10963_v15, inf }
 0x7a7   :  { %vm3841_vm3 = vmor %vm13216_vm13, %vm11140_vm12  ;;  %v3911_v37 = vmin.f32 %v3866_v21, %v3870_v13  ;;  %vm13220_vm12 = vcmp.gt.f32.partialorder %v3672_v7, 0.0  ;;  %vm13221_vm13 = vcmp.lt.s32.totalorder %v4921_v58, 13  ;;  %vm13225_vm5 = vcmp.gt.f32.partialorder %v10980_v4, %v5884_v49 }
 0x7a8   :  { %vm11317_vm1 = vmor %vm13217_vm2, %vm11157_vm10  ;;  %v3873_v43 = vsel %vm3841_vm3, %v10965_v5, inf  ;;  %v3676_v20 = vsel %vm13220_vm12, %v11114_v55, 0.0  ;;  %vm13224_vm2 = vnez %v13186_v12  ;;  %v3897_v47 = vmin.f32 %v3895_v8, %v3871_v9 }
 0x7a9   :  { %vm11334_vm10 = vmand %vm3794_vm7, %vm13221_vm13  ;;  %v3898_v63 = vmin.f32 %v3896_v32, %v3873_v43  ;;  %v3677_v55 = vadd.f32 %v3676_v20, %v3675_v18  ;;  %vm13228_vm13 = vcmp.gt.f32.partialorder %v10993_v19, %v5884_v49  ;;  %vm13232_vm7 = vcmp.lt.s32.totalorder %v4921_v58, 14 }
 0x7aa   :  { %vm11343_vm3 = vmor %vm13225_vm5, %vm13224_vm2  ;;  %vm13231_vm2 = vcmp.gt.f32.partialorder %v10963_v15, %v5947_v40  ;;  %vm13238_vm12 = vcmp.gt.f32.partialorder %v10965_v5, %v5947_v40  ;;  %v3875_v18 = vsel %vm11317_vm1, %v10978_v54, inf  ;;  %vm13246_vm1 = vcmp.eq.f32.partialorder %v11007_v26, %v5884_v49 }
 0x7ab   :  { %vm11357_vm0 = vmor %vm13228_vm13, %vm3783_vm14  ;;  %v3872_v24 = vsel %vm13231_vm2, %v10963_v15, inf  ;;  %vm13235_vm13 = vcmp.gt.f32.partialorder %v11005_v1, %v5884_v49  ;;  %v3874_v22 = vsel %vm13238_vm12, %v10965_v5, inf  ;;  %v3877_v10 = vsel %vm11343_vm3, %v10980_v4, inf }
 0x7ac   :  { %vm11374_vm14 = vmand %vm3796_vm9, %vm13232_vm7  ;;  %v3912_v12 = vmin.f32 %v3910_v46, %v3872_v24  ;;  %vm13239_vm7 = vcmp.gt.f32.partialorder %v11005_v1, %v5947_v40  ;;  %v3913_v35 = vmin.f32 %v3911_v37, %v3874_v22  ;;  %vm13247_vm3 = vcmp.gt.f32.partialorder %v11007_v26, %v5884_v49 }
 0x7ad   :  { %vm11384_vm2 = vmor %vm13235_vm13, %vm3785_vm6  ;;  %vm13243_vm13 = vcmp.eq.f32.partialorder %v11083_v53, %v5947_v40  ;;  %v3899_v6 = vmin.f32 %v3897_v47, %v3875_v18  ;;  %v3900_v21 = vmin.f32 %v3898_v63, %v3877_v10  ;;  %v3879_v8 = vsel %vm11357_vm0, %v10993_v19, inf }
 0x7ae   :  { %vm11399_vm5 = vmor %vm13239_vm7, %vm11191_vm15  ;;  %vm13242_vm15 = vcmp.lt.s32.totalorder %v4921_v58, 15  ;;  %v3678_v58 = vrot.slane %v3677_v55, 4  ;;  %v3881_v32 = vsel %vm11384_vm2, %v11005_v1, inf  ;;  %v4243_v37 = vmul.f32 -1.442695, %v4023_v41 }
 0x7af   :  { %vm11418_vm7 = vmand %vm13243_vm13, %vm13242_vm15  ;;  %vm3791_vm15 = vcmp.eq.f32.partialorder %v11024_v57, %v5884_v49  ;;  %vm13250_vm13 = vcmp.gt.f32.partialorder %v11007_v26, %v5947_v40  ;;  %v3901_v9 = vmin.f32 %v3899_v6, %v3879_v8  ;;  %v3902_v43 = vmin.f32 %v3900_v21, %v3881_v32 }
 0x7b0   :  { %v13245_v33 = vsel %vm11418_vm7, 4294967295, %v13244_v33  ;;  %vm11428_vm9 = vmor %vm13247_vm3, %vm13246_vm1  ;;  %vm13253_vm1 = vcmp.gt.f32.partialorder %v10978_v54, %v5947_v40  ;;  %vm13254_vm7 = vcmp.eq.f32.partialorder %v11022_v56, %v5884_v49  ;;  %vm13259_vm3 = vcmp.gt.f32.partialorder %v11022_v56, %v5947_v40 }
 0x7b1   :  { %vm11441_vm6 = vmor %vm13250_vm13, %vm11206_vm4  ;;  %v3876_v13 = vsel %vm13253_vm1, %v10978_v54, inf  ;;  %vm13255_vm4 = vcmp.gt.f32.partialorder %v11022_v56, %v5884_v49  ;;  %vm13258_vm1 = vcmp.gt.f32.partialorder %v10980_v4, %v5947_v40  ;;  %v11494_v20 = vadd.f32 %v3678_v58, %v3677_v55 }
 0x7b2   :  { %vm11459_vm13 = vmor %vm13255_vm4, %vm13254_vm7  ;;  %v3878_v25 = vsel %vm13258_vm1, %v10980_v4, inf  ;;  %v3914_v14 = vmin.f32 %v3912_v12, %v3876_v13  ;;  %vm13265_vm2 = vcmp.gt.f32.partialorder %v11024_v57, %v5947_v40  ;;  %vm13270_vm0 = vcmp.gt.f32.partialorder %v11026_v36, %v5884_v49 }
 0x7b3   :  { %vm11472_vm12 = vmor %vm13259_vm3, %vm11244_vm11  ;;  %v3915_v46 = vmin.f32 %v3913_v35, %v3878_v25  ;;  %vm13262_vm11 = vcmp.gt.f32.partialorder %v11024_v57, %v5884_v49  ;;  %v3882_v63 = vsel %vm11399_vm5, %v11005_v1, inf  ;;  %4283 = vpow2.f32 %v4243_v37 }
 0x7b4   :  { %vm11490_vm3 = vmor %vm13262_vm11, %vm3791_vm15  ;;  %vm13268_vm15 = vcmp.gt.f32.partialorder %v10993_v19, %v5947_v40  ;;  %vm13269_vm11 = vcmp.eq.f32.partialorder %v11026_v36, %v5884_v49  ;;  %v3883_v34 = vsel %vm11428_vm9, %v11007_v26, inf  ;;  %v3885_v24 = vsel %vm11459_vm13, %v11022_v56, inf }
 0x7b5   :  { %vm11503_vm4 = vmor %vm13265_vm2, %vm11301_vm8  ;;  %v3880_v47 = vsel %vm13268_vm15, %v10993_v19, inf  ;;  %vm13273_vm15 = vcmp.gt.f32.partialorder %v11026_v36, %v5947_v40  ;;  %v3917_v22 = vmin.f32 %v3915_v46, %v3882_v63  ;;  %vm13276_vm5 = vcmp.eq.f32.partialorder %v11053_v45, %v5884_v49 }
 0x7b6   :  { %vm11519_vm7 = vmor %vm13270_vm0, %vm13269_vm11  ;;  %v3916_v2 = vmin.f32 %v3914_v14, %v3880_v47  ;;  %vm13277_vm11 = vcmp.gt.f32.partialorder %v11053_v45, %v5884_v49  ;;  %v3903_v12 = vmin.f32 %v3901_v9, %v3883_v34  ;;  %v3904_v52 = vmin.f32 %v3902_v43, %v3885_v24 }
 0x7b7   :  { %vm11535_vm0 = vmor %vm13273_vm15, %vm11334_vm10  ;;  %vm13280_vm15 = vcmp.gt.f32.partialorder %v11053_v45, %v5947_v40  ;;  %vm3947_vm9 = vcmp.lt.f32.partialorder %v5884_v49, %v10993_v19  ;;  %vm13283_vm8 = vcmp.eq.f32.partialorder %v11083_v53, %v5884_v49  ;;  %v3884_v10 = vsel %vm11441_vm6, %v11007_v26, inf }
 0x7b8   :  { %vm11551_vm10 = vmor %vm13277_vm11, %vm13276_vm5  ;;  %v3886_v35 = vsel %vm11472_vm12, %v11022_v56, inf  ;;  %vm3949_vm5 = vcmp.lt.f32.partialorder %v5884_v49, %v11005_v1  ;;  %vm13288_vm13 = vcmp.gt.f32.partialorder %v11083_v53, %v5947_v40  ;;  %v3887_v6 = vsel %vm11490_vm3, %v11024_v57, inf }
 0x7b9   :  { %vm11564_vm2 = vmor %vm13280_vm15, %vm11374_vm14  ;;  %vm13284_vm14 = vcmp.gt.f32.partialorder %v11083_v53, %v5884_v49  ;;  %v3889_v21 = vsel %vm11519_vm7, %v11026_v36, inf  ;;  %v3918_v58 = vmin.f32 %v3916_v2, %v3884_v10  ;;  %v3919_v59 = vmin.f32 %v3917_v22, %v3886_v35 }
 0x7ba   :  { %vm11582_vm15 = vmor %vm13284_vm14, %vm13283_vm8  ;;  %vm13287_vm14 = vnez %v13245_v33  ;;  %v4284_v33 = vpop.eup %4283  ;;  %v3905_v13 = vmin.f32 %v3903_v12, %v3887_v6  ;;  %v3906_v11 = vmin.f32 %v3904_v52, %v3889_v21  ;;  %vm13291_vm7 = vcmp.le.f32.partialorder %v10878_v39, %v5884_v49 }
 0x7bb   :  { %vm11603_vm1 = vmor %vm13288_vm13, %vm13287_vm14  ;;  %vm3953_vm12 = vcmp.lt.f32.partialorder %v5884_v49, %v11022_v56  ;;  %vm3954_vm11 = vcmp.lt.f32.partialorder %v5947_v40, %v11022_v56  ;;  %vm3955_vm3 = vcmp.lt.f32.partialorder %v5884_v49, %v11024_v57  ;;  %vm3956_vm13 = vcmp.lt.f32.partialorder %v5947_v40, %v11024_v57 }
 0x7bc   :  { %vm11627_vm14 = vmand %vm13291_vm7, %vm3947_vm9  ;;  %vm13294_vm9 = vcmp.lt.f32.partialorder %v5947_v40, %v10993_v19  ;;  %vm13295_vm7 = vcmp.le.f32.partialorder %v10878_v39, %v5947_v40  ;;  %v3888_v51 = vsel %vm11503_vm4, %v11024_v57, inf  ;;  %v3890_v8 = vsel %vm11535_vm0, %v11026_v36, inf }
 0x7bd   :  { %vm11647_vm8 = vmand %vm13295_vm7, %vm13294_vm9  ;;  %vm13298_vm9 = vcmp.le.f32.partialorder %v10898_v50, %v5884_v49  ;;  %v11665_v39 = vadd.f32 1.0, %v4284_v33  ;;  %v3891_v19 = vsel %vm11551_vm10, %v11053_v45, inf  ;;  %v3893_v32 = vsel %vm11582_vm15, %v11083_v53, inf }
 0x7be   :  { %vm3965_vm7 = vmand %vm13298_vm9, %vm3949_vm5  ;;  %v3920_v46 = vmin.f32 %v3918_v58, %v3888_v51  ;;  %v3921_v41 = vmin.f32 %v3919_v59, %v3890_v8  ;;  %vm13299_vm4 = vcmp.lt.f32.partialorder %v5947_v40, %v11005_v1  ;;  %vm13300_vm0 = vcmp.le.f32.partialorder %v10898_v50, %v5947_v40 }
 0x7bf   :  { %vm3966_vm6 = vmand %vm13300_vm0, %vm13299_vm4  ;;  %v3892_v29 = vsel %vm11564_vm2, %v11053_v45, inf  ;;  %v3894_v9 = vsel %vm11603_vm1, %v11083_v53, inf  ;;  %v3907_v43 = vmin.f32 %v3905_v13, %v3891_v19  ;;  %v3908_v37 = vmin.f32 %v3906_v11, %v3893_v32 }
 0x7c0   :  { %vm13301_vm10 = vcmp.lt.f32.partialorder %v5884_v49, %v11007_v26  ;;  %vm13302_vm5 = vcmp.le.f32.partialorder %v10900_v28, %v5884_v49  ;;  %vm13303_vm9 = vcmp.lt.f32.partialorder %v5947_v40, %v11007_v26  ;;  %vm13304_vm4 = vcmp.le.f32.partialorder %v10900_v28, %v5947_v40 }
 0x7c1   :  { %vm3967_vm15 = vmand %vm13302_vm5, %vm13301_vm10  ;;  %v3979_v50 = vsel %vm11627_vm14, 1.0, %v4314_v0  ;;  %v3980_v1 = vsel %vm11647_vm8, 1.0, %v4314_v0  ;;  %v3981_v62 = vsel %vm3965_vm7, 1.0, %v4314_v0  ;;  %vm13305_vm1 = vcmp.le.f32.partialorder %v10961_v48, %v5884_v49 }
 0x7c2   :  { %vm3968_vm2 = vmand %vm13304_vm4, %vm13303_vm9  ;;  %v3983_v47 = vsel %vm3967_vm15, 1.0, %v4314_v0  ;;  %v3982_v28 = vsel %vm3966_vm6, 1.0, %v4314_v0  ;;  %4285 = vrcp.f32 %v11665_v39  ;;  %v3922_v63 = vmin.f32 %v3920_v46, %v3892_v29 }
 0x7c3   :  { %vm3969_vm0 = vmand %vm13305_vm1, %vm3953_vm12  ;;  %v3984_v26 = vsel %vm3968_vm2, 1.0, %v4314_v0  ;;  %v3995_v17 = vmax.f32 %v3979_v50, %v3983_v47  ;;  %v3923_v55 = vmin.f32 %v3921_v41, %v3894_v9  ;;  %vm13306_vm8 = vcmp.le.f32.partialorder %v10961_v48, %v5947_v40 }
 0x7c4   :  { %vm3970_vm14 = vmand %vm13306_vm8, %vm3954_vm11  ;;  %v3985_v34 = vsel %vm3969_vm0, 1.0, %v4314_v0  ;;  %v4002_v24 = vmax.f32 %v3980_v1, %v3984_v26  ;;  %vm3942_vm6 = vcmp.le.f32.partialorder %v10965_v5, %v5947_v40  ;;  %vm3958_vm12 = vcmp.lt.f32.partialorder %v5947_v40, %v11026_v36 }
 0x7c5   :  { %vm13307_vm7 = vcmp.le.f32.partialorder %v10963_v15, %v5884_v49  ;;  %v3986_v56 = vsel %vm3970_vm14, 1.0, %v4314_v0  ;;  %v3996_v48 = vmax.f32 %v3981_v62, %v3985_v34  ;;  %vm3943_vm11 = vcmp.le.f32.partialorder %v10978_v54, %v5884_v49  ;;  %vm3974_vm0 = vmand %vm3942_vm6, %vm3958_vm12 }
 0x7c6   :  { %vm3971_vm10 = vmand %vm13307_vm7, %vm3955_vm3  ;;  %vm3959_vm5 = vcmp.lt.f32.partialorder %v5884_v49, %v11053_v45  ;;  %vm13308_vm15 = vcmp.le.f32.partialorder %v10963_v15, %v5947_v40  ;;  %v4003_v22 = vmax.f32 %v3982_v28, %v3986_v56  ;;  %v3909_v23 = vmin.f32 %v3907_v43, %v3908_v37 }
 0x7c7   :  { %vm3972_vm9 = vmand %vm13308_vm15, %vm3956_vm13  ;;  %v3987_v2 = vsel %vm3971_vm10, 1.0, %v4314_v0  ;;  %vm3960_vm3 = vcmp.lt.f32.partialorder %v5947_v40, %v11053_v45  ;;  %vm13309_vm4 = vcmp.lt.f32.partialorder %v5884_v49, %v11026_v36  ;;  %vm13310_vm2 = vcmp.le.f32.partialorder %v10965_v5, %v5884_v49 }
 0x7c8   :  { %vm3973_vm1 = vmand %vm13310_vm2, %vm13309_vm4  ;;  %v3988_v57 = vsel %vm3972_vm9, 1.0, %v4314_v0  ;;  %v3997_v12 = vmax.f32 %v3995_v17, %v3987_v2  ;;  %v3924_v52 = vmin.f32 %v3922_v63, %v3923_v55  ;;  %vm3961_vm13 = vcmp.lt.f32.partialorder %v5884_v49, %v11083_v53  ;;  %v11761_v7 = vpop.eup %4285 }
 0x7c9   :  { %v3989_v15 = vsel %vm3973_vm1, 1.0, %v4314_v0  ;;  %v4004_v18 = vmax.f32 %v4002_v24, %v3988_v57  ;;  %vm3944_vm8 = vcmp.le.f32.partialorder %v10978_v54, %v5947_v40  ;;  %vm3962_vm14 = vcmp.lt.f32.partialorder %v5947_v40, %v11083_v53  ;;  %vm3975_vm7 = vmand %vm3943_vm11, %vm3959_vm5 }
 0x7ca   :  { %v3990_v5 = vsel %vm3974_vm0, 1.0, %v4314_v0  ;;  %v3998_v36 = vmax.f32 %v3996_v48, %v3989_v15  ;;  %vm3945_vm6 = vcmp.le.f32.partialorder %v10980_v4, %v5884_v49  ;;  %vm3946_vm12 = vcmp.le.f32.partialorder %v10980_v4, %v5947_v40  ;;  %vm3976_vm10 = vmand %vm3944_vm8, %vm3960_vm3 }
 0x7cb   :  { %v3991_v10 = vsel %vm3975_vm7, 1.0, %v4314_v0  ;;  %v4005_v35 = vmax.f32 %v4003_v22, %v3990_v5  ;;  %vm3925_vm15 = vcmp.lt.f32.partialorder %v3909_v23, inf  ;;  %v3927_v54 = vsub.f32 %v3909_v23, %v5884_v49  ;;  %vm3977_vm11 = vmand %vm3945_vm6, %vm3961_vm13 }
 0x7cc   :  { %v3992_v60 = vsel %vm3976_vm10, 1.0, %v4314_v0  ;;  %v3999_v6 = vmax.f32 %v3997_v12, %v3991_v10  ;;  %v3928_v21 = vsub.f32 %v3924_v52, %v5947_v40  ;;  %vm3978_vm5 = vmand %vm3946_vm12, %vm3962_vm14  ;;  %v3993_v4 = vsel %vm3977_vm11, 1.0, %v4314_v0 }
 0x7cd   :  { %v4006_v45 = vmax.f32 %v4004_v18, %v3992_v60  ;;  %v4029_v58 = vmul.f32 %v11761_v7, %v11665_v39  ;;  %v2673_v49 = vadd.f32 %v2672_v38, %v8806_v44  ;;  %vm3926_vm9 = vcmp.lt.f32.partialorder %v3924_v52, inf }
 0x7ce   :  { %v3994_v59 = vsel %vm3978_vm5, 1.0, %v4314_v0  ;;  %v4000_v33 = vmax.f32 %v3998_v36, %v3993_v4  ;;  %v1668_v13 = vrot.slane %v6678_v16, 1  ;;  %v3344_v11 = vrot.slane %v10637_v31, 2 }
 0x7cf   :  { %v4007_v40 = vmax.f32 %v4005_v35, %v3994_v59  ;;  %v2338_v53 = vrot.slane %v8007_v30, 1  ;;  %v3009_v25 = vadd.f32 %v3008_v61, %v9685_v3  ;;  %v3929_v14 = vsel %vm3925_vm15, %v3927_v54, 0.0 }
 0x7d0   :  { %v4001_v51 = vmax.f32 %v3999_v6, %v4000_v33  ;;  %v3680_v44 = vrot.slane %v11494_v20, 2  ;;  %v3930_v38 = vsel %vm3926_vm9, %v3928_v21, 0.0  ;;  %v4030_v0 = vsub.f32 1.0, %v4029_v58 }
 0x7d1   :  { %v4008_v8 = vmax.f32 %v4006_v45, %v4007_v40  ;;  %v2003_v19 = vadd.f32 %v2002_v27, %v7120_v42  ;;  %v2674_v32 = vrot.slane %v2673_v49, 1  ;;  %v3345_v46 = vadd.f32 %v3344_v11, %v10637_v31 }
 0x7d2   :  { %vm4009_vm3 = vcmp.gt.f32.partialorder %v4001_v51, 0.0  ;;  %v1669_v3 = vadd.f32 %v1668_v13, %v6678_v16  ;;  %v2339_v61 = vadd.f32 %v2338_v53, %v8007_v30  ;;  %v3010_v29 = vrot.slane %v3009_v25, 1 }
 0x7d3   :  { %vm4010_vm4 = vcmp.gt.f32.partialorder %v4008_v8, 0.0  ;;  %v4011_v41 = vsel %vm4009_vm3, %v3929_v14, 0.0  ;;  %v3681_v43 = vadd.f32 %v3680_v44, %v11494_v20  ;;  %v4031_v50 = vmul.f32 %v11761_v7, %v4030_v0 }
 0x7d4   :  { %v4012_v9 = vsel %vm4010_vm4, %v3930_v38, 0.0  ;;  %v2004_v1 = vmax.f32 %v1669_v3, %v2003_v19  ;;  %v2005_v62 = vadd.f32 %v2003_v19, %v1669_v3  ;;  %v2675_v42 = vadd.f32 %v2674_v32, %v2673_v49 }
 0x7d5   :  { %v4013_v37 = vadd.f32 %v4012_v9, %v4011_v41  ;;  %v3346_v27 = vrot.slane %v3345_v46, 1  ;;  %vm4033_vm2 = vweird.f32 %v11665_v39  ;;  %vm4034_vm1 = vweird.f32 %v11761_v7 }
 0x7d6   :  { %v2340_v31 = vmax.f32 %v2004_v1, %v2339_v61  ;;  %v2341_v16 = vadd.f32 %v2339_v61, %v2005_v62  ;;  %v3011_v28 = vadd.f32 %v3010_v29, %v3009_v25  ;;  %v4039_v30 = vand.u32 2147483648, %v11665_v39  ;;  %vm4035_vm13 = vmor %vm4033_vm2, %vm4034_vm1 }
 0x7d7   :  { %v4014_v47 = vrot.slane %v4013_v37, 4  ;;  %v3682_v26 = vrot.slane %v3681_v43, 1  ;;  %v4032_v20 = vadd.f32 %v11761_v7, %v4031_v50  ;;  %v4037_v63 = vand.u32 2147483647, %v11665_v39 }
 0x7d8   :  { %v2676_v55 = vmax.f32 %v2340_v31, %v2675_v42  ;;  %v2677_v34 = vadd.f32 %v2675_v42, %v2341_v16  ;;  %v3347_v24 = vadd.f32 %v3346_v27, %v3345_v46  ;;  %v4040_v22 = vor.u32 1.1754944e-38, %v4039_v30 }
 0x7d9   :  { %v4015_v17 = vadd.f32 %v4014_v47, %v4013_v37  ;;  %v3683_v23 = vadd.f32 %v3682_v26, %v3681_v43  ;;  %v4036_v12 = vsel %vm4035_vm13, %v11761_v7, %v4032_v20  ;;  %vm4038_vm0 = vcmp.eq.f32.partialorder %v4037_v63, 8.507059e+37 }
 0x7da   :  { %v3012_v48 = vmax.f32 %v2676_v55, %v3011_v28  ;;  %v3013_v2 = vadd.f32 %v3011_v28, %v2677_v34  ;;  %v4041_v5 = vsel %vm4038_vm0, %v4040_v22, %v4036_v12 }
 0x7db   :  { %v4016_v56 = vrot.slane %v4015_v17, 2  ;;  %v4044_v60 = vsub.f32 1.0, %v4041_v5 }
 0x7dc   :  { %v3348_v52 = vmax.f32 %v3012_v48, %v3347_v24  ;;  %v3349_v15 = vadd.f32 %v3347_v24, %v3013_v2 }
 0x7dd   :  { %v4017_v57 = vadd.f32 %v4016_v56, %v4015_v17 }
 0x7de   :  { %v3684_v36 = vmax.f32 %v3348_v52, %v3683_v23  ;;  %v3685_v10 = vadd.f32 %v3683_v23, %v3349_v15 }
 0x7df   :  { %v4018_v18 = vrot.slane %v4017_v57, 1 }
 0x7e1   :  { %v4019_v39 = vadd.f32 %v4018_v18, %v4017_v57 }
 0x7e3   :  { %v4020_v35 = vmax.f32 %v3684_v36, %v4019_v39  ;;  %v4021_v54 = vadd.f32 %v4019_v39, %v3685_v10 }
 0x7e5   :  { %v4045_v6 = vmul.f32 0.125, %v4021_v54  ;;  %v4043_v21 = vmul.f32 %v4041_v5, %v4020_v35 }
 0x7e7   :  { %v4046_v7 = vmul.f32 %v4045_v6, %v4044_v60 }
 0x7e9   :  { %v4047_v4 = vadd.f32 %v4046_v7, %v4043_v21 }
 0x7eb   :  { %4048 = vst [vmem:[#allocation3] sm:$0x1] %v4047_v4 }
 0x7ec   :  { %4059 = dma.vmem_to_hbm [thread:$0]  %s4055_s13, 16, %s4057_s17, [#allocation4]  }
 0x7ed   :  { %4311 = dma.done.wait [#allocation4], 16  }
 0x7ee   :  { %4312 = vsyncadd [#allocation4], 4294967280 }
 0x7ef   :  { %4064 = vsyncpa [#allocation4], 1 }

</bundles_post_ra>
